<compile_context>
chip_gen: v6e
topology: v6e:2x2x1
jax: 0.10.0
libtpu: 0.0.40
codegen_flags: <defaults>
</compile_context>

<pallas_src>
import functools

import jax
import jax.numpy as jnp
import numpy as np
from jax.experimental import pallas as pl
from jax.experimental.pallas import tpu as pltpu

BN_EPS = 1e-5
MAX_TILE_ROWS = 1024                 # sized so the per-step working set fits v7x VMEM
VMEM_LIMIT = 48 * 1024 * 1024        # explicit scoped-VMEM limit (headroom on all gens)


def _round_up(v, m):
    return ((v + m - 1) // m) * m


def _choose_row_tile(n, max_rows=MAX_TILE_ROWS):
    """Largest multiple-of-8 divisor of n that is <= max_rows (else n itself)."""
    if n <= max_rows:
        return n
    for t in range(max_rows - max_rows % 8, 0, -8):
        if n % t == 0:
            return t
    return n  # ragged N with no aligned divisor: fall back to one tile per batch row


# --------------------------------------------------------------------------- #
# Kernels
# --------------------------------------------------------------------------- #
def _make_layer1_kernel():
    def kernel(x_ref, w1_ref, y1_ref, s_ref, q_ref):
        t = pl.program_id(1)
        # Conv2d(1, 64, kernel=(1, D), bias=False) == per-point matmul (K padded to 8).
        y = jnp.dot(x_ref[...], w1_ref[...], preferred_element_type=jnp.float32)
        y1_ref[...] = y

        @pl.when(t == 0)
        def _():
            s_ref[...] = jnp.zeros_like(s_ref)
            q_ref[...] = jnp.zeros_like(q_ref)

        # one-pass BN stats: running sum and sum of squares
        s_ref[...] += jnp.sum(y, axis=0, keepdims=True)
        q_ref[...] += jnp.sum(y * y, axis=0, keepdims=True)

    return kernel


def _make_mid_kernel():
    """relu(BN_prev(y_prev)) @ W_next, store pre-activation + accumulate its stats."""

    def kernel(bn_ref, yin_ref, w_ref, yout_ref, s_ref, q_ref):
        t = pl.program_id(1)
        m, r = bn_ref[0], bn_ref[1]                               # scalar BN params (SMEM)
        h = jnp.maximum((yin_ref[...] - m) * r, 0.0).astype(w_ref.dtype)   # f32 BN, bf16 operand
        y = jnp.dot(h, w_ref[...], preferred_element_type=jnp.float32)
        yout_ref[...] = y

        @pl.when(t == 0)
        def _():
            s_ref[...] = jnp.zeros_like(s_ref)
            q_ref[...] = jnp.zeros_like(q_ref)

        s_ref[...] += jnp.sum(y, axis=0, keepdims=True)
        q_ref[...] += jnp.sum(y * y, axis=0, keepdims=True)

    return kernel


def _make_layer3_kernel():
    """relu(BN2(y2)) @ W3 with a streaming per-batch max pool (no (P,1024) buffer)."""

    def kernel(bn_ref, y2_ref, w3_ref, mx_ref, s_ref, q_ref):
        t = pl.program_id(1)
        m, r = bn_ref[0], bn_ref[1]
        h = jnp.maximum((y2_ref[...] - m) * r, 0.0).astype(w3_ref.dtype)
        y = jnp.dot(h, w3_ref[...], preferred_element_type=jnp.float32)   # (TM, 1024)

        @pl.when(t == 0)
        def _():
            mx_ref[...] = jnp.full_like(mx_ref, -jnp.inf)
            s_ref[...] = jnp.zeros_like(s_ref)
            q_ref[...] = jnp.zeros_like(q_ref)

        # Max-pool commutes with BN(+ReLU): BN scale > 0 and ReLU is monotonic,
        # so the max is taken on the raw pre-activation and BN3+ReLU is applied
        # to the pooled (B, 1024) features afterwards.
        mx_ref[...] = jnp.maximum(mx_ref[...], jnp.max(y, axis=0, keepdims=True))
        s_ref[...] += jnp.sum(y, axis=0, keepdims=True)
        q_ref[...] += jnp.sum(y * y, axis=0, keepdims=True)

    return kernel


def _make_head_kernel(batch):
    inv_b = 1.0 / batch

    def kernel(bn3_ref, g_ref, wf1_ref, bf1_ref, wf2_ref, bf2_ref,
               wf3_ref, bf3_ref, out_ref):
        m3, r3 = bn3_ref[0], bn3_ref[1]
        g = jnp.maximum((g_ref[...] - m3) * r3, 0.0)        # BN3 + ReLU on pooled features

        def fc_bn_relu(z, w_ref, b_ref):
            y = jnp.dot(z.astype(w_ref.dtype), w_ref[...],
                        preferred_element_type=jnp.float32) + b_ref[...]
            # BatchNorm1d, training mode: per-feature stats over the batch, one pass.
            mean = jnp.sum(y, axis=0, keepdims=True) * inv_b
            var = jnp.maximum(jnp.sum(y * y, axis=0, keepdims=True) * inv_b - mean * mean,
                              0.0)
            return jnp.maximum((y - mean) * jax.lax.rsqrt(var + BN_EPS), 0.0)

        f = fc_bn_relu(g, wf1_ref, bf1_ref)                  # (B, 512)
        f = fc_bn_relu(f, wf2_ref, bf2_ref)                  # (B, 256)
        # fc3; bias already has eye(D) folded in.
        out_ref[...] = jnp.dot(f, wf3_ref[...],
                               preferred_element_type=jnp.float32) + bf3_ref[...]

    return kernel


# --------------------------------------------------------------------------- #
# Host-side glue / wrapper
# --------------------------------------------------------------------------- #
def _bn_scalars(colsum, colsumsq, count):
    """Reduce per-batch partial sums to the global scalar (mean, rsqrt(var+eps))."""
    total = jnp.sum(colsum)
    totsq = jnp.sum(colsumsq)
    mean = total / count
    var = jnp.maximum(totsq / count - mean * mean, 0.0)      # biased var, one pass
    return jnp.stack([mean, jax.lax.rsqrt(var + BN_EPS)]).astype(jnp.float32)


def t_net_forward(x_nchw, params, sym_size, output_size):
    B = x_nchw.shape[0]
    N, D = sym_size, output_size
    DD = D * D
    assert x_nchw.shape == (B, 1, N, D)
    P = B * N

    # ---- host-side prep (layout / dtype plumbing, batch-invariant) ----
    Dp = max(8, _round_up(D, 8))                              # pad the K=D matmul to 8
    x = x_nchw.reshape(B, N, D).astype(jnp.float32)
    x = jnp.pad(x, ((0, 0), (0, 0), (0, Dp - D)))
    w1 = jnp.pad(params["w1"].astype(jnp.float32), ((0, Dp - D), (0, 0)))   # (Dp, 64)
    w2 = params["w2"].astype(jnp.bfloat16)
    w3 = params["w3"].astype(jnp.bfloat16)
    wf1 = params["wf1"].astype(jnp.bfloat16)
    wf2 = params["wf2"].astype(jnp.bfloat16)
    wf3 = params["wf3"].astype(jnp.float32)
    bf3_eff = params["bf3"].astype(jnp.float32) + jnp.eye(D, dtype=jnp.float32).reshape(1, DD)

    TM = _choose_row_tile(N)
    T = N // TM
    grid = (B, T)
    cparams = pltpu.CompilerParams(
        dimension_semantics=("parallel", "arbitrary"),        # batch axis -> both v7x TCs
        vmem_limit_bytes=VMEM_LIMIT)

    row_spec = lambda c: pl.BlockSpec((None, TM, c), lambda b, t: (b, t, 0))
    acc_spec = lambda c: pl.BlockSpec((None, 1, c), lambda b, t: (b, 0, 0))
    full_spec = lambda shp: pl.BlockSpec(shp, lambda b, t: (0,) * len(shp))
    smem_spec = pl.BlockSpec(memory_space=pltpu.MemorySpace.SMEM)
    vmem_spec = pl.BlockSpec(memory_space=pltpu.MemorySpace.VMEM)

    # ---- shared MLP layer 1: y1 = x @ w1 (+ global stats of y1) ----
    y1, s1, q1 = pl.pallas_call(
        _make_layer1_kernel(),
        grid=grid,
        in_specs=[row_spec(Dp), full_spec((Dp, 64))],
        out_specs=(row_spec(64), acc_spec(64), acc_spec(64)),
        out_shape=(jax.ShapeDtypeStruct((B, N, 64), jnp.float32),
                   jax.ShapeDtypeStruct((B, 1, 64), jnp.float32),
                   jax.ShapeDtypeStruct((B, 1, 64), jnp.float32)),
        compiler_params=cparams,
        cost_estimate=pl.CostEstimate(
            flops=2 * P * Dp * 64, transcendentals=0,
            bytes_accessed=4 * (P * Dp + Dp * 64 + P * 64 + 2 * B * 64)),
    )(x, w1)
    bn1 = _bn_scalars(s1, q1, P * 64)

    # ---- shared MLP layer 2: y2 = relu(BN1(y1)) @ w2 (+ global stats of y2) ----
    y2, s2, q2 = pl.pallas_call(
        _make_mid_kernel(),
        grid=grid,
        in_specs=[smem_spec, row_spec(64), full_spec((64, 128))],
        out_specs=(row_spec(128), acc_spec(128), acc_spec(128)),
        out_shape=(jax.ShapeDtypeStruct((B, N, 128), jnp.float32),
                   jax.ShapeDtypeStruct((B, 1, 128), jnp.float32),
                   jax.ShapeDtypeStruct((B, 1, 128), jnp.float32)),
        compiler_params=cparams,
        cost_estimate=pl.CostEstimate(
            flops=2 * P * 64 * 128, transcendentals=0,
            bytes_accessed=4 * (P * 64 + P * 128 + 2 * B * 128) + 2 * 64 * 128),
    )(bn1, y1, w2)
    bn2 = _bn_scalars(s2, q2, P * 128)

    # ---- shared MLP layer 3 + streaming symmetric max pool ----
    mx, s3, q3 = pl.pallas_call(
        _make_layer3_kernel(),
        grid=grid,
        in_specs=[smem_spec, row_spec(128), full_spec((128, 1024))],
        out_specs=(acc_spec(1024), acc_spec(1024), acc_spec(1024)),
        out_shape=(jax.ShapeDtypeStruct((B, 1, 1024), jnp.float32),
                   jax.ShapeDtypeStruct((B, 1, 1024), jnp.float32),
                   jax.ShapeDtypeStruct((B, 1, 1024), jnp.float32)),
        compiler_params=cparams,
        cost_estimate=pl.CostEstimate(
            flops=2 * P * 128 * 1024, transcendentals=0,
            bytes_accessed=4 * (P * 128 + 3 * B * 1024) + 2 * 128 * 1024),
    )(bn2, y2, w3)
    bn3 = _bn_scalars(s3, q3, P * 1024)
    pooled = mx.reshape(B, 1024)

    # ---- FC head (tiny: B x 1024), single fused call ----
    out = pl.pallas_call(
        _make_head_kernel(B),
        in_specs=[smem_spec] + [vmem_spec] * 7,
        out_specs=vmem_spec,
        out_shape=jax.ShapeDtypeStruct((B, DD), jnp.float32),
        compiler_params=pltpu.CompilerParams(vmem_limit_bytes=VMEM_LIMIT),
        cost_estimate=pl.CostEstimate(
            flops=2 * B * (1024 * 512 + 512 * 256 + 256 * DD),
            transcendentals=0,
            bytes_accessed=4 * B * (1024 + DD) + 2 * (1024 * 512 + 512 * 256) + 4 * 256 * DD),
    )(bn3, pooled, wf1, params["bf1"], wf2, params["bf2"], wf3, bf3_eff)

    return out.reshape(B, 1, D, D)


def ref_forward(x_nchw, params, sym_size, output_size):
    """Pure-JAX reference of the same forward math (original op order, bf16 operands)."""
    B = x_nchw.shape[0]
    N, D = sym_size, output_size
    x = x_nchw.reshape(B * N, D).astype(jnp.float32)
    bf16 = jnp.bfloat16

    def bn_global(y):                         # BatchNorm2d(1), training mode
        m = jnp.mean(y)
        v = jnp.maximum(jnp.mean(y * y) - m * m, 0.0)
        return (y - m) * jax.lax.rsqrt(v + BN_EPS)

    def bn_feat(y):                           # BatchNorm1d, training mode
        m = jnp.mean(y, axis=0, keepdims=True)
        v = jnp.maximum(jnp.mean(y * y, axis=0, keepdims=True) - m * m, 0.0)
        return (y - m) * jax.lax.rsqrt(v + BN_EPS)

    h = jnp.maximum(bn_global(jnp.dot(x, params["w1"],
                                      preferred_element_type=jnp.float32)), 0.0)
    h = jnp.maximum(bn_global(jnp.dot(h.astype(bf16), params["w2"].astype(bf16),
                                      preferred_element_type=jnp.float32)), 0.0)
    h = jnp.maximum(bn_global(jnp.dot(h.astype(bf16), params["w3"].astype(bf16),
                                      preferred_element_type=jnp.float32)), 0.0)
    g = jnp.max(h.reshape(B, N, 1024), axis=1)                 # symmetric max pool
    f = jnp.maximum(bn_feat(jnp.dot(g.astype(bf16), params["wf1"].astype(bf16),
                                    preferred_element_type=jnp.float32) + params["bf1"]), 0.0)
    f = jnp.maximum(bn_feat(jnp.dot(f.astype(bf16), params["wf2"].astype(bf16),
                                    preferred_element_type=jnp.float32) + params["bf2"]), 0.0)
    out = jnp.dot(f, params["wf3"], preferred_element_type=jnp.float32) + params["bf3"]
    out = out + jnp.eye(D, dtype=jnp.float32).reshape(1, D * D)
    return out.reshape(B, 1, D, D)


def init_params(key, output_size):
    D = output_size
    ks = jax.random.split(key, 8)

    def w(k, shape, scale):
        return jax.random.normal(k, shape, jnp.float32) * scale

    return {
        # shared-MLP conv weights, pre-transposed to (Cin, Cout)
        "w1": w(ks[0], (D, 64), 0.10),
        "w2": w(ks[1], (64, 128), 0.05),
        "w3": w(ks[2], (128, 1024), 0.05),
        # linear weights pre-transposed to (in, out); biases as (1, out)
        "wf1": w(ks[3], (1024, 512), 0.02),
        "bf1": w(ks[4], (1, 512), 0.02),
        "wf2": w(ks[5], (512, 256), 0.02),
        "bf2": w(ks[6], (1, 256), 0.02),
        # fc3 weight & bias are explicitly zero-filled in the torch __init__
        "wf3": jnp.zeros((256, D * D), jnp.float32),
        "bf3": jnp.zeros((1, D * D), jnp.float32),
    }


if __name__ == "__main__":
    B, sym_size, output_size = 2, 8, 4

    key = jax.random.PRNGKey(0)
    kx, kp, kw, kb = jax.random.split(key, 4)
    x = jax.random.normal(kx, (B, 1, sym_size, output_size), jnp.float32)
    params = init_params(kp, output_size)

    fwd = jax.jit(functools.partial(t_net_forward,
                                    sym_size=sym_size, output_size=output_size))

    out = jax.block_until_ready(fwd(x, params))
    assert out.shape == (B, 1, output_size, output_size)
    # fc3 is zero-initialised in the torch module, so the result must be exactly
    # the per-batch identity matrix.
    expected = np.broadcast_to(np.eye(output_size, dtype=np.float32),
                               (B, 1, output_size, output_size))
    assert np.allclose(np.asarray(out), expected, atol=1e-5)

    # Stronger end-to-end check with a non-zero fc3 against the pure-JAX reference
    # (exercises BN stats, streaming max-pool and tiling, which the identity check
    # cannot see because fc3 is zero in the module).
    params2 = dict(params)
    params2["wf3"] = jax.random.normal(kw, (256, output_size * output_size),
                                       jnp.float32) * 0.05
    params2["bf3"] = jax.random.normal(kb, (1, output_size * output_size),
                                       jnp.float32) * 0.05
    out2 = jax.block_until_ready(fwd(x, params2))
    ref2 = jax.block_until_ready(jax.jit(functools.partial(
        ref_forward, sym_size=sym_size, output_size=output_size))(x, params2))
    assert np.allclose(np.asarray(out2), np.asarray(ref2), atol=2e-2, rtol=2e-2)

    print("KERNEL_OK")
</pallas_src>

<mosaic_0001>
module attributes {stable_mosaic.version = 11 : i64} {
  func.func @kernel(%arg0: i32, %arg1: i32, %arg2: memref<1x8x8xf32, #tpu.memory_space<vmem>>, %arg3: memref<8x64xf32, #tpu.memory_space<vmem>>, %arg4: memref<1x8x64xf32, #tpu.memory_space<vmem>>, %arg5: memref<1x1x64xf32, #tpu.memory_space<vmem>>, %arg6: memref<1x1x64xf32, #tpu.memory_space<vmem>>) attributes {dimension_semantics = [#tpu.dimension_semantics<parallel>, #tpu.dimension_semantics<arbitrary>], iteration_bounds = array<i64: 2, 1>, scalar_prefetch = 0 : i64, scratch_operands = 0 : i64, tpu.core_type = #tpu.core_type<tc>, window_params = [{transform_indices = @transform_0, window_bounds = array<i64: 1, 8, 8>}, {pipeline_mode = #tpu.pipeline_mode<synchronous>, transform_indices = @transform_1, window_bounds = array<i64: 8, 64>}, {transform_indices = @transform_2, window_bounds = array<i64: 1, 8, 64>}, {transform_indices = @transform_3, window_bounds = array<i64: 1, 1, 64>}, {transform_indices = @transform_4, window_bounds = array<i64: 1, 1, 64>}]} {
    %c0 = arith.constant 0 : index
    %c0_0 = arith.constant 0 : index
    %c0_1 = arith.constant 0 : index
    %0 = vector.load %arg2[%c0, %c0_0, %c0_1] : memref<1x8x8xf32, #tpu.memory_space<vmem>>, vector<1x8x8xf32>
    %1 = vector.shape_cast %0 : vector<1x8x8xf32> to vector<8x8xf32>
    %c0_2 = arith.constant 0 : index
    %c0_3 = arith.constant 0 : index
    %2 = vector.load %arg3[%c0_2, %c0_3] : memref<8x64xf32, #tpu.memory_space<vmem>>, vector<8x64xf32>
    %cst = arith.constant dense<0.000000e+00> : vector<8x64xf32>
    %3 = tpu.matmul %1, %2, %cst {dimension_numbers = #tpu.dot_dimension_numbers<[1], [0], [0], [1], [0, 0, 1, 1], [], []>} : vector<8x8xf32>, vector<8x64xf32>, vector<8x64xf32> -> vector<8x64xf32>
    %c0_4 = arith.constant 0 : index
    %c0_5 = arith.constant 0 : index
    %c0_6 = arith.constant 0 : index
    %4 = vector.load %arg4[%c0_4, %c0_5, %c0_6] : memref<1x8x64xf32, #tpu.memory_space<vmem>>, vector<1x8x64xf32>
    %5 = vector.shape_cast %4 : vector<1x8x64xf32> to vector<8x64xf32>
    %6 = vector.shape_cast %3 : vector<8x64xf32> to vector<1x8x64xf32>
    tpu.vector_store %arg4[%c0_4, %c0_5, %c0_6], %6 {strides = array<i32>} : memref<1x8x64xf32, #tpu.memory_space<vmem>>, vector<1x8x64xf32>,
    %c0_i32 = arith.constant 0 : i32
    %7 = arith.cmpi eq, %arg1, %c0_i32 : i32
    %8 = arith.extui %7 : i1 to i32
    %c0_i32_7 = arith.constant 0 : i32
    %9 = arith.cmpi ne, %8, %c0_i32_7 : i32
    scf.if %9 {
      %cst_22 = arith.constant 0.000000e+00 : f32
      %27 = vector.broadcast %cst_22 : f32 to vector<1x64xf32>
      %c0_23 = arith.constant 0 : index
      %c0_24 = arith.constant 0 : index
      %c0_25 = arith.constant 0 : index
      %28 = vector.load %arg5[%c0_23, %c0_24, %c0_25] : memref<1x1x64xf32, #tpu.memory_space<vmem>>, vector<1x1x64xf32>
      %29 = vector.shape_cast %28 : vector<1x1x64xf32> to vector<1x64xf32>
      %30 = vector.shape_cast %27 : vector<1x64xf32> to vector<1x1x64xf32>
      tpu.vector_store %arg5[%c0_23, %c0_24, %c0_25], %30 {strides = array<i32>} : memref<1x1x64xf32, #tpu.memory_space<vmem>>, vector<1x1x64xf32>,
      %cst_26 = arith.constant 0.000000e+00 : f32
      %31 = vector.broadcast %cst_26 : f32 to vector<1x64xf32>
      %c0_27 = arith.constant 0 : index
      %c0_28 = arith.constant 0 : index
      %c0_29 = arith.constant 0 : index
      %32 = vector.load %arg6[%c0_27, %c0_28, %c0_29] : memref<1x1x64xf32, #tpu.memory_space<vmem>>, vector<1x1x64xf32>
      %33 = vector.shape_cast %32 : vector<1x1x64xf32> to vector<1x64xf32>
      %34 = vector.shape_cast %31 : vector<1x64xf32> to vector<1x1x64xf32>
      tpu.vector_store %arg6[%c0_27, %c0_28, %c0_29], %34 {strides = array<i32>} : memref<1x1x64xf32, #tpu.memory_space<vmem>>, vector<1x1x64xf32>,
    } else {
    }
    %c0_8 = arith.constant 0 : index
    %c0_9 = arith.constant 0 : index
    %c0_10 = arith.constant 0 : index
    %10 = vector.load %arg5[%c0_8, %c0_9, %c0_10] : memref<1x1x64xf32, #tpu.memory_space<vmem>>, vector<1x1x64xf32>
    %11 = vector.shape_cast %10 : vector<1x1x64xf32> to vector<1x64xf32>
    %cst_11 = arith.constant dense<0.000000e+00> : vector<64xf32>
    %12 = vector.multi_reduction <add>, %3, %cst_11 [0] : vector<8x64xf32> to vector<64xf32>
    %13 = vector.shape_cast %12 : vector<64xf32> to vector<1x64xf32>
    %14 = arith.addf %11, %13 : vector<1x64xf32>
    %c0_12 = arith.constant 0 : index
    %c0_13 = arith.constant 0 : index
    %c0_14 = arith.constant 0 : index
    %15 = vector.load %arg5[%c0_12, %c0_13, %c0_14] : memref<1x1x64xf32, #tpu.memory_space<vmem>>, vector<1x1x64xf32>
    %16 = vector.shape_cast %15 : vector<1x1x64xf32> to vector<1x64xf32>
    %17 = vector.shape_cast %14 : vector<1x64xf32> to vector<1x1x64xf32>
    tpu.vector_store %arg5[%c0_12, %c0_13, %c0_14], %17 {strides = array<i32>} : memref<1x1x64xf32, #tpu.memory_space<vmem>>, vector<1x1x64xf32>,
    %c0_15 = arith.constant 0 : index
    %c0_16 = arith.constant 0 : index
    %c0_17 = arith.constant 0 : index
    %18 = vector.load %arg6[%c0_15, %c0_16, %c0_17] : memref<1x1x64xf32, #tpu.memory_space<vmem>>, vector<1x1x64xf32>
    %19 = vector.shape_cast %18 : vector<1x1x64xf32> to vector<1x64xf32>
    %20 = arith.mulf %3, %3 : vector<8x64xf32>
    %cst_18 = arith.constant dense<0.000000e+00> : vector<64xf32>
    %21 = vector.multi_reduction <add>, %20, %cst_18 [0] : vector<8x64xf32> to vector<64xf32>
    %22 = vector.shape_cast %21 : vector<64xf32> to vector<1x64xf32>
    %23 = arith.addf %19, %22 : vector<1x64xf32>
    %c0_19 = arith.constant 0 : index
    %c0_20 = arith.constant 0 : index
    %c0_21 = arith.constant 0 : index
    %24 = vector.load %arg6[%c0_19, %c0_20, %c0_21] : memref<1x1x64xf32, #tpu.memory_space<vmem>>, vector<1x1x64xf32>
    %25 = vector.shape_cast %24 : vector<1x1x64xf32> to vector<1x64xf32>
    %26 = vector.shape_cast %23 : vector<1x64xf32> to vector<1x1x64xf32>
    tpu.vector_store %arg6[%c0_19, %c0_20, %c0_21], %26 {strides = array<i32>} : memref<1x1x64xf32, #tpu.memory_space<vmem>>, vector<1x1x64xf32>,
    return
  }
  func.func @transform_0(%arg0: i32, %arg1: i32) -> (i32, i32, i32) {
    %c0_i32 = arith.constant 0 : i32
    %c0_i32_0 = arith.constant 0 : i32
    return %arg0, %arg1, %c0_i32 : i32, i32, i32
  }
  func.func @transform_1(%arg0: i32, %arg1: i32) -> (i32, i32) {
    %c0_i32 = arith.constant 0 : i32
    %c0_i32_0 = arith.constant 0 : i32
    %c0_i32_1 = arith.constant 0 : i32
    return %c0_i32, %c0_i32_0 : i32, i32
  }
  func.func @transform_2(%arg0: i32, %arg1: i32) -> (i32, i32, i32) {
    %c0_i32 = arith.constant 0 : i32
    %c0_i32_0 = arith.constant 0 : i32
    return %arg0, %arg1, %c0_i32 : i32, i32, i32
  }
  func.func @transform_3(%arg0: i32, %arg1: i32) -> (i32, i32, i32) {
    %c0_i32 = arith.constant 0 : i32
    %c0_i32_0 = arith.constant 0 : i32
    %c0_i32_1 = arith.constant 0 : i32
    return %arg0, %c0_i32, %c0_i32_0 : i32, i32, i32
  }
  func.func @transform_4(%arg0: i32, %arg1: i32) -> (i32, i32, i32) {
    %c0_i32 = arith.constant 0 : i32
    %c0_i32_0 = arith.constant 0 : i32
    %c0_i32_1 = arith.constant 0 : i32
    return %arg0, %c0_i32, %c0_i32_0 : i32, i32, i32
  }
}

module attributes {stable_mosaic.version = 11 : i64} {
  func.func @kernel(%arg0: i32, %arg1: i32, %arg2: memref<2xf32, #tpu.memory_space<smem>>, %arg3: memref<1x8x64xf32, #tpu.memory_space<vmem>>, %arg4: memref<64x128xbf16, #tpu.memory_space<vmem>>, %arg5: memref<1x8x128xf32, #tpu.memory_space<vmem>>, %arg6: memref<1x1x128xf32, #tpu.memory_space<vmem>>, %arg7: memref<1x1x128xf32, #tpu.memory_space<vmem>>) attributes {dimension_semantics = [#tpu.dimension_semantics<parallel>, #tpu.dimension_semantics<arbitrary>], iteration_bounds = array<i64: 2, 1>, scalar_prefetch = 0 : i64, scratch_operands = 0 : i64, tpu.core_type = #tpu.core_type<tc>, window_params = [{transform_indices = @transform_0, window_bounds = array<i64: 2>}, {transform_indices = @transform_1, window_bounds = array<i64: 1, 8, 64>}, {pipeline_mode = #tpu.pipeline_mode<synchronous>, transform_indices = @transform_2, window_bounds = array<i64: 64, 128>}, {transform_indices = @transform_3, window_bounds = array<i64: 1, 8, 128>}, {transform_indices = @transform_4, window_bounds = array<i64: 1, 1, 128>}, {transform_indices = @transform_5, window_bounds = array<i64: 1, 1, 128>}]} {
    %c0 = arith.constant 0 : index
    %0 = memref.load %arg2[%c0] : memref<2xf32, #tpu.memory_space<smem>>
    %c1 = arith.constant 1 : index
    %1 = memref.load %arg2[%c1] : memref<2xf32, #tpu.memory_space<smem>>
    %c0_0 = arith.constant 0 : index
    %c0_1 = arith.constant 0 : index
    %c0_2 = arith.constant 0 : index
    %2 = vector.load %arg3[%c0_0, %c0_1, %c0_2] : memref<1x8x64xf32, #tpu.memory_space<vmem>>, vector<1x8x64xf32>
    %3 = vector.shape_cast %2 : vector<1x8x64xf32> to vector<8x64xf32>
    %4 = vector.broadcast %0 : f32 to vector<8x64xf32>
    %5 = arith.subf %3, %4 : vector<8x64xf32>
    %6 = vector.broadcast %1 : f32 to vector<8x64xf32>
    %7 = arith.mulf %5, %6 : vector<8x64xf32>
    %cst = arith.constant 0.000000e+00 : f32
    %8 = vector.broadcast %cst : f32 to vector<8x64xf32>
    %9 = arith.maximumf %7, %8 : vector<8x64xf32>
    %10 = arith.truncf %9 : vector<8x64xf32> to vector<8x64xbf16>
    %c0_3 = arith.constant 0 : index
    %c0_4 = arith.constant 0 : index
    %11 = vector.load %arg4[%c0_3, %c0_4] : memref<64x128xbf16, #tpu.memory_space<vmem>>, vector<64x128xbf16>
    %cst_5 = arith.constant dense<0.000000e+00> : vector<8x128xf32>
    %12 = tpu.matmul %10, %11, %cst_5 {dimension_numbers = #tpu.dot_dimension_numbers<[1], [0], [0], [1], [0, 0, 1, 1], [], []>} : vector<8x64xbf16>, vector<64x128xbf16>, vector<8x128xf32> -> vector<8x128xf32>
    %c0_6 = arith.constant 0 : index
    %c0_7 = arith.constant 0 : index
    %c0_8 = arith.constant 0 : index
    %13 = vector.load %arg5[%c0_6, %c0_7, %c0_8] : memref<1x8x128xf32, #tpu.memory_space<vmem>>, vector<1x8x128xf32>
    %14 = vector.shape_cast %13 : vector<1x8x128xf32> to vector<8x128xf32>
    %15 = vector.shape_cast %12 : vector<8x128xf32> to vector<1x8x128xf32>
    tpu.vector_store %arg5[%c0_6, %c0_7, %c0_8], %15 {strides = array<i32>} : memref<1x8x128xf32, #tpu.memory_space<vmem>>, vector<1x8x128xf32>,
    %c0_i32 = arith.constant 0 : i32
    %16 = arith.cmpi eq, %arg1, %c0_i32 : i32
    %17 = arith.extui %16 : i1 to i32
    %c0_i32_9 = arith.constant 0 : i32
    %18 = arith.cmpi ne, %17, %c0_i32_9 : i32
    scf.if %18 {
      %cst_24 = arith.constant 0.000000e+00 : f32
      %36 = vector.broadcast %cst_24 : f32 to vector<1x128xf32>
      %c0_25 = arith.constant 0 : index
      %c0_26 = arith.constant 0 : index
      %c0_27 = arith.constant 0 : index
      %37 = vector.load %arg6[%c0_25, %c0_26, %c0_27] : memref<1x1x128xf32, #tpu.memory_space<vmem>>, vector<1x1x128xf32>
      %38 = vector.shape_cast %37 : vector<1x1x128xf32> to vector<1x128xf32>
      %39 = vector.shape_cast %36 : vector<1x128xf32> to vector<1x1x128xf32>
      tpu.vector_store %arg6[%c0_25, %c0_26, %c0_27], %39 {strides = array<i32>} : memref<1x1x128xf32, #tpu.memory_space<vmem>>, vector<1x1x128xf32>,
      %cst_28 = arith.constant 0.000000e+00 : f32
      %40 = vector.broadcast %cst_28 : f32 to vector<1x128xf32>
      %c0_29 = arith.constant 0 : index
      %c0_30 = arith.constant 0 : index
      %c0_31 = arith.constant 0 : index
      %41 = vector.load %arg7[%c0_29, %c0_30, %c0_31] : memref<1x1x128xf32, #tpu.memory_space<vmem>>, vector<1x1x128xf32>
      %42 = vector.shape_cast %41 : vector<1x1x128xf32> to vector<1x128xf32>
      %43 = vector.shape_cast %40 : vector<1x128xf32> to vector<1x1x128xf32>
      tpu.vector_store %arg7[%c0_29, %c0_30, %c0_31], %43 {strides = array<i32>} : memref<1x1x128xf32, #tpu.memory_space<vmem>>, vector<1x1x128xf32>,
    } else {
    }
    %c0_10 = arith.constant 0 : index
    %c0_11 = arith.constant 0 : index
    %c0_12 = arith.constant 0 : index
    %19 = vector.load %arg6[%c0_10, %c0_11, %c0_12] : memref<1x1x128xf32, #tpu.memory_space<vmem>>, vector<1x1x128xf32>
    %20 = vector.shape_cast %19 : vector<1x1x128xf32> to vector<1x128xf32>
    %cst_13 = arith.constant dense<0.000000e+00> : vector<128xf32>
    %21 = vector.multi_reduction <add>, %12, %cst_13 [0] : vector<8x128xf32> to vector<128xf32>
    %22 = vector.shape_cast %21 : vector<128xf32> to vector<1x128xf32>
    %23 = arith.addf %20, %22 : vector<1x128xf32>
    %c0_14 = arith.constant 0 : index
    %c0_15 = arith.constant 0 : index
    %c0_16 = arith.constant 0 : index
    %24 = vector.load %arg6[%c0_14, %c0_15, %c0_16] : memref<1x1x128xf32, #tpu.memory_space<vmem>>, vector<1x1x128xf32>
    %25 = vector.shape_cast %24 : vector<1x1x128xf32> to vector<1x128xf32>
    %26 = vector.shape_cast %23 : vector<1x128xf32> to vector<1x1x128xf32>
    tpu.vector_store %arg6[%c0_14, %c0_15, %c0_16], %26 {strides = array<i32>} : memref<1x1x128xf32, #tpu.memory_space<vmem>>, vector<1x1x128xf32>,
    %c0_17 = arith.constant 0 : index
    %c0_18 = arith.constant 0 : index
    %c0_19 = arith.constant 0 : index
    %27 = vector.load %arg7[%c0_17, %c0_18, %c0_19] : memref<1x1x128xf32, #tpu.memory_space<vmem>>, vector<1x1x128xf32>
    %28 = vector.shape_cast %27 : vector<1x1x128xf32> to vector<1x128xf32>
    %29 = arith.mulf %12, %12 : vector<8x128xf32>
    %cst_20 = arith.constant dense<0.000000e+00> : vector<128xf32>
    %30 = vector.multi_reduction <add>, %29, %cst_20 [0] : vector<8x128xf32> to vector<128xf32>
    %31 = vector.shape_cast %30 : vector<128xf32> to vector<1x128xf32>
    %32 = arith.addf %28, %31 : vector<1x128xf32>
    %c0_21 = arith.constant 0 : index
    %c0_22 = arith.constant 0 : index
    %c0_23 = arith.constant 0 : index
    %33 = vector.load %arg7[%c0_21, %c0_22, %c0_23] : memref<1x1x128xf32, #tpu.memory_space<vmem>>, vector<1x1x128xf32>
    %34 = vector.shape_cast %33 : vector<1x1x128xf32> to vector<1x128xf32>
    %35 = vector.shape_cast %32 : vector<1x128xf32> to vector<1x1x128xf32>
    tpu.vector_store %arg7[%c0_21, %c0_22, %c0_23], %35 {strides = array<i32>} : memref<1x1x128xf32, #tpu.memory_space<vmem>>, vector<1x1x128xf32>,
    return
  }
  func.func @transform_0(%arg0: i32, %arg1: i32) -> i32 {
    %c0_i32 = arith.constant 0 : i32
    %c0_i32_0 = arith.constant 0 : i32
    return %c0_i32 : i32
  }
  func.func @transform_1(%arg0: i32, %arg1: i32) -> (i32, i32, i32) {
    %c0_i32 = arith.constant 0 : i32
    %c0_i32_0 = arith.constant 0 : i32
    return %arg0, %arg1, %c0_i32 : i32, i32, i32
  }
  func.func @transform_2(%arg0: i32, %arg1: i32) -> (i32, i32) {
    %c0_i32 = arith.constant 0 : i32
    %c0_i32_0 = arith.constant 0 : i32
    %c0_i32_1 = arith.constant 0 : i32
    return %c0_i32, %c0_i32_0 : i32, i32
  }
  func.func @transform_3(%arg0: i32, %arg1: i32) -> (i32, i32, i32) {
    %c0_i32 = arith.constant 0 : i32
    %c0_i32_0 = arith.constant 0 : i32
    return %arg0, %arg1, %c0_i32 : i32, i32, i32
  }
  func.func @transform_4(%arg0: i32, %arg1: i32) -> (i32, i32, i32) {
    %c0_i32 = arith.constant 0 : i32
    %c0_i32_0 = arith.constant 0 : i32
    %c0_i32_1 = arith.constant 0 : i32
    return %arg0, %c0_i32, %c0_i32_0 : i32, i32, i32
  }
  func.func @transform_5(%arg0: i32, %arg1: i32) -> (i32, i32, i32) {
    %c0_i32 = arith.constant 0 : i32
    %c0_i32_0 = arith.constant 0 : i32
    %c0_i32_1 = arith.constant 0 : i32
    return %arg0, %c0_i32, %c0_i32_0 : i32, i32, i32
  }
}

module attributes {stable_mosaic.version = 11 : i64} {
  func.func @kernel(%arg0: i32, %arg1: i32, %arg2: memref<2xf32, #tpu.memory_space<smem>>, %arg3: memref<1x8x128xf32, #tpu.memory_space<vmem>>, %arg4: memref<128x1024xbf16, #tpu.memory_space<vmem>>, %arg5: memref<1x1x1024xf32, #tpu.memory_space<vmem>>, %arg6: memref<1x1x1024xf32, #tpu.memory_space<vmem>>, %arg7: memref<1x1x1024xf32, #tpu.memory_space<vmem>>) attributes {dimension_semantics = [#tpu.dimension_semantics<parallel>, #tpu.dimension_semantics<arbitrary>], iteration_bounds = array<i64: 2, 1>, scalar_prefetch = 0 : i64, scratch_operands = 0 : i64, tpu.core_type = #tpu.core_type<tc>, window_params = [{transform_indices = @transform_0, window_bounds = array<i64: 2>}, {transform_indices = @transform_1, window_bounds = array<i64: 1, 8, 128>}, {pipeline_mode = #tpu.pipeline_mode<synchronous>, transform_indices = @transform_2, window_bounds = array<i64: 128, 1024>}, {transform_indices = @transform_3, window_bounds = array<i64: 1, 1, 1024>}, {transform_indices = @transform_4, window_bounds = array<i64: 1, 1, 1024>}, {transform_indices = @transform_5, window_bounds = array<i64: 1, 1, 1024>}]} {
    %c0 = arith.constant 0 : index
    %0 = memref.load %arg2[%c0] : memref<2xf32, #tpu.memory_space<smem>>
    %c1 = arith.constant 1 : index
    %1 = memref.load %arg2[%c1] : memref<2xf32, #tpu.memory_space<smem>>
    %c0_0 = arith.constant 0 : index
    %c0_1 = arith.constant 0 : index
    %c0_2 = arith.constant 0 : index
    %2 = vector.load %arg3[%c0_0, %c0_1, %c0_2] : memref<1x8x128xf32, #tpu.memory_space<vmem>>, vector<1x8x128xf32>
    %3 = vector.shape_cast %2 : vector<1x8x128xf32> to vector<8x128xf32>
    %4 = vector.broadcast %0 : f32 to vector<8x128xf32>
    %5 = arith.subf %3, %4 : vector<8x128xf32>
    %6 = vector.broadcast %1 : f32 to vector<8x128xf32>
    %7 = arith.mulf %5, %6 : vector<8x128xf32>
    %cst = arith.constant 0.000000e+00 : f32
    %8 = vector.broadcast %cst : f32 to vector<8x128xf32>
    %9 = arith.maximumf %7, %8 : vector<8x128xf32>
    %10 = arith.truncf %9 : vector<8x128xf32> to vector<8x128xbf16>
    %c0_3 = arith.constant 0 : index
    %c0_4 = arith.constant 0 : index
    %11 = vector.load %arg4[%c0_3, %c0_4] : memref<128x1024xbf16, #tpu.memory_space<vmem>>, vector<128x1024xbf16>
    %cst_5 = arith.constant dense<0.000000e+00> : vector<8x1024xf32>
    %12 = tpu.matmul %10, %11, %cst_5 {dimension_numbers = #tpu.dot_dimension_numbers<[1], [0], [0], [1], [0, 0, 1, 1], [], []>} : vector<8x128xbf16>, vector<128x1024xbf16>, vector<8x1024xf32> -> vector<8x1024xf32>
    %c0_i32 = arith.constant 0 : i32
    %13 = arith.cmpi eq, %arg1, %c0_i32 : i32
    %14 = arith.extui %13 : i1 to i32
    %c0_i32_6 = arith.constant 0 : i32
    %15 = arith.cmpi ne, %14, %c0_i32_6 : i32
    scf.if %15 {
      %cst_28 = arith.constant 0xFF800000 : f32
      %41 = vector.broadcast %cst_28 : f32 to vector<1x1024xf32>
      %c0_29 = arith.constant 0 : index
      %c0_30 = arith.constant 0 : index
      %c0_31 = arith.constant 0 : index
      %42 = vector.load %arg5[%c0_29, %c0_30, %c0_31] : memref<1x1x1024xf32, #tpu.memory_space<vmem>>, vector<1x1x1024xf32>
      %43 = vector.shape_cast %42 : vector<1x1x1024xf32> to vector<1x1024xf32>
      %44 = vector.shape_cast %41 : vector<1x1024xf32> to vector<1x1x1024xf32>
      tpu.vector_store %arg5[%c0_29, %c0_30, %c0_31], %44 {strides = array<i32>} : memref<1x1x1024xf32, #tpu.memory_space<vmem>>, vector<1x1x1024xf32>,
      %cst_32 = arith.constant 0.000000e+00 : f32
      %45 = vector.broadcast %cst_32 : f32 to vector<1x1024xf32>
      %c0_33 = arith.constant 0 : index
      %c0_34 = arith.constant 0 : index
      %c0_35 = arith.constant 0 : index
      %46 = vector.load %arg6[%c0_33, %c0_34, %c0_35] : memref<1x1x1024xf32, #tpu.memory_space<vmem>>, vector<1x1x1024xf32>
      %47 = vector.shape_cast %46 : vector<1x1x1024xf32> to vector<1x1024xf32>
      %48 = vector.shape_cast %45 : vector<1x1024xf32> to vector<1x1x1024xf32>
      tpu.vector_store %arg6[%c0_33, %c0_34, %c0_35], %48 {strides = array<i32>} : memref<1x1x1024xf32, #tpu.memory_space<vmem>>, vector<1x1x1024xf32>,
      %cst_36 = arith.constant 0.000000e+00 : f32
      %49 = vector.broadcast %cst_36 : f32 to vector<1x1024xf32>
      %c0_37 = arith.constant 0 : index
      %c0_38 = arith.constant 0 : index
      %c0_39 = arith.constant 0 : index
      %50 = vector.load %arg7[%c0_37, %c0_38, %c0_39] : memref<1x1x1024xf32, #tpu.memory_space<vmem>>, vector<1x1x1024xf32>
      %51 = vector.shape_cast %50 : vector<1x1x1024xf32> to vector<1x1024xf32>
      %52 = vector.shape_cast %49 : vector<1x1024xf32> to vector<1x1x1024xf32>
      tpu.vector_store %arg7[%c0_37, %c0_38, %c0_39], %52 {strides = array<i32>} : memref<1x1x1024xf32, #tpu.memory_space<vmem>>, vector<1x1x1024xf32>,
    } else {
    }
    %c0_7 = arith.constant 0 : index
    %c0_8 = arith.constant 0 : index
    %c0_9 = arith.constant 0 : index
    %16 = vector.load %arg5[%c0_7, %c0_8, %c0_9] : memref<1x1x1024xf32, #tpu.memory_space<vmem>>, vector<1x1x1024xf32>
    %17 = vector.shape_cast %16 : vector<1x1x1024xf32> to vector<1x1024xf32>
    %cst_10 = arith.constant dense<0xFF800000> : vector<1024xf32>
    %18 = vector.multi_reduction <maximumf>, %12, %cst_10 [0] : vector<8x1024xf32> to vector<1024xf32>
    %19 = vector.shape_cast %18 : vector<1024xf32> to vector<1x1024xf32>
    %20 = arith.maximumf %17, %19 : vector<1x1024xf32>
    %c0_11 = arith.constant 0 : index
    %c0_12 = arith.constant 0 : index
    %c0_13 = arith.constant 0 : index
    %21 = vector.load %arg5[%c0_11, %c0_12, %c0_13] : memref<1x1x1024xf32, #tpu.memory_space<vmem>>, vector<1x1x1024xf32>
    %22 = vector.shape_cast %21 : vector<1x1x1024xf32> to vector<1x1024xf32>
    %23 = vector.shape_cast %20 : vector<1x1024xf32> to vector<1x1x1024xf32>
    tpu.vector_store %arg5[%c0_11, %c0_12, %c0_13], %23 {strides = array<i32>} : memref<1x1x1024xf32, #tpu.memory_space<vmem>>, vector<1x1x1024xf32>,
    %c0_14 = arith.constant 0 : index
    %c0_15 = arith.constant 0 : index
    %c0_16 = arith.constant 0 : index
    %24 = vector.load %arg6[%c0_14, %c0_15, %c0_16] : memref<1x1x1024xf32, #tpu.memory_space<vmem>>, vector<1x1x1024xf32>
    %25 = vector.shape_cast %24 : vector<1x1x1024xf32> to vector<1x1024xf32>
    %cst_17 = arith.constant dense<0.000000e+00> : vector<1024xf32>
    %26 = vector.multi_reduction <add>, %12, %cst_17 [0] : vector<8x1024xf32> to vector<1024xf32>
    %27 = vector.shape_cast %26 : vector<1024xf32> to vector<1x1024xf32>
    %28 = arith.addf %25, %27 : vector<1x1024xf32>
    %c0_18 = arith.constant 0 : index
    %c0_19 = arith.constant 0 : index
    %c0_20 = arith.constant 0 : index
    %29 = vector.load %arg6[%c0_18, %c0_19, %c0_20] : memref<1x1x1024xf32, #tpu.memory_space<vmem>>, vector<1x1x1024xf32>
    %30 = vector.shape_cast %29 : vector<1x1x1024xf32> to vector<1x1024xf32>
    %31 = vector.shape_cast %28 : vector<1x1024xf32> to vector<1x1x1024xf32>
    tpu.vector_store %arg6[%c0_18, %c0_19, %c0_20], %31 {strides = array<i32>} : memref<1x1x1024xf32, #tpu.memory_space<vmem>>, vector<1x1x1024xf32>,
    %c0_21 = arith.constant 0 : index
    %c0_22 = arith.constant 0 : index
    %c0_23 = arith.constant 0 : index
    %32 = vector.load %arg7[%c0_21, %c0_22, %c0_23] : memref<1x1x1024xf32, #tpu.memory_space<vmem>>, vector<1x1x1024xf32>
    %33 = vector.shape_cast %32 : vector<1x1x1024xf32> to vector<1x1024xf32>
    %34 = arith.mulf %12, %12 : vector<8x1024xf32>
    %cst_24 = arith.constant dense<0.000000e+00> : vector<1024xf32>
    %35 = vector.multi_reduction <add>, %34, %cst_24 [0] : vector<8x1024xf32> to vector<1024xf32>
    %36 = vector.shape_cast %35 : vector<1024xf32> to vector<1x1024xf32>
    %37 = arith.addf %33, %36 : vector<1x1024xf32>
    %c0_25 = arith.constant 0 : index
    %c0_26 = arith.constant 0 : index
    %c0_27 = arith.constant 0 : index
    %38 = vector.load %arg7[%c0_25, %c0_26, %c0_27] : memref<1x1x1024xf32, #tpu.memory_space<vmem>>, vector<1x1x1024xf32>
    %39 = vector.shape_cast %38 : vector<1x1x1024xf32> to vector<1x1024xf32>
    %40 = vector.shape_cast %37 : vector<1x1024xf32> to vector<1x1x1024xf32>
    tpu.vector_store %arg7[%c0_25, %c0_26, %c0_27], %40 {strides = array<i32>} : memref<1x1x1024xf32, #tpu.memory_space<vmem>>, vector<1x1x1024xf32>,
    return
  }
  func.func @transform_0(%arg0: i32, %arg1: i32) -> i32 {
    %c0_i32 = arith.constant 0 : i32
    %c0_i32_0 = arith.constant 0 : i32
    return %c0_i32 : i32
  }
  func.func @transform_1(%arg0: i32, %arg1: i32) -> (i32, i32, i32) {
    %c0_i32 = arith.constant 0 : i32
    %c0_i32_0 = arith.constant 0 : i32
    return %arg0, %arg1, %c0_i32 : i32, i32, i32
  }
  func.func @transform_2(%arg0: i32, %arg1: i32) -> (i32, i32) {
    %c0_i32 = arith.constant 0 : i32
    %c0_i32_0 = arith.constant 0 : i32
    %c0_i32_1 = arith.constant 0 : i32
    return %c0_i32, %c0_i32_0 : i32, i32
  }
  func.func @transform_3(%arg0: i32, %arg1: i32) -> (i32, i32, i32) {
    %c0_i32 = arith.constant 0 : i32
    %c0_i32_0 = arith.constant 0 : i32
    %c0_i32_1 = arith.constant 0 : i32
    return %arg0, %c0_i32, %c0_i32_0 : i32, i32, i32
  }
  func.func @transform_4(%arg0: i32, %arg1: i32) -> (i32, i32, i32) {
    %c0_i32 = arith.constant 0 : i32
    %c0_i32_0 = arith.constant 0 : i32
    %c0_i32_1 = arith.constant 0 : i32
    return %arg0, %c0_i32, %c0_i32_0 : i32, i32, i32
  }
  func.func @transform_5(%arg0: i32, %arg1: i32) -> (i32, i32, i32) {
    %c0_i32 = arith.constant 0 : i32
    %c0_i32_0 = arith.constant 0 : i32
    %c0_i32_1 = arith.constant 0 : i32
    return %arg0, %c0_i32, %c0_i32_0 : i32, i32, i32
  }
}

module attributes {stable_mosaic.version = 11 : i64} {
  func.func @kernel(%arg0: memref<2xf32, #tpu.memory_space<smem>>, %arg1: memref<2x1024xf32, #tpu.memory_space<vmem>>, %arg2: memref<1024x512xbf16, #tpu.memory_space<vmem>>, %arg3: memref<1x512xf32, #tpu.memory_space<vmem>>, %arg4: memref<512x256xbf16, #tpu.memory_space<vmem>>, %arg5: memref<1x256xf32, #tpu.memory_space<vmem>>, %arg6: memref<256x16xf32, #tpu.memory_space<vmem>>, %arg7: memref<1x16xf32, #tpu.memory_space<vmem>>, %arg8: memref<2x16xf32, #tpu.memory_space<vmem>>) attributes {dimension_semantics = [], scalar_prefetch = 0 : i64, scratch_operands = 0 : i64, tpu.core_type = #tpu.core_type<tc>} {
    %c0 = arith.constant 0 : index
    %0 = memref.load %arg0[%c0] : memref<2xf32, #tpu.memory_space<smem>>
    %c1 = arith.constant 1 : index
    %1 = memref.load %arg0[%c1] : memref<2xf32, #tpu.memory_space<smem>>
    %c0_0 = arith.constant 0 : index
    %c0_1 = arith.constant 0 : index
    %2 = vector.load %arg1[%c0_0, %c0_1] : memref<2x1024xf32, #tpu.memory_space<vmem>>, vector<2x1024xf32>
    %3 = vector.broadcast %0 : f32 to vector<2x1024xf32>
    %4 = arith.subf %2, %3 : vector<2x1024xf32>
    %5 = vector.broadcast %1 : f32 to vector<2x1024xf32>
    %6 = arith.mulf %4, %5 : vector<2x1024xf32>
    %cst = arith.constant 0.000000e+00 : f32
    %7 = vector.broadcast %cst : f32 to vector<2x1024xf32>
    %8 = arith.maximumf %6, %7 : vector<2x1024xf32>
    %9 = arith.truncf %8 : vector<2x1024xf32> to vector<2x1024xbf16>
    %c0_2 = arith.constant 0 : index
    %c0_3 = arith.constant 0 : index
    %10 = vector.load %arg2[%c0_2, %c0_3] : memref<1024x512xbf16, #tpu.memory_space<vmem>>, vector<1024x512xbf16>
    %cst_4 = arith.constant dense<0.000000e+00> : vector<2x512xf32>
    %11 = tpu.matmul %9, %10, %cst_4 {dimension_numbers = #tpu.dot_dimension_numbers<[1], [0], [0], [1], [0, 0, 1, 1], [], []>} : vector<2x1024xbf16>, vector<1024x512xbf16>, vector<2x512xf32> -> vector<2x512xf32>
    %c0_5 = arith.constant 0 : index
    %c0_6 = arith.constant 0 : index
    %12 = vector.load %arg3[%c0_5, %c0_6] : memref<1x512xf32, #tpu.memory_space<vmem>>, vector<1x512xf32>
    %13 = vector.broadcast %12 : vector<1x512xf32> to vector<2x512xf32>
    %14 = arith.addf %11, %13 : vector<2x512xf32>
    %cst_7 = arith.constant dense<0.000000e+00> : vector<512xf32>
    %15 = vector.multi_reduction <add>, %14, %cst_7 [0] : vector<2x512xf32> to vector<512xf32>
    %16 = vector.shape_cast %15 : vector<512xf32> to vector<1x512xf32>
    %cst_8 = arith.constant 5.000000e-01 : f32
    %17 = vector.broadcast %cst_8 : f32 to vector<1x512xf32>
    %18 = arith.mulf %16, %17 : vector<1x512xf32>
    %19 = arith.mulf %14, %14 : vector<2x512xf32>
    %cst_9 = arith.constant dense<0.000000e+00> : vector<512xf32>
    %20 = vector.multi_reduction <add>, %19, %cst_9 [0] : vector<2x512xf32> to vector<512xf32>
    %21 = vector.shape_cast %20 : vector<512xf32> to vector<1x512xf32>
    %cst_10 = arith.constant 5.000000e-01 : f32
    %22 = vector.broadcast %cst_10 : f32 to vector<1x512xf32>
    %23 = arith.mulf %21, %22 : vector<1x512xf32>
    %24 = arith.mulf %18, %18 : vector<1x512xf32>
    %25 = arith.subf %23, %24 : vector<1x512xf32>
    %cst_11 = arith.constant 0.000000e+00 : f32
    %26 = vector.broadcast %cst_11 : f32 to vector<1x512xf32>
    %27 = arith.maximumf %25, %26 : vector<1x512xf32>
    %28 = vector.broadcast %18 : vector<1x512xf32> to vector<2x512xf32>
    %29 = arith.subf %14, %28 : vector<2x512xf32>
    %cst_12 = arith.constant 9.99999974E-6 : f32
    %30 = vector.broadcast %cst_12 : f32 to vector<1x512xf32>
    %31 = arith.addf %27, %30 : vector<1x512xf32>
    %32 = math.rsqrt %31 : vector<1x512xf32>
    %33 = vector.broadcast %32 : vector<1x512xf32> to vector<2x512xf32>
    %34 = arith.mulf %29, %33 : vector<2x512xf32>
    %cst_13 = arith.constant 0.000000e+00 : f32
    %35 = vector.broadcast %cst_13 : f32 to vector<2x512xf32>
    %36 = arith.maximumf %34, %35 : vector<2x512xf32>
    %37 = arith.truncf %36 : vector<2x512xf32> to vector<2x512xbf16>
    %c0_14 = arith.constant 0 : index
    %c0_15 = arith.constant 0 : index
    %38 = vector.load %arg4[%c0_14, %c0_15] : memref<512x256xbf16, #tpu.memory_space<vmem>>, vector<512x256xbf16>
    %cst_16 = arith.constant dense<0.000000e+00> : vector<2x256xf32>
    %39 = tpu.matmul %37, %38, %cst_16 {dimension_numbers = #tpu.dot_dimension_numbers<[1], [0], [0], [1], [0, 0, 1, 1], [], []>} : vector<2x512xbf16>, vector<512x256xbf16>, vector<2x256xf32> -> vector<2x256xf32>
    %c0_17 = arith.constant 0 : index
    %c0_18 = arith.constant 0 : index
    %40 = vector.load %arg5[%c0_17, %c0_18] : memref<1x256xf32, #tpu.memory_space<vmem>>, vector<1x256xf32>
    %41 = vector.broadcast %40 : vector<1x256xf32> to vector<2x256xf32>
    %42 = arith.addf %39, %41 : vector<2x256xf32>
    %cst_19 = arith.constant dense<0.000000e+00> : vector<256xf32>
    %43 = vector.multi_reduction <add>, %42, %cst_19 [0] : vector<2x256xf32> to vector<256xf32>
    %44 = vector.shape_cast %43 : vector<256xf32> to vector<1x256xf32>
    %cst_20 = arith.constant 5.000000e-01 : f32
    %45 = vector.broadcast %cst_20 : f32 to vector<1x256xf32>
    %46 = arith.mulf %44, %45 : vector<1x256xf32>
    %47 = arith.mulf %42, %42 : vector<2x256xf32>
    %cst_21 = arith.constant dense<0.000000e+00> : vector<256xf32>
    %48 = vector.multi_reduction <add>, %47, %cst_21 [0] : vector<2x256xf32> to vector<256xf32>
    %49 = vector.shape_cast %48 : vector<256xf32> to vector<1x256xf32>
    %cst_22 = arith.constant 5.000000e-01 : f32
    %50 = vector.broadcast %cst_22 : f32 to vector<1x256xf32>
    %51 = arith.mulf %49, %50 : vector<1x256xf32>
    %52 = arith.mulf %46, %46 : vector<1x256xf32>
    %53 = arith.subf %51, %52 : vector<1x256xf32>
    %cst_23 = arith.constant 0.000000e+00 : f32
    %54 = vector.broadcast %cst_23 : f32 to vector<1x256xf32>
    %55 = arith.maximumf %53, %54 : vector<1x256xf32>
    %56 = vector.broadcast %46 : vector<1x256xf32> to vector<2x256xf32>
    %57 = arith.subf %42, %56 : vector<2x256xf32>
    %cst_24 = arith.constant 9.99999974E-6 : f32
    %58 = vector.broadcast %cst_24 : f32 to vector<1x256xf32>
    %59 = arith.addf %55, %58 : vector<1x256xf32>
    %60 = math.rsqrt %59 : vector<1x256xf32>
    %61 = vector.broadcast %60 : vector<1x256xf32> to vector<2x256xf32>
    %62 = arith.mulf %57, %61 : vector<2x256xf32>
    %cst_25 = arith.constant 0.000000e+00 : f32
    %63 = vector.broadcast %cst_25 : f32 to vector<2x256xf32>
    %64 = arith.maximumf %62, %63 : vector<2x256xf32>
    %c0_26 = arith.constant 0 : index
    %c0_27 = arith.constant 0 : index
    %65 = vector.load %arg6[%c0_26, %c0_27] : memref<256x16xf32, #tpu.memory_space<vmem>>, vector<256x16xf32>
    %cst_28 = arith.constant dense<0.000000e+00> : vector<2x16xf32>
    %66 = tpu.matmul %64, %65, %cst_28 {dimension_numbers = #tpu.dot_dimension_numbers<[1], [0], [0], [1], [0, 0, 1, 1], [], []>} : vector<2x256xf32>, vector<256x16xf32>, vector<2x16xf32> -> vector<2x16xf32>
    %c0_29 = arith.constant 0 : index
    %c0_30 = arith.constant 0 : index
    %67 = vector.load %arg7[%c0_29, %c0_30] : memref<1x16xf32, #tpu.memory_space<vmem>>, vector<1x16xf32>
    %68 = vector.broadcast %67 : vector<1x16xf32> to vector<2x16xf32>
    %69 = arith.addf %66, %68 : vector<2x16xf32>
    %c0_31 = arith.constant 0 : index
    %c0_32 = arith.constant 0 : index
    %70 = vector.load %arg8[%c0_31, %c0_32] : memref<2x16xf32, #tpu.memory_space<vmem>>, vector<2x16xf32>
    tpu.vector_store %arg8[%c0_31, %c0_32], %69 {strides = array<i32>} : memref<2x16xf32, #tpu.memory_space<vmem>>, vector<2x16xf32>,
    return
  }
}

</mosaic_0001>

<bundles_post_ra>
// kernel: t_net_forward.5
= control target key start
LH: loop header
LB: loop body
LE: loop exit
PB: predicated region body
PF: predicated region fallthrough
CT: control target
= control target key end

     0   :  { %11 = vsyncpa [#allocation3], 0  ;;  %s682_s18 = smov 0   ;;  %s684_s19 = smov 0   ;;  %s769_s0 = inlined_call_operand.vmem [shape: f32[2], index: 0, kind: input, shape index: {}]   ;;  %s770_s1 = inlined_call_operand.vmem [shape: f32[2,8,64], index: 1, kind: input, shape index: {}]   ;;  %s771_s2 = inlined_call_operand.vmem [shape: bf16[64,128], index: 2, kind: input, shape index: {}]   ;;  %s772_s3 = inlined_call_operand.vmem [shape: f32[2,8,128], index: 3, kind: output, shape index: {0}]   ;;  %s773_s4 = inlined_call_operand.vmem [shape: f32[2,1,128], index: 4, kind: output, shape index: {1}]   ;;  %s774_s5 = inlined_call_operand.vmem [shape: f32[2,1,128], index: 5, kind: output, shape index: {2}]  }
   0x1   :  { %s686_s20 = smov 0  }
   0x2 LB: > { %s531_s21 = sadd.s32 4294967295, %s647_s20   ;;  %s29_s22 = sadd.s32 1, %s643_s19  ;;  %s647_s20 = sphi %s686_s20, %s17_s20   ;;  %s643_s19 = sphi %s684_s19, %s778_s19   ;;  %s639_s18 = sphi %s682_s18, %s777_s18  }
   0x3   : > { %p31_p0 = scmp.ge.s32.totalorder %s29_s22, 2  ;;  %p533_p1 = scmp.ge.s32.totalorder %s647_s20, 1 }
   0x4   : > { %p184_p2 = scmp.lt.s32.totalorder %s647_s20, 3  ;;  %p707_p4 = scmp.eq.s32.totalorder %s531_s21, 0 }
   0x5   : > { %s780_s22 = smov (%p31_p0, %s29_s22), 0  ;;  %s197_s27 = sshll.u32 %s769_s0, 4  ;;  %s198_s27 = int_to_ptr.vmem [resolvable:$true] %s197_s27 }
   0x6   : > { %p703_p3 = pnand %p533_p1, %p184_p2  ;;  %s606_s28 = scalar_lea.vmem %s198_s27, 16 }
   0x7   : > { %p607_p7 = scmp.ne.s32.totalorder %s198_s27, %s606_s28  ;;  %p614_p11 = scmp.lt.s32.totalorder %s198_s27, %s198_s27 }
   0x8   : > { %p569_p5 = pneg %p703_p3  ;;  %p615_p12 = scmp.lt.s32.totalorder %s606_s28, %s606_s28 }
   0xa   : > { %p570_p6 = pnand %p707_p4, %p569_p5  ;;  %p616_p13 = por %p615_p12, %p614_p11 }
   0xc   : > { %p608_p8 = pneg %p570_p6 }
   0xe   : > { %p609_p9 = pnand %p608_p8, %p607_p7 }
  0x10   : > { %p610_p10 = pneg %p609_p9 }
  0x12   : > { %p617_p0 = pnand %p616_p13, %p610_p10 }
  0x14   : > { %620 = shalt.err (!%p617_p0)
}
  0x15   : > { %s649_s29 = smov [#allocation2]   ;;  %223 = sbr.rel (%p703_p3) target bundleno = 256 (0x100), region = 32 }
  0x16   : > { %572 = dma.vmem_to_smem (!%p570_p6), %s198_s27, 16, %s649_s29, [#allocation3]  }
  0x1a   : > { %634 = dma.done.wait (%p707_p4), [#allocation3], 16  }
  0x1b   : > { %636 = vsyncadd (%p707_p4), [#allocation3], 4294967280 }
  0x1c   : > { %229 = sfence }
  0x1d   : > { %v602_v0 = vld [vmem:[%s771_s2 + $0x18] sm:$0xff]   ;;  %v650_v1 = vmov 0.0   ;;  %v603_v2 = vld [vmem:[%s771_s2 + $0x10] sm:$0xff]   ;;  %vm651_vm0 = vmmov 0   ;;  %p262_p1 = scmp.lt.s32.totalorder %s639_s18, 1  ;;  %s283_s9 = sld [smem:[#allocation2]] }
  0x1e   : > { %553 = vmatprep.subr.bf16.mxu0 %v650_v1  ;;  %561 = vmatprep.mubr.msk.bf16.mxu0 %vm651_vm0, %v650_v1  ;;  %v604_v3 = vld [vmem:[%s771_s2 + $0x8] sm:$0xff]   ;;  %s540_s13 = sld [smem:[#allocation2 + $0x1]]  ;;  %v605_v5 = vld [vmem:[%s771_s2] sm:$0xff]   ;;  %vm324_vm1 = vcmask 523264  }
  0x1f   : > { %554 = vmatpush3.bf16.msra.mxu0 %v602_v0  ;;  %s782_s18 = smov (!%p262_p1, %s639_s18), 1 }
  0x20   : > { %555 = vmatprep.subr.bf16.mxu0 %v650_v1  ;;  %s538_s12 = sshll.u32 %s782_s18, 3  ;;  %s741_s23 = scalar_lea.vmem %s773_s4, %s782_s18 }
  0x21   : > { %s268_s16 = scalar_lea.vmem %s770_s1, %s538_s12  ;;  %s746_s26 = scalar_lea.vmem %s774_s5, %s782_s18  ;;  %373 = vst [vmem:[%s741_s23] sm:$0x1] %v650_v1 }
  0x22   : > { %v285_v4 = vld [vmem:[%s268_s16] sm:$0xff]  ;;  %374 = vst [vmem:[%s746_s26] sm:$0x1] %v650_v1  ;;  %s275_s30 = scalar_lea.vmem %s772_s3, %s538_s12 }
  0x23   : > { %556 = vmatpush3.bf16.msra.mxu0 %v603_v2  ;;  %v286_v6 = vstv %s283_s9 }
  0x24   : > { %557 = vmatprep.subr.bf16.mxu0 %v650_v1  ;;  %v287_v7 = vsub.f32 %v285_v4, %v286_v6  ;;  %v288_v8 = vstv %s540_s13 }
  0x26   : > { %v289_v9 = vmul.f32 %v288_v8, %v287_v7 }
  0x27   : > { %558 = vmatpush3.bf16.msra.mxu0 %v604_v3 }
  0x28   : > { %559 = vmatprep.subr.bf16.mxu0 %v650_v1  ;;  %v290_v10 = vmax.f32 %v289_v9, 0.0  ;;  %v375_v26 = vld [vmem:[%s741_s23] sm:$0x1] }
  0x29   : > { %v384_v29 = vld [vmem:[%s746_s26] sm:$0x1] }
  0x2a   : > { %v291_v11 = vpack.c.bf16 %v290_v10, %v290_v10 }
  0x2b   : > { %560 = vmatpush3.bf16.msra.mxu0 %v605_v5 }
  0x2e   : > { %562 = vmatmul.mubr.msk.bf16.vlgmr.msra.gmra.mxu0 %vm324_vm1, %v291_v11 }
  0xee   : > { %v362_v12 = vpop.f32.mrf.mxu0 }
  0xef   : > { %368 = vst [vmem:[%s275_s30] sm:$0xff] %v362_v12  ;;  %v376_v13 = vrot.slane %v362_v12, 4  ;;  %v385_v14 = vmul.f32 %v362_v12, %v362_v12 }
  0xf0   : > { %v563_v15 = vpop.f32.mrf.mxu0 }
  0xf1   : > { %v377_v16 = vadd.f32 %v376_v13, %v362_v12  ;;  %v386_v17 = vrot.slane %v385_v14, 4 }
  0xf2   : > { %v365_v18 = vpop.f32.mrf.mxu0 }
  0xf3   : > { %v378_v19 = vrot.slane %v377_v16, 2  ;;  %v387_v20 = vadd.f32 %v386_v17, %v385_v14 }
  0xf4   : > { %v564_v21 = vpop.f32.mrf.mxu0 }
  0xf5   : > { %v379_v22 = vadd.f32 %v378_v19, %v377_v16  ;;  %v388_v23 = vrot.slane %v387_v20, 2 }
  0xf7   : > { %v380_v24 = vrot.slane %v379_v22, 1  ;;  %v389_v25 = vadd.f32 %v388_v23, %v387_v20 }
  0xf9   : > { %v381_v27 = vadd.f32 %v380_v24, %v379_v22  ;;  %v390_v28 = vrot.slane %v389_v25, 1 }
  0xfb   : > { %v382_v30 = vadd.f32 %v381_v27, %v375_v26  ;;  %v391_v31 = vadd.f32 %v390_v28, %v389_v25 }
  0xfd   : > { %383 = vst [vmem:[%s741_s23] sm:$0x1] %v382_v30  ;;  %v392_v32 = vadd.f32 %v391_v31, %v384_v29 }
  0xff   : > { %393 = vst [vmem:[%s746_s26] sm:$0x1] %v392_v32 }
 0x100 PF: > { %s17_s20 = sadd.s32 1, %s647_s20   ;;  %s777_s18 = smov %s643_s19 }
 0x101   : > { %p14_p2 = scmp.ge.s32.totalorder %s17_s20, 4   ;;  %s778_s19 = smov %s780_s22 }
 0x103   :  { %16 = sbr.rel (!%p14_p2) target bundleno = 2 (0x2), region = 95 }
 0x108   :  { %443 = vsyncpa [#allocation3], 1 }
 0x109   :  { %445 = vsyncpa [#allocation3 + $0x1], 1 }

// kernel: t_net_forward.4
= control target key start
LH: loop header
LB: loop body
LE: loop exit
PB: predicated region body
PF: predicated region fallthrough
CT: control target
= control target key end

     0   :  { %s566_s15 = smov 0   ;;  %s568_s16 = smov 0   ;;  %s622_s0 = inlined_call_operand.vmem [shape: f32[2,8,8], index: 0, kind: input, shape index: {}]   ;;  %s623_s1 = inlined_call_operand.vmem [shape: f32[8,64], index: 1, kind: input, shape index: {}]   ;;  %s624_s2 = inlined_call_operand.vmem [shape: f32[2,8,64], index: 2, kind: output, shape index: {0}]   ;;  %s625_s3 = inlined_call_operand.vmem [shape: f32[2,1,64], index: 3, kind: output, shape index: {1}]   ;;  %s626_s4 = inlined_call_operand.vmem [shape: f32[2,1,64], index: 4, kind: output, shape index: {2}]  }
   0x1   :  { %s570_s17 = smov 0  }
   0x2 LB: > { %s27_s18 = sadd.s32 1, %s533_s16  ;;  %p476_p0 = scmp.ge.s32.totalorder %s537_s17, 1  ;;  %s537_s17 = sphi %s570_s17, %s15_s17   ;;  %s533_s16 = sphi %s568_s16, %s628_s16   ;;  %s529_s15 = sphi %s566_s15, %s627_s15  }
   0x3   : > { %p29_p1 = scmp.ge.s32.totalorder %s27_s18, 2  ;;  %p185_p2 = scmp.lt.s32.totalorder %s537_s17, 3 }
   0x5   : > { %s630_s18 = smov (%p29_p1, %s27_s18), 0  ;;  %p186_p3 = pnand %p476_p0, %p185_p2 }
   0x6   : > { %p221_p4 = scmp.lt.s32.totalorder (!%p186_p3), %s529_s15, 1 }
   0x7   : > { %189 = sbr.rel (%p186_p3) target bundleno = 228 (0xe4), region = 28 }
   0xc   : > { %v242_v0 = vld [vmem:[%s623_s1] sm:$0xff]  ;;  %v539_v1 = vmov 0.0   ;;  %vm540_vm0 = vmmov 0   ;;  %s632_s15 = smov (!%p221_p4, %s529_s15), 1  ;;  %vm323_vm1 = vcmask 516096   ;;  %vm243_vm2 = vcmask 64512  }
   0xd   : > { %484 = vmatprep.subr.mxu0 %v539_v1  ;;  %486 = vmatprep.mubr.msk.f32.mxu0 %vm540_vm0, %v539_v1  ;;  %s590_s23 = scalar_lea.vmem %s625_s3, %s632_s15  ;;  %s595_s26 = scalar_lea.vmem %s626_s4, %s632_s15  ;;  %vm317_vm3 = vcmask 523264  }
   0xe   : > { %485 = vmatpush3.msra.mxu0 %v242_v0  ;;  %324 = vst.msk [vmem:[%s590_s23] sm:$0x1] %vm323_vm1, %v539_v1  ;;  %325 = vst.msk [vmem:[%s595_s26] sm:$0x1] %vm323_vm1, %v539_v1  ;;  %s477_s27 = sshll.u32 %s632_s15, 3 }
   0xf   : > { %s227_s30 = scalar_lea.vmem %s622_s0, %s477_s27  ;;  %s234_s7 = scalar_lea.vmem %s624_s2, %s477_s27 }
  0x10   : > { %v241_v2 = vld [vmem:[%s227_s30] sm:$0xff] }
  0x11   : > { %487 = vmatmul.mubr.msk.f32.vlgmr.msra.gmra.mxu0 %vm243_vm2, %v241_v2 }
  0x15   : > { %v326_v17 = vld [vmem:[%s590_s23] sm:$0x1] }
  0x16   : > { %v337_v20 = vld [vmem:[%s595_s26] sm:$0x1] }
  0xd1   : > { %v313_v3 = vpop.f32.mrf.mxu0 }
  0xd2   : > { %318 = vst.msk [vmem:[%s234_s7] sm:$0xff] %vm317_vm3, %v313_v3  ;;  %v327_v4 = vsel %vm317_vm3, %v313_v3, 0.0  ;;  %v338_v5 = vmul.f32 %v313_v3, %v313_v3 }
  0xd3   : > { %v328_v6 = vrot.slane %v327_v4, 4  ;;  %v488_v7 = vpop.f32.mrf.mxu0 }
  0xd4   : > { %v339_v8 = vsel %vm317_vm3, %v338_v5, 0.0 }
  0xd5   : > { %v329_v9 = vadd.f32 %v328_v6, %v327_v4  ;;  %v340_v10 = vrot.slane %v339_v8, 4 }
  0xd7   : > { %v330_v11 = vrot.slane %v329_v9, 2  ;;  %v341_v12 = vadd.f32 %v340_v10, %v339_v8 }
  0xd9   : > { %v331_v13 = vadd.f32 %v330_v11, %v329_v9  ;;  %v342_v14 = vrot.slane %v341_v12, 2 }
  0xdb   : > { %v332_v15 = vrot.slane %v331_v13, 1  ;;  %v343_v16 = vadd.f32 %v342_v14, %v341_v12 }
  0xdd   : > { %v333_v18 = vadd.f32 %v332_v15, %v331_v13  ;;  %v344_v19 = vrot.slane %v343_v16, 1 }
  0xdf   : > { %v334_v21 = vadd.f32 %v333_v18, %v326_v17  ;;  %v345_v22 = vadd.f32 %v344_v19, %v343_v16 }
  0xe1   : > { %336 = vst.msk [vmem:[%s590_s23] sm:$0x1] %vm323_vm1, %v334_v21  ;;  %v346_v23 = vadd.f32 %v345_v22, %v337_v20 }
  0xe3   : > { %347 = vst.msk [vmem:[%s595_s26] sm:$0x1] %vm323_vm1, %v346_v23 }
  0xe4 PF: > { %s15_s17 = sadd.s32 1, %s537_s17   ;;  %s627_s15 = smov %s533_s16 }
  0xe5   : > { %p12_p5 = scmp.ge.s32.totalorder %s15_s17, 4   ;;  %s628_s16 = smov %s630_s18 }
  0xe7   :  { %14 = sbr.rel (!%p12_p5) target bundleno = 2 (0x2), region = 86 }

// kernel: t_net_forward.6
= control target key start
LH: loop header
LB: loop body
LE: loop exit
PB: predicated region body
PF: predicated region fallthrough
CT: control target
= control target key end

     0   :  { %11 = vsyncpa [#allocation3], 0  ;;  %s1510_s18 = smov 0   ;;  %s1512_s19 = smov 0   ;;  %s1835_s0 = inlined_call_operand.vmem [shape: f32[2], index: 0, kind: input, shape index: {}]   ;;  %s1836_s1 = inlined_call_operand.vmem [shape: f32[2,8,128], index: 1, kind: input, shape index: {}]   ;;  %s1837_s2 = inlined_call_operand.vmem [shape: bf16[128,1024], index: 2, kind: input, shape index: {}]   ;;  %s1838_s3 = inlined_call_operand.vmem [shape: f32[2,1,1024], index: 3, kind: output, shape index: {0}]   ;;  %s1839_s4 = inlined_call_operand.vmem [shape: f32[2,1,1024], index: 4, kind: output, shape index: {1}]   ;;  %s1840_s5 = inlined_call_operand.vmem [shape: f32[2,1,1024], index: 5, kind: output, shape index: {2}]  }
   0x1   :  { %s1514_s20 = smov 0  }
   0x2 LB: > { %s1317_s21 = sadd.s32 4294967295, %s1475_s20   ;;  %s29_s22 = sadd.s32 1, %s1471_s19  ;;  %s1475_s20 = sphi %s1514_s20, %s17_s20   ;;  %s1471_s19 = sphi %s1512_s19, %s1844_s19   ;;  %s1467_s18 = sphi %s1510_s18, %s1843_s18  }
   0x3   : > { %p31_p0 = scmp.ge.s32.totalorder %s29_s22, 2  ;;  %p1319_p1 = scmp.ge.s32.totalorder %s1475_s20, 1 }
   0x4   : > { %p182_p2 = scmp.lt.s32.totalorder %s1475_s20, 3  ;;  %p1535_p4 = scmp.eq.s32.totalorder %s1317_s21, 0 }
   0x5   : > { %s1846_s22 = smov (%p31_p0, %s29_s22), 0  ;;  %s195_s27 = sshll.u32 %s1835_s0, 4  ;;  %s196_s27 = int_to_ptr.vmem [resolvable:$true] %s195_s27 }
   0x6   : > { %p1531_p3 = pnand %p1319_p1, %p182_p2  ;;  %s1434_s28 = scalar_lea.vmem %s196_s27, 16 }
   0x7   : > { %p1435_p7 = scmp.ne.s32.totalorder %s196_s27, %s1434_s28  ;;  %p1442_p11 = scmp.lt.s32.totalorder %s196_s27, %s196_s27 }
   0x8   : > { %p1399_p5 = pneg %p1531_p3  ;;  %p1443_p12 = scmp.lt.s32.totalorder %s1434_s28, %s1434_s28 }
   0xa   : > { %p1400_p6 = pnand %p1535_p4, %p1399_p5  ;;  %p1444_p13 = por %p1443_p12, %p1442_p11 }
   0xc   : > { %p1436_p8 = pneg %p1400_p6 }
   0xe   : > { %p1437_p9 = pnand %p1436_p8, %p1435_p7 }
  0x10   : > { %p1438_p10 = pneg %p1437_p9 }
  0x12   : > { %p1445_p0 = pnand %p1444_p13, %p1438_p10 }
  0x14   : > { %1448 = shalt.err (!%p1445_p0)
}
  0x15   : > { %s1477_s29 = smov [#allocation2]   ;;  %221 = sbr.rel (%p1531_p3) target bundleno = 325 (0x145), region = 32 }
  0x16   : > { %1402 = dma.vmem_to_smem (!%p1400_p6), %s196_s27, 16, %s1477_s29, [#allocation3]  }
  0x1a   : > { %1462 = dma.done.wait (%p1535_p4), [#allocation3], 16  }
  0x1b   : > { %1464 = vsyncadd (%p1535_p4), [#allocation3], 4294967280 }
  0x1c   : > { %227 = sfence }
  0x1d   : > { %v344_v0 = vld [vmem:[%s1837_s2 + $0x1c0] sm:$0xff]  ;;  %v345_v2 = vld [vmem:[%s1837_s2 + $0x1c8] sm:$0xff]  ;;  %v1478_v8 = vmov 0   ;;  %p259_p1 = scmp.lt.s32.totalorder %s1467_s18, 1  ;;  %s1606_s16 = sld [smem:[#allocation2]] }
  0x1e   : > { %v348_v1 = vld [vmem:[%s1837_s2 + $0x1e0] sm:$0xff]  ;;  %v349_v4 = vld [vmem:[%s1837_s2 + $0x1e8] sm:$0xff]  ;;  %704 = vmatprep.mubr.bf16.mxu0 %v1478_v8  ;;  %745 = vmatprep.mubr.bf16.mxu1 %v1478_v8  ;;  %s1622_s30 = sld [smem:[#allocation2 + $0x1]] }
  0x1f   : > { %v1386_v3 = vcombine.high %v344_v0, %v348_v1  ;;  %v1385_v5 = vcombine.low %v344_v0, %v348_v1  ;;  %v336_v6 = vld [vmem:[%s1837_s2 + $0x180] sm:$0xff]  ;;  %v1388_v9 = vcombine.high %v345_v2, %v349_v4  ;;  %v1387_v10 = vcombine.low %v345_v2, %v349_v4  ;;  %v337_v12 = vld [vmem:[%s1837_s2 + $0x188] sm:$0xff]  ;;  %s1848_s18 = smov (!%p259_p1, %s1467_s18), 1  ;;  %v346_v4 = vld [vmem:[%s1837_s2 + $0x1d0] sm:$0xff] }
  0x20   : > { %v340_v7 = vld [vmem:[%s1837_s2 + $0x1a0] sm:$0xff]  ;;  %v341_v13 = vld [vmem:[%s1837_s2 + $0x1a8] sm:$0xff]  ;;  %s1614_s25 = sshll.u32 %s1848_s18, 3 }
  0x21   : > { %v1378_v11 = vcombine.high %v336_v6, %v340_v7  ;;  %v328_v14 = vld [vmem:[%s1837_s2 + $0x140] sm:$0xff]  ;;  %672 = vmatprep.subr.bf16.mxu0 %v1386_v3  ;;  %v1380_v15 = vcombine.high %v337_v12, %v341_v13  ;;  %v329_v17 = vld [vmem:[%s1837_s2 + $0x148] sm:$0xff]  ;;  %713 = vmatprep.subr.bf16.mxu1 %v1388_v9  ;;  %v1377_v19 = vcombine.low %v336_v6, %v340_v7  ;;  %s265_s7 = scalar_lea.vmem %s1836_s1, %s1614_s25  ;;  %v347_v7 = vld [vmem:[%s1837_s2 + $0x1d8] sm:$0xff]  ;;  %s269_s14 = scalar_lea.vmem %s1838_s3, %s1614_s25 }
  0x22   : > { %v332_v16 = vld [vmem:[%s1837_s2 + $0x160] sm:$0xff]  ;;  %v333_v18 = vld [vmem:[%s1837_s2 + $0x168] sm:$0xff]  ;;  %673 = vmatpush1.bf16.msra.mxu0 %v1385_v5  ;;  %714 = vmatpush1.bf16.msra.mxu1 %v1387_v10  ;;  %v1379_v20 = vcombine.low %v337_v12, %v341_v13  ;;  %v350_v5 = vld [vmem:[%s1837_s2 + $0x1f0] sm:$0xff]  ;;  %s273_s21 = scalar_lea.vmem %s1839_s4, %s1614_s25  ;;  %s277_s26 = scalar_lea.vmem %s1840_s5, %s1614_s25 }
  0x23   : > { %674 = vmatprep.subr.bf16.mxu0 %v1378_v11  ;;  %v1370_v21 = vcombine.high %v328_v14, %v332_v16  ;;  %715 = vmatprep.subr.bf16.mxu1 %v1380_v15  ;;  %v1372_v22 = vcombine.high %v329_v17, %v333_v18  ;;  %v320_v23 = vld [vmem:[%s1837_s2 + $0x100] sm:$0xff]  ;;  %v321_v25 = vld [vmem:[%s1837_s2 + $0x108] sm:$0xff]  ;;  %v1369_v27 = vcombine.low %v328_v14, %v332_v16  ;;  %v282_v45 = vstv %s1606_s16  ;;  %v351_v9 = vld [vmem:[%s1837_s2 + $0x1f8] sm:$0xff] }
  0x24   : > { %v324_v24 = vld [vmem:[%s1837_s2 + $0x120] sm:$0xff]  ;;  %v325_v26 = vld [vmem:[%s1837_s2 + $0x128] sm:$0xff]  ;;  %v1371_v28 = vcombine.low %v329_v17, %v333_v18  ;;  %v284_v55 = vstv %s1622_s30  ;;  %v1390_v12 = vcombine.high %v346_v4, %v350_v5  ;;  %v1392_v13 = vcombine.high %v347_v7, %v351_v9  ;;  %v338_v14 = vld [vmem:[%s1837_s2 + $0x190] sm:$0xff] }
  0x25   : > { %v1362_v29 = vcombine.high %v320_v23, %v324_v24  ;;  %v1364_v30 = vcombine.high %v321_v25, %v325_v26  ;;  %v312_v31 = vld [vmem:[%s1837_s2 + $0xc0] sm:$0xff]  ;;  %v313_v33 = vld [vmem:[%s1837_s2 + $0xc8] sm:$0xff]  ;;  %v1361_v35 = vcombine.low %v320_v23, %v324_v24  ;;  %v1363_v36 = vcombine.low %v321_v25, %v325_v26  ;;  %v342_v15 = vld [vmem:[%s1837_s2 + $0x1b0] sm:$0xff] }
  0x26   : > { %675 = vmatpush1.bf16.msra.mxu0 %v1377_v19  ;;  %716 = vmatpush1.bf16.msra.mxu1 %v1379_v20  ;;  %v316_v32 = vld [vmem:[%s1837_s2 + $0xe0] sm:$0xff]  ;;  %v317_v34 = vld [vmem:[%s1837_s2 + $0xe8] sm:$0xff]  ;;  %v339_v17 = vld [vmem:[%s1837_s2 + $0x198] sm:$0xff]  ;;  %v1389_v19 = vcombine.low %v346_v4, %v350_v5  ;;  %v1391_v20 = vcombine.low %v347_v7, %v351_v9 }
  0x27   : > { %676 = vmatprep.subr.bf16.mxu0 %v1370_v21  ;;  %717 = vmatprep.subr.bf16.mxu1 %v1372_v22  ;;  %v1354_v37 = vcombine.high %v312_v31, %v316_v32  ;;  %v1356_v38 = vcombine.high %v313_v33, %v317_v34  ;;  %v304_v39 = vld [vmem:[%s1837_s2 + $0x80] sm:$0xff]  ;;  %v305_v41 = vld [vmem:[%s1837_s2 + $0x88] sm:$0xff]  ;;  %v1353_v43 = vcombine.low %v312_v31, %v316_v32  ;;  %v343_v18 = vld [vmem:[%s1837_s2 + $0x1b8] sm:$0xff] }
  0x28   : > { %v308_v40 = vld [vmem:[%s1837_s2 + $0xa0] sm:$0xff]  ;;  %v309_v42 = vld [vmem:[%s1837_s2 + $0xa8] sm:$0xff]  ;;  %v1355_v46 = vcombine.low %v313_v33, %v317_v34  ;;  %v1382_v21 = vcombine.high %v338_v14, %v342_v15  ;;  %v1384_v22 = vcombine.high %v339_v17, %v343_v18  ;;  %v330_v23 = vld [vmem:[%s1837_s2 + $0x150] sm:$0xff] }
  0x29   : > { %v281_v44 = vld [vmem:[%s265_s7] sm:$0xff]  ;;  %v1346_v47 = vcombine.high %v304_v39, %v308_v40  ;;  %v1348_v48 = vcombine.high %v305_v41, %v309_v42  ;;  %v297_v51 = vld [vmem:[%s1837_s2 + $0x48] sm:$0xff]  ;;  %v1345_v54 = vcombine.low %v304_v39, %v308_v40  ;;  %v1347_v56 = vcombine.low %v305_v41, %v309_v42  ;;  %v334_v24 = vld [vmem:[%s1837_s2 + $0x170] sm:$0xff] }
  0x2a   : > { %677 = vmatpush1.bf16.msra.mxu0 %v1369_v27  ;;  %718 = vmatpush1.bf16.msra.mxu1 %v1371_v28  ;;  %v296_v49 = vld [vmem:[%s1837_s2 + $0x40] sm:$0xff]  ;;  %v301_v52 = vld [vmem:[%s1837_s2 + $0x68] sm:$0xff]  ;;  %v283_v53 = vsub.f32 %v281_v44, %v282_v45  ;;  %v331_v25 = vld [vmem:[%s1837_s2 + $0x158] sm:$0xff]  ;;  %v1381_v27 = vcombine.low %v338_v14, %v342_v15  ;;  %v1383_v28 = vcombine.low %v339_v17, %v343_v18 }
  0x2b   : > { %678 = vmatprep.subr.bf16.mxu0 %v1362_v29  ;;  %719 = vmatprep.subr.bf16.mxu1 %v1364_v30  ;;  %v300_v50 = vld [vmem:[%s1837_s2 + $0x60] sm:$0xff]  ;;  %v1340_v58 = vcombine.high %v297_v51, %v301_v52  ;;  %v289_v61 = vld [vmem:[%s1837_s2 + $0x8] sm:$0xff]  ;;  %v1339_v1 = vcombine.low %v297_v51, %v301_v52  ;;  %v335_v26 = vld [vmem:[%s1837_s2 + $0x178] sm:$0xff]  ;;  %v1374_v29 = vcombine.high %v330_v23, %v334_v24 }
  0x2c   : > { %v1338_v57 = vcombine.high %v296_v49, %v300_v50  ;;  %v288_v59 = vld [vmem:[%s1837_s2] sm:$0xff]  ;;  %v293_v62 = vld [vmem:[%s1837_s2 + $0x28] sm:$0xff]  ;;  %v285_v63 = vmul.f32 %v284_v55, %v283_v53  ;;  %v1337_v0 = vcombine.low %v296_v49, %v300_v50  ;;  %v1376_v30 = vcombine.high %v331_v25, %v335_v26  ;;  %v322_v31 = vld [vmem:[%s1837_s2 + $0x110] sm:$0xff] }
  0x2d   : > { %v292_v60 = vld [vmem:[%s1837_s2 + $0x20] sm:$0xff]  ;;  %v1332_v3 = vcombine.high %v289_v61, %v293_v62  ;;  %v1331_v11 = vcombine.low %v289_v61, %v293_v62  ;;  %v326_v32 = vld [vmem:[%s1837_s2 + $0x130] sm:$0xff]  ;;  %v323_v33 = vld [vmem:[%s1837_s2 + $0x118] sm:$0xff] }
  0x2e   : > { %679 = vmatpush1.bf16.msra.mxu0 %v1361_v35  ;;  %720 = vmatpush1.bf16.msra.mxu1 %v1363_v36  ;;  %v1330_v2 = vcombine.high %v288_v59, %v292_v60  ;;  %v286_v6 = vmax.f32 %v285_v63, 0.0  ;;  %v1329_v10 = vcombine.low %v288_v59, %v292_v60  ;;  %v327_v34 = vld [vmem:[%s1837_s2 + $0x138] sm:$0xff]  ;;  %v1373_v35 = vcombine.low %v330_v23, %v334_v24  ;;  %v314_v39 = vld [vmem:[%s1837_s2 + $0xd0] sm:$0xff] }
  0x2f   : > { %680 = vmatprep.subr.bf16.mxu0 %v1354_v37  ;;  %721 = vmatprep.subr.bf16.mxu1 %v1356_v38  ;;  %v1375_v36 = vcombine.low %v331_v25, %v335_v26  ;;  %v1366_v37 = vcombine.high %v322_v31, %v326_v32  ;;  %v1368_v38 = vcombine.high %v323_v33, %v327_v34  ;;  %v318_v40 = vld [vmem:[%s1837_s2 + $0xf0] sm:$0xff]  ;;  %v319_v41 = vld [vmem:[%s1837_s2 + $0xf8] sm:$0xff] }
  0x30   : > { %v1684_v16 = vpack.c.bf16 %v286_v6, %v286_v6  ;;  %v1365_v42 = vcombine.low %v322_v31, %v326_v32  ;;  %v1358_v44 = vcombine.high %v314_v39, %v318_v40  ;;  %v311_v49 = vld [vmem:[%s1837_s2 + $0xb8] sm:$0xff]  ;;  %v1357_v50 = vcombine.low %v314_v39, %v318_v40  ;;  %v302_v55 = vld [vmem:[%s1837_s2 + $0x70] sm:$0xff] }
  0x31   : > { %v290_v62 = vld [vmem:[%s1837_s2 + $0x10] sm:$0xff] }
  0x32   : > { %681 = vmatpush1.bf16.msra.mxu0 %v1353_v43  ;;  %722 = vmatpush1.bf16.msra.mxu1 %v1355_v46  ;;  %v1367_v43 = vcombine.low %v323_v33, %v327_v34  ;;  %v306_v46 = vld [vmem:[%s1837_s2 + $0x90] sm:$0xff] }
  0x33   : > { %682 = vmatprep.subr.bf16.mxu0 %v1346_v47  ;;  %723 = vmatprep.subr.bf16.mxu1 %v1348_v48  ;;  %v310_v47 = vld [vmem:[%s1837_s2 + $0xb0] sm:$0xff]  ;;  %v307_v48 = vld [vmem:[%s1837_s2 + $0x98] sm:$0xff] }
  0x34   : > { %v1350_v52 = vcombine.high %v306_v46, %v310_v47  ;;  %v1352_v53 = vcombine.high %v307_v48, %v311_v49  ;;  %v1351_v59 = vcombine.low %v307_v48, %v311_v49  ;;  %v294_v63 = vld [vmem:[%s1837_s2 + $0x30] sm:$0xff] }
  0x35   : > { %v1334_v4 = vcombine.high %v290_v62, %v294_v63  ;;  %v1333_v6 = vcombine.low %v290_v62, %v294_v63 }
  0x36   : > { %683 = vmatpush1.bf16.msra.mxu0 %v1345_v54  ;;  %724 = vmatpush1.bf16.msra.mxu1 %v1347_v56  ;;  %v298_v54 = vld [vmem:[%s1837_s2 + $0x50] sm:$0xff]  ;;  %v299_v56 = vld [vmem:[%s1837_s2 + $0x58] sm:$0xff] }
  0x37   : > { %684 = vmatprep.subr.bf16.mxu0 %v1338_v57  ;;  %725 = vmatprep.subr.bf16.mxu1 %v1340_v58  ;;  %v303_v57 = vld [vmem:[%s1837_s2 + $0x78] sm:$0xff]  ;;  %v1349_v58 = vcombine.low %v306_v46, %v310_v47  ;;  %v1342_v60 = vcombine.high %v298_v54, %v302_v55 }
  0x38   : > { %v1344_v61 = vcombine.high %v299_v56, %v303_v57 }
  0x3a   : > { %685 = vmatpush1.bf16.msra.mxu0 %v1337_v0  ;;  %726 = vmatpush1.bf16.msra.mxu1 %v1339_v1  ;;  %v291_v0 = vld [vmem:[%s1837_s2 + $0x18] sm:$0xff] }
  0x3b   : > { %686 = vmatprep.subr.bf16.mxu0 %v1330_v2  ;;  %727 = vmatprep.subr.bf16.mxu1 %v1332_v3  ;;  %v295_v1 = vld [vmem:[%s1837_s2 + $0x38] sm:$0xff]  ;;  %v1341_v2 = vcombine.low %v298_v54, %v302_v55  ;;  %v1343_v3 = vcombine.low %v299_v56, %v303_v57 }
  0x3c   : > { %v1336_v5 = vcombine.high %v291_v0, %v295_v1  ;;  %v1335_v7 = vcombine.low %v291_v0, %v295_v1 }
  0x3e   : > { %687 = vmatpush1.bf16.msra.mxu0 %v1329_v10  ;;  %728 = vmatpush1.bf16.msra.mxu1 %v1331_v11 }
  0x3f   : > { %754 = vmatprep.subr.bf16.mxu0 %v1390_v12  ;;  %795 = vmatprep.subr.bf16.mxu1 %v1392_v13 }
  0x41   : > { %705 = vmatmul.mubr.bf16.vlgmr.msra.gmra.mxu0 %v1684_v16  ;;  %746 = vmatmul.mubr.bf16.vlgmr.msra.gmra.mxu1 %v1684_v16 }
  0x42   : > { %755 = vmatpush1.bf16.msra.mxu0 %v1389_v19  ;;  %796 = vmatpush1.bf16.msra.mxu1 %v1391_v20 }
  0x43   : > { %756 = vmatprep.subr.bf16.mxu0 %v1382_v21  ;;  %797 = vmatprep.subr.bf16.mxu1 %v1384_v22 }
  0x44   : > { %786 = vmatprep.mubr.bf16.mxu0 %v1478_v8  ;;  %827 = vmatprep.mubr.bf16.mxu1 %v1478_v8  ;;  %v315_v8 = vld [vmem:[%s1837_s2 + $0xd8] sm:$0xff] }
  0x45   : > { %v1360_v45 = vcombine.high %v315_v8, %v319_v41  ;;  %v1359_v51 = vcombine.low %v315_v8, %v319_v41 }
  0x46   : > { %757 = vmatpush1.bf16.msra.mxu0 %v1381_v27  ;;  %798 = vmatpush1.bf16.msra.mxu1 %v1383_v28 }
  0x47   : > { %758 = vmatprep.subr.bf16.mxu0 %v1374_v29  ;;  %799 = vmatprep.subr.bf16.mxu1 %v1376_v30 }
  0x4a   : > { %759 = vmatpush1.bf16.msra.mxu0 %v1373_v35  ;;  %800 = vmatpush1.bf16.msra.mxu1 %v1375_v36 }
  0x4b   : > { %760 = vmatprep.subr.bf16.mxu0 %v1366_v37  ;;  %801 = vmatprep.subr.bf16.mxu1 %v1368_v38 }
  0x4e   : > { %761 = vmatpush1.bf16.msra.mxu0 %v1365_v42  ;;  %802 = vmatpush1.bf16.msra.mxu1 %v1367_v43  ;;  %v1479_v43 = vmov 1966171168  }
  0x4f   : > { %762 = vmatprep.subr.bf16.mxu0 %v1358_v44  ;;  %803 = vmatprep.subr.bf16.mxu1 %v1360_v45  ;;  %v905_v44 = vunpack.c.l.s4 %v1479_v43  ;;  %v907_v45 = vlaneseq }
  0x52   : > { %763 = vmatpush1.bf16.msra.mxu0 %v1357_v50  ;;  %804 = vmatpush1.bf16.msra.mxu1 %v1359_v51 }
  0x53   : > { %764 = vmatprep.subr.bf16.mxu0 %v1350_v52  ;;  %805 = vmatprep.subr.bf16.mxu1 %v1352_v53 }
  0x56   : > { %765 = vmatpush1.bf16.msra.mxu0 %v1349_v58  ;;  %806 = vmatpush1.bf16.msra.mxu1 %v1351_v59  ;;  %v906_v58 = vunpack.c.0.s8 %v905_v44  ;;  %v908_v59 = vshrl.u32 %v907_v45, 7 }
  0x57   : > { %766 = vmatprep.subr.bf16.mxu0 %v1342_v60  ;;  %807 = vmatprep.subr.bf16.mxu1 %v1344_v61 }
  0x5a   : > { %767 = vmatpush1.bf16.msra.mxu0 %v1341_v2  ;;  %808 = vmatpush1.bf16.msra.mxu1 %v1343_v3 }
  0x5b   : > { %768 = vmatprep.subr.bf16.mxu0 %v1334_v4  ;;  %809 = vmatprep.subr.bf16.mxu1 %v1336_v5 }
  0x5e   : > { %769 = vmatpush1.bf16.msra.mxu0 %v1333_v6  ;;  %810 = vmatpush1.bf16.msra.mxu1 %v1335_v7 }
  0x61   : > { %787 = vmatmul.mubr.bf16.vlgmr.msra.gmra.mxu0 %v1684_v16  ;;  %828 = vmatmul.mubr.bf16.vlgmr.msra.gmra.mxu1 %v1684_v16 }
 0x101   : > { %v706_v9 = vpop.f32.mrf.mxu0  ;;  %v747_v10 = vpop.f32.mrf.mxu1 }
 0x102   : > { %v1062_v18 = vmul.f32 %v706_v9, %v706_v9  ;;  %v844_v19 = vrot.slane %v706_v9, 4  ;;  %v856_v20 = vrot.slane %v747_v10, 4  ;;  %v1064_v22 = vmul.f32 %v747_v10, %v747_v10 }
 0x103   : > { %v708_v11 = vpop.f32.mrf.mxu0  ;;  %v749_v12 = vpop.f32.mrf.mxu1 }
 0x104   : > { %v1070_v21 = vrot.slane %v1062_v18, 4  ;;  %v850_v23 = vrot.slane %v708_v11, 4  ;;  %v1063_v24 = vmul.f32 %v708_v11, %v708_v11  ;;  %v845_v25 = vmax.f32 %v706_v9, %v844_v19 }
 0x105   : > { %v710_v13 = vpop.f32.mrf.mxu0  ;;  %v751_v14 = vpop.f32.mrf.mxu1  ;;  %v954_v26 = vadd.f32 %v844_v19, %v706_v9  ;;  %v857_v27 = vmax.f32 %v747_v10, %v856_v20  ;;  %v966_v28 = vadd.f32 %v856_v20, %v747_v10  ;;  %v1082_v29 = vrot.slane %v1064_v22, 4 }
 0x106   : > { %v1071_v16 = vadd.f32 %v1070_v21, %v1062_v18  ;;  %v851_v30 = vmax.f32 %v708_v11, %v850_v23  ;;  %v960_v31 = vadd.f32 %v850_v23, %v708_v11  ;;  %v862_v32 = vrot.slane %v749_v12, 4 }
 0x107   : > { %v711_v15 = vpop.f32.mrf.mxu0  ;;  %v752_v17 = vpop.f32.mrf.mxu1  ;;  %v1076_v33 = vrot.slane %v1063_v24, 4  ;;  %v846_v34 = vrot.slane %v845_v25, 2  ;;  %v955_v35 = vrot.slane %v954_v26, 2  ;;  %v858_v36 = vrot.slane %v857_v27, 2 }
 0x108   : > { %v967_v37 = vrot.slane %v966_v28, 2  ;;  %v1072_v38 = vrot.slane %v1071_v16, 2  ;;  %v1083_v39 = vadd.f32 %v1082_v29, %v1064_v22  ;;  %v852_v40 = vrot.slane %v851_v30, 2 }
 0x109   : > { %v1065_v8 = vmul.f32 %v749_v12, %v749_v12  ;;  %v961_v41 = vrot.slane %v960_v31, 2  ;;  %v863_v42 = vmax.f32 %v749_v12, %v862_v32  ;;  %v1077_v46 = vadd.f32 %v1076_v33, %v1063_v24 }
 0x10a   : > { %v972_v47 = vadd.f32 %v862_v32, %v749_v12  ;;  %v847_v48 = vmax.f32 %v845_v25, %v846_v34  ;;  %v956_v49 = vadd.f32 %v955_v35, %v954_v26  ;;  %v859_v50 = vmax.f32 %v857_v27, %v858_v36 }
 0x10b   : > { %v968_v51 = vadd.f32 %v967_v37, %v966_v28  ;;  %v1073_v52 = vadd.f32 %v1072_v38, %v1071_v16  ;;  %v1084_v53 = vrot.slane %v1083_v39, 2  ;;  %v853_v54 = vmax.f32 %v851_v30, %v852_v40 }
 0x10c   : > { %v1088_v55 = vrot.slane %v1065_v8, 4  ;;  %v962_v56 = vadd.f32 %v961_v41, %v960_v31  ;;  %v864_v57 = vrot.slane %v863_v42, 2  ;;  %v1078_v60 = vrot.slane %v1077_v46, 2 }
 0x10d   : > { %v973_v61 = vrot.slane %v972_v47, 2  ;;  %v848_v62 = vrot.slane %v847_v48, 1  ;;  %v957_v63 = vrot.slane %v956_v49, 1  ;;  %v860_v0 = vrot.slane %v859_v50, 1 }
 0x10e   : > { %v969_v1 = vrot.slane %v968_v51, 1  ;;  %v1074_v2 = vrot.slane %v1073_v52, 1  ;;  %v1085_v3 = vadd.f32 %v1084_v53, %v1083_v39  ;;  %v854_v4 = vrot.slane %v853_v54, 1 }
 0x10f   : > { %v1089_v5 = vadd.f32 %v1088_v55, %v1065_v8  ;;  %v963_v6 = vrot.slane %v962_v56, 1  ;;  %v865_v7 = vmax.f32 %v863_v42, %v864_v57  ;;  %v1770_v9 = vsub.s32 %v906_v58, %v908_v59 }
 0x110   : > { %v1079_v10 = vadd.f32 %v1078_v60, %v1077_v46  ;;  %v974_v11 = vadd.f32 %v973_v61, %v972_v47  ;;  %v849_v12 = vmax.f32 %v847_v48, %v848_v62  ;;  %v958_v13 = vadd.f32 %v957_v63, %v956_v49 }
 0x111   : > { %v1772_v14 = vmax.f32 %v859_v50, %v860_v0  ;;  %v1774_v15 = vadd.f32 %v969_v1, %v968_v51  ;;  %v1776_v17 = vadd.f32 %v1074_v2, %v1073_v52  ;;  %v1086_v18 = vrot.slane %v1085_v3, 1 }
 0x112   : > { %v855_v19 = vmax.f32 %v853_v54, %v854_v4  ;;  %v1090_v20 = vrot.slane %v1089_v5, 2  ;;  %v964_v22 = vadd.f32 %v963_v6, %v962_v56  ;;  %v866_v23 = vrot.slane %v865_v7, 1 }
 0x113   : > { %v1080_v27 = vrot.slane %v1079_v10, 1  ;;  %v975_v28 = vrot.slane %v974_v11, 1  ;;  %v1778_v36 = vadd.f32 %v1086_v18, %v1085_v3 }
 0x114   : > { %v1091_v37 = vadd.f32 %v1090_v20, %v1089_v5  ;;  %v900_v8 = vcombine.low %v849_v12, %v855_v19  ;;  %v1009_v41 = vcombine.low %v958_v13, %v964_v22  ;;  %v867_v42 = vmax.f32 %v865_v7, %v866_v23 }
 0x115   : > { %v1780_v50 = vadd.f32 %v1080_v27, %v1079_v10  ;;  %v976_v51 = vadd.f32 %v975_v28, %v974_v11 }
 0x116   : > { %v1092_v55 = vrot.slane %v1091_v37, 1  ;;  %v1783_v59 = vrot.slane %v900_v8, %v1770_v9  ;;  %v901_v60 = vcombine.low %v1772_v14, %v867_v42  ;;  %v1787_v3 = vrot.slane %v1009_v41, %v1770_v9 }
 0x117   : > { %v1126_v4 = vcombine.low %v1776_v17, %v1780_v50  ;;  %v1010_v5 = vcombine.low %v1774_v15, %v976_v51 }
 0x118   : > { %v1093_v7 = vadd.f32 %v1092_v55, %v1091_v37  ;;  %v1793_v13 = vrot.slane %v901_v60, %v1770_v9 }
 0x119   : > { %v1026_v42 = vrot.slane %v1010_v5, %v1770_v9 }
 0x11a   : > { %v932_v5 = vcombine.low %v1783_v59, %v1793_v13 }
 0x121   : > { %v788_v21 = vpop.f32.mrf.mxu0  ;;  %v829_v26 = vpop.f32.mrf.mxu1 }
 0x122   : > { %v868_v24 = vrot.slane %v788_v21, 4  ;;  %v1066_v25 = vmul.f32 %v788_v21, %v788_v21  ;;  %v880_v16 = vrot.slane %v829_v26, 4  ;;  %v1068_v29 = vmul.f32 %v829_v26, %v829_v26 }
 0x123   : > { %v790_v30 = vpop.f32.mrf.mxu0  ;;  %v831_v35 = vpop.f32.mrf.mxu1 }
 0x124   : > { %v869_v31 = vmax.f32 %v788_v21, %v868_v24  ;;  %v978_v32 = vadd.f32 %v868_v24, %v788_v21  ;;  %v1094_v33 = vrot.slane %v1066_v25, 4  ;;  %v874_v34 = vrot.slane %v790_v30, 4 }
 0x125   : > { %v881_v38 = vmax.f32 %v829_v26, %v880_v16  ;;  %v990_v39 = vadd.f32 %v880_v16, %v829_v26  ;;  %v792_v40 = vpop.f32.mrf.mxu0  ;;  %v833_v44 = vpop.f32.mrf.mxu1  ;;  %v1106_v47 = vrot.slane %v1068_v29, 4  ;;  %v1067_v62 = vmul.f32 %v790_v30, %v790_v30 }
 0x126   : > { %v875_v43 = vmax.f32 %v790_v30, %v874_v34  ;;  %v870_v45 = vrot.slane %v869_v31, 2  ;;  %v979_v46 = vrot.slane %v978_v32, 2  ;;  %v984_v48 = vadd.f32 %v874_v34, %v790_v30 }
 0x127   : > { %v793_v49 = vpop.f32.mrf.mxu0  ;;  %v1095_v52 = vadd.f32 %v1094_v33, %v1066_v25  ;;  %v834_v54 = vpop.f32.mrf.mxu1  ;;  %v882_v56 = vrot.slane %v881_v38, 2  ;;  %v991_v57 = vrot.slane %v990_v39, 2  ;;  %v1107_v1 = vadd.f32 %v1106_v47, %v1068_v29 }
 0x128   : > { %v876_v53 = vrot.slane %v875_v43, 2  ;;  %v985_v58 = vrot.slane %v984_v48, 2  ;;  %v871_v63 = vmax.f32 %v869_v31, %v870_v45  ;;  %v980_v0 = vadd.f32 %v979_v46, %v978_v32 }
 0x129   : > { %v1096_v6 = vrot.slane %v1095_v52, 2  ;;  %v883_v10 = vmax.f32 %v881_v38, %v882_v56  ;;  %v992_v11 = vadd.f32 %v991_v57, %v990_v39  ;;  %v1100_v18 = vrot.slane %v1067_v62, 4 }
 0x12a   : > { %v877_v61 = vmax.f32 %v875_v43, %v876_v53  ;;  %v986_v2 = vadd.f32 %v985_v58, %v984_v48  ;;  %v886_v19 = vrot.slane %v831_v35, 4  ;;  %v872_v20 = vrot.slane %v871_v63, 1 }
 0x12b   : > { %v981_v21 = vrot.slane %v980_v0, 1  ;;  %v1108_v22 = vrot.slane %v1107_v1, 2  ;;  %v1069_v23 = vmul.f32 %v831_v35, %v831_v35  ;;  %v1097_v24 = vadd.f32 %v1096_v6, %v1095_v52 }
 0x12c   : > { %v878_v12 = vrot.slane %v877_v61, 1  ;;  %v987_v14 = vrot.slane %v986_v2, 1  ;;  %v1101_v25 = vadd.f32 %v1100_v18, %v1067_v62  ;;  %v887_v17 = vmax.f32 %v831_v35, %v886_v19 }
 0x12d   : > { %v996_v26 = vadd.f32 %v886_v19, %v831_v35  ;;  %v884_v15 = vrot.slane %v883_v10, 1  ;;  %v993_v27 = vrot.slane %v992_v11, 1  ;;  %v1112_v16 = vrot.slane %v1069_v23, 4 }
 0x12e   : > { %v879_v28 = vmax.f32 %v877_v61, %v878_v12  ;;  %v988_v29 = vadd.f32 %v987_v14, %v986_v2  ;;  %v1102_v30 = vrot.slane %v1101_v25, 2  ;;  %v888_v31 = vrot.slane %v887_v17, 2 }
 0x12f   : > { %v997_v32 = vrot.slane %v996_v26, 2  ;;  %v873_v33 = vmax.f32 %v871_v63, %v872_v20  ;;  %v982_v34 = vadd.f32 %v981_v21, %v980_v0  ;;  %v1109_v37 = vadd.f32 %v1108_v22, %v1107_v1 }
 0x130   : > { %v1113_v38 = vadd.f32 %v1112_v16, %v1069_v23  ;;  %v1098_v39 = vrot.slane %v1097_v24, 1  ;;  %v1103_v40 = vadd.f32 %v1102_v30, %v1101_v25  ;;  %v889_v8 = vmax.f32 %v887_v17, %v888_v31 }
 0x131   : > { %v998_v41 = vadd.f32 %v997_v32, %v996_v26  ;;  %v1127_v35 = vcombine.low %v1778_v36, %v1093_v7  ;;  %v902_v43 = vcombine.low %v873_v33, %v879_v28  ;;  %v1011_v45 = vcombine.low %v982_v34, %v988_v29 }
 0x132   : > { %v1114_v44 = vrot.slane %v1113_v38, 2  ;;  %v1104_v46 = vrot.slane %v1103_v40, 1  ;;  %v890_v47 = vrot.slane %v889_v8, 1  ;;  %v885_v49 = vmax.f32 %v883_v10, %v884_v15 }
 0x133   : > { %v999_v48 = vrot.slane %v998_v41, 1  ;;  %v994_v50 = vadd.f32 %v993_v27, %v992_v11  ;;  %v1110_v51 = vrot.slane %v1109_v37, 1  ;;  %v1099_v53 = vadd.f32 %v1098_v39, %v1097_v24 }
 0x134   : > { %v1115_v52 = vadd.f32 %v1114_v44, %v1113_v38  ;;  %v1105_v54 = vadd.f32 %v1104_v46, %v1103_v40  ;;  %v891_v55 = vmax.f32 %v889_v8, %v890_v47  ;;  %v924_v57 = vrot.slane %v902_v43, %v1770_v9 }
 0x135   : > { %v1000_v56 = vadd.f32 %v999_v48, %v998_v41  ;;  %v1033_v60 = vrot.slane %v1011_v45, %v1770_v9  ;;  %v1136_v63 = vrot.slane %v1126_v4, %v1770_v9  ;;  %v1143_v0 = vrot.slane %v1127_v35, %v1770_v9 }
 0x136   : > { %v1116_v58 = vrot.slane %v1115_v52, 1  ;;  %v1128_v36 = vcombine.low %v1099_v53, %v1105_v54  ;;  %v903_v61 = vcombine.low %v885_v49, %v891_v55  ;;  %v1111_v1 = vadd.f32 %v1110_v51, %v1109_v37 }
 0x137   : > { %v1012_v62 = vcombine.low %v994_v50, %v1000_v56  ;;  %v1041_v6 = vcombine.low %v1787_v3, %v1026_v42  ;;  %v1158_v18 = vcombine.low %v1136_v63, %v1143_v0  ;;  %v940_v20 = vrot.slane %v932_v5, %v1770_v9 }
 0x138   : > { %v1117_v2 = vadd.f32 %v1116_v58, %v1115_v52  ;;  %v931_v7 = vrot.slane %v903_v61, %v1770_v9  ;;  %v1150_v11 = vrot.slane %v1128_v36, %v1770_v9 }
 0x139   : > { %v1040_v10 = vrot.slane %v1012_v62, %v1770_v9  ;;  %v1049_v59 = vrot.slane %v1041_v6, %v1770_v9  ;;  %v1166_v24 = vrot.slane %v1158_v18, %v1770_v9 }
 0x13a   : > { %v1129_v12 = vcombine.low %v1111_v1, %v1117_v2  ;;  %v933_v14 = vcombine.low %v924_v57, %v931_v7 }
 0x13b   : > { %v1042_v4 = vcombine.low %v1033_v60, %v1040_v10 }
 0x13c   : > { %v1157_v19 = vrot.slane %v1129_v12, %v1770_v9  ;;  %v947_v3 = vrot.slane %v933_v14, %v1770_v9 }
 0x13d   : > { %v1056_v13 = vrot.slane %v1042_v4, %v1770_v9 }
 0x13e   : > { %v1159_v21 = vcombine.low %v1150_v11, %v1157_v19  ;;  %v948_v22 = vcombine.low %v940_v20, %v947_v3 }
 0x13f   : > { %v1057_v23 = vcombine.low %v1049_v59, %v1056_v13 }
 0x140   : > { %v1173_v25 = vrot.slane %v1159_v21, %v1770_v9  ;;  %951 = vst [vmem:[%s269_s14] sm:$0xff] %v948_v22 }
 0x141   : > { %1060 = vst [vmem:[%s273_s21] sm:$0xff] %v1057_v23 }
 0x142   : > { %v1174_v17 = vcombine.low %v1166_v24, %v1173_v25 }
 0x144   : > { %1177 = vst [vmem:[%s277_s26] sm:$0xff] %v1174_v17 }
 0x145 PF: > { %s17_s20 = sadd.s32 1, %s1475_s20   ;;  %s1843_s18 = smov %s1471_s19 }
 0x146   : > { %p14_p2 = scmp.ge.s32.totalorder %s17_s20, 4   ;;  %s1844_s19 = smov %s1846_s22 }
 0x148   :  { %16 = sbr.rel (!%p14_p2) target bundleno = 2 (0x2), region = 95 }
 0x14d   :  { %1225 = vsyncpa [#allocation3], 1 }
 0x14e   :  { %1227 = vsyncpa [#allocation3 + $0x1], 1 }

// kernel: t_net_forward.7
= control target key start
LH: loop header
LB: loop body
LE: loop exit
PB: predicated region body
PF: predicated region fallthrough
CT: control target
= control target key end

     0   :  { %13 = vsyncpa [#allocation3], 0  ;;  %s4840_s0 = inlined_call_operand.vmem [shape: f32[2], index: 0, kind: input, shape index: {}]   ;;  %s4841_s1 = inlined_call_operand.vmem [shape: f32[2,1024], index: 1, kind: input, shape index: {}]   ;;  %s4842_s2 = inlined_call_operand.vmem [shape: bf16[1024,512], index: 2, kind: input, shape index: {}]   ;;  %s4843_s3 = inlined_call_operand.vmem [shape: f32[1,512], index: 3, kind: input, shape index: {}]   ;;  %s4844_s4 = inlined_call_operand.vmem [shape: bf16[512,256], index: 4, kind: input, shape index: {}]   ;;  %s4845_s5 = inlined_call_operand.vmem [shape: f32[1,256], index: 5, kind: input, shape index: {}]   ;;  %s4846_s6 = inlined_call_operand.vmem [shape: f32[256,16], index: 6, kind: input, shape index: {}]   ;;  %s4847_s7 = inlined_call_operand.vmem [shape: f32[1,16], index: 7, kind: input, shape index: {}]   ;;  %s4848_s8 = inlined_call_operand.vmem [shape: f32[2,16], index: 8, kind: output, shape index: {}]  }
   0x1   :  { %s20_s29 = sshll.u32 %s4840_s0, 4  ;;  %s21_s29 = int_to_ptr.vmem [resolvable:$true] %s20_s29 }
   0x2   :  { %s3592_s30 = scalar_lea.vmem %s21_s29, 16  ;;  %p3597_p1 = scmp.lt.s32.totalorder %s21_s29, %s21_s29 }
   0x3   :  { %p3593_p0 = scmp.ne.s32.totalorder %s21_s29, %s3592_s30  ;;  %p3598_p2 = scmp.lt.s32.totalorder %s3592_s30, %s3592_s30 }
   0x5   :  { %p3599_p3 = por %p3598_p2, %p3597_p1 }
   0x7   :  { %p3600_p4 = pnand %p3599_p3, %p3593_p0 }
   0x9   :  { %3603 = shalt.err (!%p3600_p4)
}
   0xa   :  { %s3606_s9 = smov [#allocation2]  }
   0xb   :  { %23 = dma.vmem_to_smem %s21_s29, 16, %s3606_s9, [#allocation3]  }
   0xc   :  { %3604 = dma.done.wait [#allocation3], 16  }
   0xd   :  { %3605 = vsyncadd [#allocation3], 4294967280 }
   0xe   :  { %41 = sfence }
   0xf   :  { %v3100_v0 = vld [vmem:[%s4842_s2 + $0xe4] ss:$16 sps:$4 sm:$0xff]   ;;  %v3104_v2 = vld [vmem:[%s4842_s2 + $0xe0] ss:$16 sps:$4 sm:$0xff]   ;;  %s3767_s14 = sld [smem:[#allocation2]]  ;;  %v60_v44 = vlaneseq  ;;  %v45_v54 = vld [vmem:[%s4841_s1 + $0x8] sm:$0xff] }
  0x10   :  { %v3102_v1 = vld [vmem:[%s4842_s2 + $0x2e4] ss:$16 sps:$4 sm:$0xff]   ;;  %1664 = vmatprep.subr.bf16.mxu0 %v3100_v0  ;;  %v3105_v3 = vld [vmem:[%s4842_s2 + $0x2e0] ss:$16 sps:$4 sm:$0xff]   ;;  %s3772_s17 = sld [smem:[#allocation2 + $0x1]]  ;;  %vm1992_vm0 = vcmask 1041408  }
  0x11   :  { %1705 = vmatprep.subr.bf16.mxu1 %v3102_v1  ;;  %v3106_v4 = vld [vmem:[%s4842_s2 + $0xc4] ss:$16 sps:$4 sm:$0xff]   ;;  %1665 = vmatpush1.bf16.msra.mxu0 %v3104_v2  ;;  %v3110_v6 = vld [vmem:[%s4842_s2 + $0xc0] ss:$16 sps:$4 sm:$0xff]   ;;  %v3607_v42 = vmov 1983009808  }
  0x12   :  { %1706 = vmatpush1.bf16.msra.mxu1 %v3105_v3  ;;  %v3108_v5 = vld [vmem:[%s4842_s2 + $0x2c4] ss:$16 sps:$4 sm:$0xff]   ;;  %1666 = vmatprep.subr.bf16.mxu0 %v3106_v4  ;;  %v3111_v7 = vld [vmem:[%s4842_s2 + $0x2c0] ss:$16 sps:$4 sm:$0xff]   ;;  %v58_v43 = vunpack.c.l.s4 %v3607_v42  ;;  %v3799_v51 = vshrl.u32 %v60_v44, 7  ;;  %vm2734_vm1 = vcmask 123904  }
  0x13   :  { %1707 = vmatprep.subr.bf16.mxu1 %v3108_v5  ;;  %v3112_v8 = vld [vmem:[%s4842_s2 + $0xa4] ss:$16 sps:$4 sm:$0xff]   ;;  %v3116_v10 = vld [vmem:[%s4842_s2 + $0xa0] ss:$16 sps:$4 sm:$0xff]  }
  0x14   :  { %v3114_v9 = vld [vmem:[%s4842_s2 + $0x2a4] ss:$16 sps:$4 sm:$0xff]   ;;  %v3117_v11 = vld [vmem:[%s4842_s2 + $0x2a0] ss:$16 sps:$4 sm:$0xff]   ;;  %v59_v50 = vunpack.c.0.s8 %v58_v43 }
  0x15   :  { %1667 = vmatpush1.bf16.msra.mxu0 %v3110_v6  ;;  %v3118_v12 = vld [vmem:[%s4842_s2 + $0x84] ss:$16 sps:$4 sm:$0xff]   ;;  %v3122_v14 = vld [vmem:[%s4842_s2 + $0x80] ss:$16 sps:$4 sm:$0xff]   ;;  %v46_v48 = vstv %s3767_s14 }
  0x16   :  { %1708 = vmatpush1.bf16.msra.mxu1 %v3111_v7  ;;  %1668 = vmatprep.subr.bf16.mxu0 %v3112_v8  ;;  %v3120_v13 = vld [vmem:[%s4842_s2 + $0x284] ss:$16 sps:$4 sm:$0xff]   ;;  %v3123_v15 = vld [vmem:[%s4842_s2 + $0x280] ss:$16 sps:$4 sm:$0xff]   ;;  %v49_v53 = vstv %s3772_s17  ;;  %v48_v58 = vsub.f32 %v45_v54, %v46_v48  ;;  %v62_v62 = vsub.s32 %v59_v50, %v3799_v51 }
  0x17   :  { %1709 = vmatprep.subr.bf16.mxu1 %v3114_v9  ;;  %v3124_v16 = vld [vmem:[%s4842_s2 + $0x64] ss:$16 sps:$4 sm:$0xff]   ;;  %v3128_v18 = vld [vmem:[%s4842_s2 + $0x60] ss:$16 sps:$4 sm:$0xff]  }
  0x18   :  { %v3126_v17 = vld [vmem:[%s4842_s2 + $0x264] ss:$16 sps:$4 sm:$0xff]   ;;  %v3129_v19 = vld [vmem:[%s4842_s2 + $0x260] ss:$16 sps:$4 sm:$0xff]   ;;  %v51_v63 = vmul.f32 %v49_v53, %v48_v58 }
  0x19   :  { %1669 = vmatpush1.bf16.msra.mxu0 %v3116_v10  ;;  %v3130_v20 = vld [vmem:[%s4842_s2 + $0x44] ss:$16 sps:$4 sm:$0xff]   ;;  %v3134_v22 = vld [vmem:[%s4842_s2 + $0x40] ss:$16 sps:$4 sm:$0xff]  }
  0x1a   :  { %1710 = vmatpush1.bf16.msra.mxu1 %v3117_v11  ;;  %1670 = vmatprep.subr.bf16.mxu0 %v3118_v12  ;;  %v3132_v21 = vld [vmem:[%s4842_s2 + $0x244] ss:$16 sps:$4 sm:$0xff]   ;;  %v3135_v23 = vld [vmem:[%s4842_s2 + $0x240] ss:$16 sps:$4 sm:$0xff]   ;;  %v53_v7 = vmax.f32 %v51_v63, 0.0 }
  0x1b   :  { %1711 = vmatprep.subr.bf16.mxu1 %v3120_v13  ;;  %v3136_v24 = vld [vmem:[%s4842_s2 + $0x24] ss:$16 sps:$4 sm:$0xff]   ;;  %v3140_v26 = vld [vmem:[%s4842_s2 + $0x20] ss:$16 sps:$4 sm:$0xff]  }
  0x1c   :  { %v3138_v25 = vld [vmem:[%s4842_s2 + $0x224] ss:$16 sps:$4 sm:$0xff]   ;;  %v3141_v27 = vld [vmem:[%s4842_s2 + $0x220] ss:$16 sps:$4 sm:$0xff]  }
  0x1d   :  { %1671 = vmatpush1.bf16.msra.mxu0 %v3122_v14  ;;  %v3142_v28 = vld [vmem:[%s4842_s2 + $0x4] ss:$16 sps:$4 sm:$0xff]   ;;  %v3146_v30 = vld [vmem:[%s4842_s2] ss:$16 sps:$4 sm:$0xff]  }
  0x1e   :  { %1712 = vmatpush1.bf16.msra.mxu1 %v3123_v15  ;;  %1672 = vmatprep.subr.bf16.mxu0 %v3124_v16  ;;  %v3144_v29 = vld [vmem:[%s4842_s2 + $0x204] ss:$16 sps:$4 sm:$0xff]   ;;  %v3147_v31 = vld [vmem:[%s4842_s2 + $0x200] ss:$16 sps:$4 sm:$0xff]   ;;  %v73_v16 = vcombine.high %v53_v7, %v53_v7 }
  0x1f   :  { %1713 = vmatprep.subr.bf16.mxu1 %v3126_v17  ;;  %v3148_v32 = vld [vmem:[%s4842_s2 + $0x1e4] ss:$16 sps:$4 sm:$0xff]   ;;  %v3152_v34 = vld [vmem:[%s4842_s2 + $0x1e0] ss:$16 sps:$4 sm:$0xff]  }
  0x20   :  { %v3150_v33 = vld [vmem:[%s4842_s2 + $0x3e4] ss:$16 sps:$4 sm:$0xff]   ;;  %v3153_v35 = vld [vmem:[%s4842_s2 + $0x3e0] ss:$16 sps:$4 sm:$0xff]  }
  0x21   :  { %1673 = vmatpush1.bf16.msra.mxu0 %v3128_v18  ;;  %v3154_v36 = vld [vmem:[%s4842_s2 + $0x1c4] ss:$16 sps:$4 sm:$0xff]   ;;  %v3158_v38 = vld [vmem:[%s4842_s2 + $0x1c0] ss:$16 sps:$4 sm:$0xff]  }
  0x22   :  { %1714 = vmatpush1.bf16.msra.mxu1 %v3129_v19  ;;  %1674 = vmatprep.subr.bf16.mxu0 %v3130_v20  ;;  %v3156_v37 = vld [vmem:[%s4842_s2 + $0x3c4] ss:$16 sps:$4 sm:$0xff]   ;;  %v3159_v39 = vld [vmem:[%s4842_s2 + $0x3c0] ss:$16 sps:$4 sm:$0xff]  }
  0x23   :  { %1715 = vmatprep.subr.bf16.mxu1 %v3132_v21  ;;  %v3160_v40 = vld [vmem:[%s4842_s2 + $0x1a4] ss:$16 sps:$4 sm:$0xff]   ;;  %v3164_v45 = vld [vmem:[%s4842_s2 + $0x1a0] ss:$16 sps:$4 sm:$0xff]  }
  0x24   :  { %v3162_v41 = vld [vmem:[%s4842_s2 + $0x3a4] ss:$16 sps:$4 sm:$0xff]   ;;  %v3165_v46 = vld [vmem:[%s4842_s2 + $0x3a0] ss:$16 sps:$4 sm:$0xff]  }
  0x25   :  { %1675 = vmatpush1.bf16.msra.mxu0 %v3134_v22  ;;  %v3166_v47 = vld [vmem:[%s4842_s2 + $0x184] ss:$16 sps:$4 sm:$0xff]   ;;  %v3170_v56 = vld [vmem:[%s4842_s2 + $0x180] ss:$16 sps:$4 sm:$0xff]   ;;  %v3863_v22 = vrot.slane %v53_v7, %v62_v62 }
  0x26   :  { %1716 = vmatpush1.bf16.msra.mxu1 %v3135_v23  ;;  %1676 = vmatprep.subr.bf16.mxu0 %v3136_v24  ;;  %v3168_v49 = vld [vmem:[%s4842_s2 + $0x384] ss:$16 sps:$4 sm:$0xff]   ;;  %v3171_v57 = vld [vmem:[%s4842_s2 + $0x380] ss:$16 sps:$4 sm:$0xff]   ;;  %v3865_v23 = vrot.slane %v73_v16, %v62_v62 }
  0x27   :  { %1717 = vmatprep.subr.bf16.mxu1 %v3138_v25  ;;  %v44_v52 = vld [vmem:[%s4841_s1] sm:$0xff] }
  0x28   :  { %v47_v55 = vsub.f32 %v44_v52, %v46_v48  ;;  %v3172_v59 = vld [vmem:[%s4842_s2 + $0x164] ss:$16 sps:$4 sm:$0xff]   ;;  %v3176_v1 = vld [vmem:[%s4842_s2 + $0x160] ss:$16 sps:$4 sm:$0xff]  }
  0x29   :  { %1677 = vmatpush1.bf16.msra.mxu0 %v3140_v26  ;;  %v3174_v60 = vld [vmem:[%s4842_s2 + $0x364] ss:$16 sps:$4 sm:$0xff]   ;;  %v3177_v2 = vld [vmem:[%s4842_s2 + $0x360] ss:$16 sps:$4 sm:$0xff]  }
  0x2a   :  { %1718 = vmatpush1.bf16.msra.mxu1 %v3141_v27  ;;  %1678 = vmatprep.subr.bf16.mxu0 %v3142_v28  ;;  %v50_v61 = vmul.f32 %v49_v53, %v47_v55  ;;  %v3178_v3 = vld [vmem:[%s4842_s2 + $0x144] ss:$16 sps:$4 sm:$0xff]   ;;  %v3182_v10 = vld [vmem:[%s4842_s2 + $0x140] ss:$16 sps:$4 sm:$0xff]   ;;  %v88_v28 = vcombine.high %v3863_v22, %v3863_v22 }
  0x2b   :  { %1719 = vmatprep.subr.bf16.mxu1 %v3144_v29  ;;  %v3180_v4 = vld [vmem:[%s4842_s2 + $0x344] ss:$16 sps:$4 sm:$0xff]   ;;  %v3183_v11 = vld [vmem:[%s4842_s2 + $0x340] ss:$16 sps:$4 sm:$0xff]   ;;  %v89_v29 = vcombine.high %v3865_v23, %v3865_v23 }
  0x2c   :  { %v52_v0 = vmax.f32 %v50_v61, 0.0  ;;  %v3184_v12 = vld [vmem:[%s4842_s2 + $0x124] ss:$16 sps:$4 sm:$0xff]   ;;  %v3188_v18 = vld [vmem:[%s4842_s2 + $0x120] ss:$16 sps:$4 sm:$0xff]  }
  0x2d   :  { %1679 = vmatpush1.bf16.msra.mxu0 %v3146_v30  ;;  %v3186_v13 = vld [vmem:[%s4842_s2 + $0x324] ss:$16 sps:$4 sm:$0xff]   ;;  %v3189_v19 = vld [vmem:[%s4842_s2 + $0x320] ss:$16 sps:$4 sm:$0xff]  }
  0x2e   :  { %1720 = vmatpush1.bf16.msra.mxu1 %v3147_v31  ;;  %1680 = vmatprep.subr.bf16.mxu0 %v3148_v32  ;;  %v63_v5 = vrot.slane %v52_v0, %v62_v62  ;;  %v56_v6 = vcombine.high %v52_v0, %v52_v0  ;;  %v3190_v20 = vld [vmem:[%s4842_s2 + $0x104] ss:$16 sps:$4 sm:$0xff]   ;;  %v3194_v24 = vld [vmem:[%s4842_s2 + $0x100] ss:$16 sps:$4 sm:$0xff]  }
  0x2f   :  { %1721 = vmatprep.subr.bf16.mxu1 %v3150_v33  ;;  %v3192_v21 = vld [vmem:[%s4842_s2 + $0x304] ss:$16 sps:$4 sm:$0xff]   ;;  %v3195_v25 = vld [vmem:[%s4842_s2 + $0x300] ss:$16 sps:$4 sm:$0xff]  }
  0x30   :  { %v71_v8 = vcombine.high %v63_v5, %v63_v5  ;;  %v70_v9 = vrot.slane %v56_v6, %v62_v62  ;;  %v3198_v26 = vld [vmem:[%s4842_s2 + $0x4e4] ss:$16 sps:$4 sm:$0xff]   ;;  %v3883_v30 = vpack.c.bf16 %v63_v5, %v63_v5  ;;  %v3196_v32 = vld [vmem:[%s4842_s2 + $0x4e0] ss:$16 sps:$4 sm:$0xff]  }
  0x31   :  { %1681 = vmatpush2.bf16.msra.mxu0 %v3152_v34  ;;  %v3201_v27 = vld [vmem:[%s4842_s2 + $0x6e4] ss:$16 sps:$4 sm:$0xff]   ;;  %v3199_v33 = vld [vmem:[%s4842_s2 + $0x6e0] ss:$16 sps:$4 sm:$0xff]  }
  0x32   :  { %1722 = vmatpush2.bf16.msra.mxu1 %v3153_v35  ;;  %1682 = vmatprep.subr.bf16.mxu0 %v3154_v36  ;;  %v3845_v14 = vpack.c.bf16 %v71_v8, %v71_v8  ;;  %v72_v15 = vcombine.high %v70_v9, %v70_v9  ;;  %v3885_v31 = vpack.c.bf16 %v70_v9, %v70_v9  ;;  %v3204_v34 = vld [vmem:[%s4842_s2 + $0x4c4] ss:$16 sps:$4 sm:$0xff]   ;;  %v3208_v42 = vld [vmem:[%s4842_s2 + $0x4a0] ss:$16 sps:$4 sm:$0xff]  }
  0x33   :  { %1723 = vmatprep.subr.bf16.mxu1 %v3156_v37  ;;  %v3207_v35 = vld [vmem:[%s4842_s2 + $0x6c4] ss:$16 sps:$4 sm:$0xff]   ;;  %v3899_v36 = vpack.c.bf16 %v88_v28, %v88_v28  ;;  %v3901_v37 = vpack.c.bf16 %v89_v29, %v89_v29  ;;  %v3211_v43 = vld [vmem:[%s4842_s2 + $0x6a0] ss:$16 sps:$4 sm:$0xff]  }
  0x34   :  { %1696 = vmatprep.mubr.bf16.mxu0 %v3845_v14  ;;  %v3848_v17 = vpack.c.bf16 %v72_v15, %v72_v15  ;;  %v3216_v44 = vld [vmem:[%s4842_s2 + $0x484] ss:$16 sps:$4 sm:$0xff]   ;;  %v3220_v50 = vld [vmem:[%s4842_s2 + $0x460] ss:$16 sps:$4 sm:$0xff]  }
  0x35   :  { %1683 = vmatpush2.bf16.msra.mxu0 %v3158_v38  ;;  %v3202_v38 = vld [vmem:[%s4842_s2 + $0x4c0] ss:$16 sps:$4 sm:$0xff]   ;;  %v3222_v48 = vld [vmem:[%s4842_s2 + $0x464] ss:$16 sps:$4 sm:$0xff]  }
  0x36   :  { %1724 = vmatpush2.bf16.msra.mxu1 %v3159_v39  ;;  %1684 = vmatprep.subr.bf16.mxu0 %v3160_v40  ;;  %v3205_v39 = vld [vmem:[%s4842_s2 + $0x6c0] ss:$16 sps:$4 sm:$0xff]   ;;  %v3210_v40 = vld [vmem:[%s4842_s2 + $0x4a4] ss:$16 sps:$4 sm:$0xff]  }
  0x37   :  { %1725 = vmatprep.subr.bf16.mxu1 %v3162_v41  ;;  %1737 = vmatprep.mubr.bf16.mxu1 %v3848_v17  ;;  %v3213_v41 = vld [vmem:[%s4842_s2 + $0x6a4] ss:$16 sps:$4 sm:$0xff]   ;;  %v3223_v52 = vld [vmem:[%s4842_s2 + $0x660] ss:$16 sps:$4 sm:$0xff]  }
  0x38   :  { %v3228_v53 = vld [vmem:[%s4842_s2 + $0x444] ss:$16 sps:$4 sm:$0xff]   ;;  %v3226_v55 = vld [vmem:[%s4842_s2 + $0x440] ss:$16 sps:$4 sm:$0xff]  }
  0x39   :  { %1685 = vmatpush2.bf16.msra.mxu0 %v3164_v45  ;;  %v3219_v45 = vld [vmem:[%s4842_s2 + $0x684] ss:$16 sps:$4 sm:$0xff]   ;;  %v3238_v63 = vld [vmem:[%s4842_s2 + $0x400] ss:$16 sps:$4 sm:$0xff]  }
  0x3a   :  { %1726 = vmatpush2.bf16.msra.mxu1 %v3165_v46  ;;  %1686 = vmatprep.subr.bf16.mxu0 %v3166_v47  ;;  %v3214_v46 = vld [vmem:[%s4842_s2 + $0x480] ss:$16 sps:$4 sm:$0xff]   ;;  %v3231_v54 = vld [vmem:[%s4842_s2 + $0x644] ss:$16 sps:$4 sm:$0xff]  }
  0x3b   :  { %1727 = vmatprep.subr.bf16.mxu1 %v3168_v49  ;;  %v3217_v47 = vld [vmem:[%s4842_s2 + $0x680] ss:$16 sps:$4 sm:$0xff]   ;;  %v3225_v49 = vld [vmem:[%s4842_s2 + $0x664] ss:$16 sps:$4 sm:$0xff]  }
  0x3c   :  { %v3237_v58 = vld [vmem:[%s4842_s2 + $0x624] ss:$16 sps:$4 sm:$0xff]   ;;  %v3241_v0 = vld [vmem:[%s4842_s2 + $0x600] ss:$16 sps:$4 sm:$0xff]  }
  0x3d   :  { %1687 = vmatpush2.bf16.msra.mxu0 %v3170_v56  ;;  %v3229_v56 = vld [vmem:[%s4842_s2 + $0x640] ss:$16 sps:$4 sm:$0xff]   ;;  %v3240_v61 = vld [vmem:[%s4842_s2 + $0x404] ss:$16 sps:$4 sm:$0xff]  }
  0x3e   :  { %1728 = vmatpush2.bf16.msra.mxu1 %v3171_v57  ;;  %1688 = vmatprep.subr.bf16.mxu0 %v3172_v59  ;;  %v3234_v57 = vld [vmem:[%s4842_s2 + $0x424] ss:$16 sps:$4 sm:$0xff]   ;;  %v3232_v59 = vld [vmem:[%s4842_s2 + $0x420] ss:$16 sps:$4 sm:$0xff]  }
  0x3f   :  { %1729 = vmatprep.subr.bf16.mxu1 %v3174_v60  ;;  %v3235_v60 = vld [vmem:[%s4842_s2 + $0x620] ss:$16 sps:$4 sm:$0xff]   ;;  %v3243_v62 = vld [vmem:[%s4842_s2 + $0x604] ss:$16 sps:$4 sm:$0xff]  }
  0x40   :  { %v3252_v5 = vld [vmem:[%s4842_s2 + $0x5c4] ss:$16 sps:$4 sm:$0xff]   ;;  %v3250_v7 = vld [vmem:[%s4842_s2 + $0x5c0] ss:$16 sps:$4 sm:$0xff]  }
  0x41   :  { %1689 = vmatpush2.bf16.msra.mxu0 %v3176_v1  ;;  %v3246_v1 = vld [vmem:[%s4842_s2 + $0x5e4] ss:$16 sps:$4 sm:$0xff]   ;;  %v3253_v8 = vld [vmem:[%s4842_s2 + $0x7c0] ss:$16 sps:$4 sm:$0xff]  }
  0x42   :  { %1730 = vmatpush2.bf16.msra.mxu1 %v3177_v2  ;;  %1690 = vmatprep.subr.bf16.mxu0 %v3178_v3  ;;  %v3249_v2 = vld [vmem:[%s4842_s2 + $0x7e4] ss:$16 sps:$4 sm:$0xff]   ;;  %v3244_v3 = vld [vmem:[%s4842_s2 + $0x5e0] ss:$16 sps:$4 sm:$0xff]  }
  0x43   :  { %1731 = vmatprep.subr.bf16.mxu1 %v3180_v4  ;;  %v3247_v4 = vld [vmem:[%s4842_s2 + $0x7e0] ss:$16 sps:$4 sm:$0xff]   ;;  %v3255_v6 = vld [vmem:[%s4842_s2 + $0x7c4] ss:$16 sps:$4 sm:$0xff]  }
  0x44   :  { %v3258_v9 = vld [vmem:[%s4842_s2 + $0x5a4] ss:$16 sps:$4 sm:$0xff]   ;;  %v3262_v16 = vld [vmem:[%s4842_s2 + $0x580] ss:$16 sps:$4 sm:$0xff]  }
  0x45   :  { %1691 = vmatpush2.bf16.msra.mxu0 %v3182_v10  ;;  %v3261_v10 = vld [vmem:[%s4842_s2 + $0x7a4] ss:$16 sps:$4 sm:$0xff]   ;;  %v3277_v28 = vld [vmem:[%s4842_s2 + $0x740] ss:$16 sps:$4 sm:$0xff]  }
  0x46   :  { %1732 = vmatpush2.bf16.msra.mxu1 %v3183_v11  ;;  %1692 = vmatprep.subr.bf16.mxu0 %v3184_v12  ;;  %v3256_v11 = vld [vmem:[%s4842_s2 + $0x5a0] ss:$16 sps:$4 sm:$0xff]   ;;  %v3267_v15 = vld [vmem:[%s4842_s2 + $0x784] ss:$16 sps:$4 sm:$0xff]  }
  0x47   :  { %1733 = vmatprep.subr.bf16.mxu1 %v3186_v13  ;;  %v3259_v12 = vld [vmem:[%s4842_s2 + $0x7a0] ss:$16 sps:$4 sm:$0xff]   ;;  %v3264_v13 = vld [vmem:[%s4842_s2 + $0x584] ss:$16 sps:$4 sm:$0xff]  }
  0x48   :  { %v3282_v29 = vld [vmem:[%s4842_s2 + $0x524] ss:$16 sps:$4 sm:$0xff]  }
  0x49   :  { %1693 = vmatpush2.bf16.msra.mxu0 %v3188_v18  ;;  %v3265_v18 = vld [vmem:[%s4842_s2 + $0x780] ss:$16 sps:$4 sm:$0xff]  }
  0x4a   :  { %1734 = vmatpush2.bf16.msra.mxu1 %v3189_v19  ;;  %1694 = vmatprep.subr.bf16.mxu0 %v3190_v20  ;;  %v3270_v19 = vld [vmem:[%s4842_s2 + $0x564] ss:$16 sps:$4 sm:$0xff]  }
  0x4b   :  { %1735 = vmatprep.subr.bf16.mxu1 %v3192_v21  ;;  %v3273_v20 = vld [vmem:[%s4842_s2 + $0x764] ss:$16 sps:$4 sm:$0xff]   ;;  %v3268_v21 = vld [vmem:[%s4842_s2 + $0x560] ss:$16 sps:$4 sm:$0xff]  }
  0x4d   :  { %1695 = vmatpush2.bf16.msra.mxu0 %v3194_v24  ;;  %v3271_v24 = vld [vmem:[%s4842_s2 + $0x760] ss:$16 sps:$4 sm:$0xff]  }
  0x4e   :  { %1736 = vmatpush2.bf16.msra.mxu1 %v3195_v25  ;;  %1746 = vmatprep.subr.bf16.mxu0 %v3198_v26  ;;  %v3276_v25 = vld [vmem:[%s4842_s2 + $0x544] ss:$16 sps:$4 sm:$0xff]  }
  0x4f   :  { %1787 = vmatprep.subr.bf16.mxu1 %v3201_v27  ;;  %v3279_v26 = vld [vmem:[%s4842_s2 + $0x744] ss:$16 sps:$4 sm:$0xff]   ;;  %v3274_v27 = vld [vmem:[%s4842_s2 + $0x540] ss:$16 sps:$4 sm:$0xff]  }
  0x50   :  { %1697 = vmatmul.mubr.bf16.vlgmr.msra.gmra.mxu0 %v3883_v30 }
  0x51   :  { %1738 = vmatmul.mubr.bf16.vlgmr.msra.gmra.mxu1 %v3885_v31  ;;  %1747 = vmatpush1.bf16.msra.mxu0 %v3196_v32  ;;  %v3285_v32 = vld [vmem:[%s4842_s2 + $0x724] ss:$16 sps:$4 sm:$0xff]  }
  0x52   :  { %1788 = vmatpush1.bf16.msra.mxu1 %v3199_v33  ;;  %1748 = vmatprep.subr.bf16.mxu0 %v3204_v34  ;;  %v3280_v33 = vld [vmem:[%s4842_s2 + $0x520] ss:$16 sps:$4 sm:$0xff]  }
  0x53   :  { %1789 = vmatprep.subr.bf16.mxu1 %v3207_v35  ;;  %1778 = vmatprep.mubr.bf16.mxu0 %v3899_v36  ;;  %v3283_v34 = vld [vmem:[%s4842_s2 + $0x720] ss:$16 sps:$4 sm:$0xff]   ;;  %v3288_v35 = vld [vmem:[%s4842_s2 + $0x504] ss:$16 sps:$4 sm:$0xff]  }
  0x54   :  { %1819 = vmatprep.mubr.bf16.mxu1 %v3901_v37 }
  0x55   :  { %1749 = vmatpush1.bf16.msra.mxu0 %v3202_v38  ;;  %v3291_v38 = vld [vmem:[%s4842_s2 + $0x704] ss:$16 sps:$4 sm:$0xff]  }
  0x56   :  { %1790 = vmatpush1.bf16.msra.mxu1 %v3205_v39  ;;  %1750 = vmatprep.subr.bf16.mxu0 %v3210_v40  ;;  %v3286_v39 = vld [vmem:[%s4842_s2 + $0x500] ss:$16 sps:$4 sm:$0xff]  }
  0x57   :  { %1791 = vmatprep.subr.bf16.mxu1 %v3213_v41  ;;  %v3289_v40 = vld [vmem:[%s4842_s2 + $0x700] ss:$16 sps:$4 sm:$0xff]   ;;  %v3294_v41 = vld [vmem:[%s4842_s2 + $0xec] ss:$16 sps:$4 sm:$0xff]  }
  0x59   :  { %1751 = vmatpush1.bf16.msra.mxu0 %v3208_v42  ;;  %v3297_v42 = vld [vmem:[%s4842_s2 + $0x2ec] ss:$16 sps:$4 sm:$0xff]  }
  0x5a   :  { %1792 = vmatpush1.bf16.msra.mxu1 %v3211_v43  ;;  %1752 = vmatprep.subr.bf16.mxu0 %v3216_v44  ;;  %v4089_v43 = vpack.c.bf16 %v3863_v22, %v3863_v22  ;;  %v4093_v44 = vpack.c.bf16 %v3865_v23, %v3865_v23  ;;  %v3300_v22 = vld [vmem:[%s4842_s2 + $0xcc] ss:$16 sps:$4 sm:$0xff]  }
  0x5b   :  { %1793 = vmatprep.subr.bf16.mxu1 %v3219_v45  ;;  %v3292_v45 = vld [vmem:[%s4842_s2 + $0xe8] ss:$16 sps:$4 sm:$0xff]   ;;  %v3303_v23 = vld [vmem:[%s4842_s2 + $0x2cc] ss:$16 sps:$4 sm:$0xff]  }
  0x5d   :  { %1753 = vmatpush1.bf16.msra.mxu0 %v3214_v46  ;;  %v3295_v46 = vld [vmem:[%s4842_s2 + $0x2e8] ss:$16 sps:$4 sm:$0xff]  }
  0x5e   :  { %1794 = vmatpush1.bf16.msra.mxu1 %v3217_v47  ;;  %1754 = vmatprep.subr.bf16.mxu0 %v3222_v48  ;;  %v3298_v47 = vld [vmem:[%s4842_s2 + $0xc8] ss:$16 sps:$4 sm:$0xff]  }
  0x5f   :  { %1795 = vmatprep.subr.bf16.mxu1 %v3225_v49  ;;  %v3301_v48 = vld [vmem:[%s4842_s2 + $0x2c8] ss:$16 sps:$4 sm:$0xff]   ;;  %v3306_v49 = vld [vmem:[%s4842_s2 + $0xac] ss:$16 sps:$4 sm:$0xff]  }
  0x61   :  { %1755 = vmatpush1.bf16.msra.mxu0 %v3220_v50  ;;  %v3309_v50 = vld [vmem:[%s4842_s2 + $0x2ac] ss:$16 sps:$4 sm:$0xff]  }
  0x62   :  { %1796 = vmatpush1.bf16.msra.mxu1 %v3223_v52  ;;  %1756 = vmatprep.subr.bf16.mxu0 %v3228_v53  ;;  %v3304_v52 = vld [vmem:[%s4842_s2 + $0xa8] ss:$16 sps:$4 sm:$0xff]  }
  0x63   :  { %1797 = vmatprep.subr.bf16.mxu1 %v3231_v54  ;;  %v3307_v53 = vld [vmem:[%s4842_s2 + $0x2a8] ss:$16 sps:$4 sm:$0xff]   ;;  %v3312_v54 = vld [vmem:[%s4842_s2 + $0x8c] ss:$16 sps:$4 sm:$0xff]  }
  0x65   :  { %1757 = vmatpush1.bf16.msra.mxu0 %v3226_v55  ;;  %v3313_v55 = vld [vmem:[%s4842_s2 + $0x288] ss:$16 sps:$4 sm:$0xff]  }
  0x66   :  { %1798 = vmatpush1.bf16.msra.mxu1 %v3229_v56  ;;  %1758 = vmatprep.subr.bf16.mxu0 %v3234_v57  ;;  %v3318_v56 = vld [vmem:[%s4842_s2 + $0x6c] ss:$16 sps:$4 sm:$0xff]  }
  0x67   :  { %1799 = vmatprep.subr.bf16.mxu1 %v3237_v58  ;;  %v3321_v57 = vld [vmem:[%s4842_s2 + $0x26c] ss:$16 sps:$4 sm:$0xff]   ;;  %v3316_v58 = vld [vmem:[%s4842_s2 + $0x68] ss:$16 sps:$4 sm:$0xff]  }
  0x69   :  { %1759 = vmatpush1.bf16.msra.mxu0 %v3232_v59  ;;  %v3319_v59 = vld [vmem:[%s4842_s2 + $0x268] ss:$16 sps:$4 sm:$0xff]  }
  0x6a   :  { %1800 = vmatpush1.bf16.msra.mxu1 %v3235_v60  ;;  %1760 = vmatprep.subr.bf16.mxu0 %v3240_v61  ;;  %v3324_v60 = vld [vmem:[%s4842_s2 + $0x4c] ss:$16 sps:$4 sm:$0xff]  }
  0x6b   :  { %1801 = vmatprep.subr.bf16.mxu1 %v3243_v62  ;;  %v3327_v61 = vld [vmem:[%s4842_s2 + $0x24c] ss:$16 sps:$4 sm:$0xff]   ;;  %v3322_v62 = vld [vmem:[%s4842_s2 + $0x48] ss:$16 sps:$4 sm:$0xff]  }
  0x6d   :  { %1761 = vmatpush1.bf16.msra.mxu0 %v3238_v63  ;;  %v3325_v63 = vld [vmem:[%s4842_s2 + $0x248] ss:$16 sps:$4 sm:$0xff]  }
  0x6e   :  { %1802 = vmatpush1.bf16.msra.mxu1 %v3241_v0  ;;  %1762 = vmatprep.subr.bf16.mxu0 %v3246_v1  ;;  %v3330_v0 = vld [vmem:[%s4842_s2 + $0x2c] ss:$16 sps:$4 sm:$0xff]  }
  0x6f   :  { %1803 = vmatprep.subr.bf16.mxu1 %v3249_v2  ;;  %v3333_v1 = vld [vmem:[%s4842_s2 + $0x22c] ss:$16 sps:$4 sm:$0xff]   ;;  %v3328_v2 = vld [vmem:[%s4842_s2 + $0x28] ss:$16 sps:$4 sm:$0xff]  }
  0x71   :  { %1763 = vmatpush2.bf16.msra.mxu0 %v3244_v3  ;;  %v3331_v3 = vld [vmem:[%s4842_s2 + $0x228] ss:$16 sps:$4 sm:$0xff]  }
  0x72   :  { %1804 = vmatpush2.bf16.msra.mxu1 %v3247_v4  ;;  %1764 = vmatprep.subr.bf16.mxu0 %v3252_v5  ;;  %v3336_v4 = vld [vmem:[%s4842_s2 + $0xc] ss:$16 sps:$4 sm:$0xff]  }
  0x73   :  { %1805 = vmatprep.subr.bf16.mxu1 %v3255_v6  ;;  %v3339_v5 = vld [vmem:[%s4842_s2 + $0x20c] ss:$16 sps:$4 sm:$0xff]   ;;  %v3334_v6 = vld [vmem:[%s4842_s2 + $0x8] ss:$16 sps:$4 sm:$0xff]  }
  0x75   :  { %1765 = vmatpush2.bf16.msra.mxu0 %v3250_v7  ;;  %v3337_v7 = vld [vmem:[%s4842_s2 + $0x208] ss:$16 sps:$4 sm:$0xff]  }
  0x76   :  { %1806 = vmatpush2.bf16.msra.mxu1 %v3253_v8  ;;  %1766 = vmatprep.subr.bf16.mxu0 %v3258_v9  ;;  %v3342_v8 = vld [vmem:[%s4842_s2 + $0x1ec] ss:$16 sps:$4 sm:$0xff]  }
  0x77   :  { %1807 = vmatprep.subr.bf16.mxu1 %v3261_v10  ;;  %v3345_v9 = vld [vmem:[%s4842_s2 + $0x3ec] ss:$16 sps:$4 sm:$0xff]   ;;  %v3340_v10 = vld [vmem:[%s4842_s2 + $0x1e8] ss:$16 sps:$4 sm:$0xff]  }
  0x79   :  { %1767 = vmatpush2.bf16.msra.mxu0 %v3256_v11  ;;  %v3343_v11 = vld [vmem:[%s4842_s2 + $0x3e8] ss:$16 sps:$4 sm:$0xff]  }
  0x7a   :  { %1808 = vmatpush2.bf16.msra.mxu1 %v3259_v12  ;;  %1768 = vmatprep.subr.bf16.mxu0 %v3264_v13  ;;  %v3348_v12 = vld [vmem:[%s4842_s2 + $0x1cc] ss:$16 sps:$4 sm:$0xff]  }
  0x7b   :  { %1809 = vmatprep.subr.bf16.mxu1 %v3267_v15  ;;  %v3351_v13 = vld [vmem:[%s4842_s2 + $0x3cc] ss:$16 sps:$4 sm:$0xff]   ;;  %v3346_v15 = vld [vmem:[%s4842_s2 + $0x1c8] ss:$16 sps:$4 sm:$0xff]  }
  0x7d   :  { %1769 = vmatpush2.bf16.msra.mxu0 %v3262_v16  ;;  %v3349_v16 = vld [vmem:[%s4842_s2 + $0x3c8] ss:$16 sps:$4 sm:$0xff]  }
  0x7e   :  { %1810 = vmatpush2.bf16.msra.mxu1 %v3265_v18  ;;  %1770 = vmatprep.subr.bf16.mxu0 %v3270_v19  ;;  %v3354_v18 = vld [vmem:[%s4842_s2 + $0x1ac] ss:$16 sps:$4 sm:$0xff]  }
  0x7f   :  { %1811 = vmatprep.subr.bf16.mxu1 %v3273_v20  ;;  %v3357_v19 = vld [vmem:[%s4842_s2 + $0x3ac] ss:$16 sps:$4 sm:$0xff]   ;;  %v3352_v20 = vld [vmem:[%s4842_s2 + $0x1a8] ss:$16 sps:$4 sm:$0xff]  }
  0x81   :  { %1771 = vmatpush2.bf16.msra.mxu0 %v3268_v21  ;;  %v3355_v21 = vld [vmem:[%s4842_s2 + $0x3a8] ss:$16 sps:$4 sm:$0xff]  }
  0x82   :  { %1812 = vmatpush2.bf16.msra.mxu1 %v3271_v24  ;;  %1772 = vmatprep.subr.bf16.mxu0 %v3276_v25  ;;  %v3360_v24 = vld [vmem:[%s4842_s2 + $0x18c] ss:$16 sps:$4 sm:$0xff]  }
  0x83   :  { %1813 = vmatprep.subr.bf16.mxu1 %v3279_v26  ;;  %v3363_v25 = vld [vmem:[%s4842_s2 + $0x38c] ss:$16 sps:$4 sm:$0xff]   ;;  %v3358_v26 = vld [vmem:[%s4842_s2 + $0x188] ss:$16 sps:$4 sm:$0xff]  }
  0x85   :  { %1773 = vmatpush2.bf16.msra.mxu0 %v3274_v27  ;;  %v3361_v27 = vld [vmem:[%s4842_s2 + $0x388] ss:$16 sps:$4 sm:$0xff]  }
  0x86   :  { %1814 = vmatpush2.bf16.msra.mxu1 %v3277_v28  ;;  %1774 = vmatprep.subr.bf16.mxu0 %v3282_v29  ;;  %v3366_v28 = vld [vmem:[%s4842_s2 + $0x16c] ss:$16 sps:$4 sm:$0xff]  }
  0x87   :  { %1815 = vmatprep.subr.bf16.mxu1 %v3285_v32  ;;  %v3369_v29 = vld [vmem:[%s4842_s2 + $0x36c] ss:$16 sps:$4 sm:$0xff]   ;;  %v3364_v32 = vld [vmem:[%s4842_s2 + $0x168] ss:$16 sps:$4 sm:$0xff]  }
  0x89   :  { %1775 = vmatpush2.bf16.msra.mxu0 %v3280_v33  ;;  %v3367_v33 = vld [vmem:[%s4842_s2 + $0x368] ss:$16 sps:$4 sm:$0xff]  }
  0x8a   :  { %1816 = vmatpush2.bf16.msra.mxu1 %v3283_v34  ;;  %1776 = vmatprep.subr.bf16.mxu0 %v3288_v35  ;;  %v3372_v34 = vld [vmem:[%s4842_s2 + $0x14c] ss:$16 sps:$4 sm:$0xff]  }
  0x8b   :  { %1817 = vmatprep.subr.bf16.mxu1 %v3291_v38  ;;  %v3375_v35 = vld [vmem:[%s4842_s2 + $0x34c] ss:$16 sps:$4 sm:$0xff]   ;;  %v3370_v38 = vld [vmem:[%s4842_s2 + $0x148] ss:$16 sps:$4 sm:$0xff]  }
  0x8d   :  { %1777 = vmatpush2.bf16.msra.mxu0 %v3286_v39  ;;  %v3373_v39 = vld [vmem:[%s4842_s2 + $0x348] ss:$16 sps:$4 sm:$0xff]  }
  0x8e   :  { %1818 = vmatpush2.bf16.msra.mxu1 %v3289_v40  ;;  %1828 = vmatprep.subr.bf16.mxu0 %v3294_v41  ;;  %v3378_v40 = vld [vmem:[%s4842_s2 + $0x12c] ss:$16 sps:$4 sm:$0xff]  }
  0x8f   :  { %1869 = vmatprep.subr.bf16.mxu1 %v3297_v42  ;;  %v3381_v41 = vld [vmem:[%s4842_s2 + $0x32c] ss:$16 sps:$4 sm:$0xff]   ;;  %v3376_v42 = vld [vmem:[%s4842_s2 + $0x128] ss:$16 sps:$4 sm:$0xff]  }
  0x90   :  { %1779 = vmatmul.mubr.bf16.vlgmr.msra.gmra.mxu0 %v4089_v43 }
  0x91   :  { %1820 = vmatmul.mubr.bf16.vlgmr.msra.gmra.mxu1 %v4093_v44  ;;  %1829 = vmatpush1.bf16.msra.mxu0 %v3292_v45  ;;  %v3379_v45 = vld [vmem:[%s4842_s2 + $0x328] ss:$16 sps:$4 sm:$0xff]  }
  0x92   :  { %1870 = vmatpush1.bf16.msra.mxu1 %v3295_v46  ;;  %1830 = vmatprep.subr.bf16.mxu0 %v3300_v22  ;;  %v3384_v46 = vld [vmem:[%s4842_s2 + $0x10c] ss:$16 sps:$4 sm:$0xff]  }
  0x93   :  { %1871 = vmatprep.subr.bf16.mxu1 %v3303_v23  ;;  %1860 = vmatprep.mubr.bf16.mxu0 %v3845_v14  ;;  %v3315_v14 = vld [vmem:[%s4842_s2 + $0x28c] ss:$16 sps:$4 sm:$0xff]   ;;  %v3382_v23 = vld [vmem:[%s4842_s2 + $0x108] ss:$16 sps:$4 sm:$0xff]  }
  0x94   :  { %1901 = vmatprep.mubr.bf16.mxu1 %v3848_v17  ;;  %v3310_v17 = vld [vmem:[%s4842_s2 + $0x88] ss:$16 sps:$4 sm:$0xff]   ;;  %v3387_v22 = vld [vmem:[%s4842_s2 + $0x30c] ss:$16 sps:$4 sm:$0xff]  }
  0x95   :  { %1831 = vmatpush1.bf16.msra.mxu0 %v3298_v47  ;;  %v3385_v47 = vld [vmem:[%s4842_s2 + $0x308] ss:$16 sps:$4 sm:$0xff]  }
  0x96   :  { %1872 = vmatpush1.bf16.msra.mxu1 %v3301_v48  ;;  %1832 = vmatprep.subr.bf16.mxu0 %v3306_v49  ;;  %v3390_v48 = vld [vmem:[%s4842_s2 + $0x4ec] ss:$16 sps:$4 sm:$0xff]  }
  0x97   :  { %1873 = vmatprep.subr.bf16.mxu1 %v3309_v50  ;;  %v3393_v49 = vld [vmem:[%s4842_s2 + $0x6ec] ss:$16 sps:$4 sm:$0xff]   ;;  %v3388_v50 = vld [vmem:[%s4842_s2 + $0x4e8] ss:$16 sps:$4 sm:$0xff]  }
  0x99   :  { %1833 = vmatpush1.bf16.msra.mxu0 %v3304_v52  ;;  %v3391_v52 = vld [vmem:[%s4842_s2 + $0x6e8] ss:$16 sps:$4 sm:$0xff]  }
  0x9a   :  { %1874 = vmatpush1.bf16.msra.mxu1 %v3307_v53  ;;  %1834 = vmatprep.subr.bf16.mxu0 %v3312_v54  ;;  %v3396_v53 = vld [vmem:[%s4842_s2 + $0x4cc] ss:$16 sps:$4 sm:$0xff]  }
  0x9b   :  { %1875 = vmatprep.subr.bf16.mxu1 %v3315_v14  ;;  %v3399_v54 = vld [vmem:[%s4842_s2 + $0x6cc] ss:$16 sps:$4 sm:$0xff]   ;;  %v3394_v14 = vld [vmem:[%s4842_s2 + $0x4c8] ss:$16 sps:$4 sm:$0xff]  }
  0x9d   :  { %1835 = vmatpush1.bf16.msra.mxu0 %v3310_v17  ;;  %v3397_v17 = vld [vmem:[%s4842_s2 + $0x6c8] ss:$16 sps:$4 sm:$0xff]  }
  0x9e   :  { %1876 = vmatpush1.bf16.msra.mxu1 %v3313_v55  ;;  %1836 = vmatprep.subr.bf16.mxu0 %v3318_v56  ;;  %v3402_v55 = vld [vmem:[%s4842_s2 + $0x4ac] ss:$16 sps:$4 sm:$0xff]   ;;  %v3403_v56 = vld [vmem:[%s4842_s2 + $0x6a8] ss:$16 sps:$4 sm:$0xff]  }
  0x9f   :  { %1877 = vmatprep.subr.bf16.mxu1 %v3321_v57  ;;  %v3408_v57 = vld [vmem:[%s4842_s2 + $0x48c] ss:$16 sps:$4 sm:$0xff]  }
  0xa1   :  { %1837 = vmatpush1.bf16.msra.mxu0 %v3316_v58  ;;  %v3409_v58 = vld [vmem:[%s4842_s2 + $0x688] ss:$16 sps:$4 sm:$0xff]  }
  0xa2   :  { %1878 = vmatpush1.bf16.msra.mxu1 %v3319_v59  ;;  %1838 = vmatprep.subr.bf16.mxu0 %v3324_v60  ;;  %v3414_v59 = vld [vmem:[%s4842_s2 + $0x46c] ss:$16 sps:$4 sm:$0xff]  }
  0xa3   :  { %1879 = vmatprep.subr.bf16.mxu1 %v3327_v61  ;;  %v3417_v60 = vld [vmem:[%s4842_s2 + $0x66c] ss:$16 sps:$4 sm:$0xff]   ;;  %v3412_v61 = vld [vmem:[%s4842_s2 + $0x468] ss:$16 sps:$4 sm:$0xff]  }
  0xa5   :  { %1839 = vmatpush1.bf16.msra.mxu0 %v3322_v62  ;;  %v3415_v62 = vld [vmem:[%s4842_s2 + $0x668] ss:$16 sps:$4 sm:$0xff]  }
  0xa6   :  { %1880 = vmatpush1.bf16.msra.mxu1 %v3325_v63  ;;  %1840 = vmatprep.subr.bf16.mxu0 %v3330_v0  ;;  %v3420_v63 = vld [vmem:[%s4842_s2 + $0x44c] ss:$16 sps:$4 sm:$0xff]  }
  0xa7   :  { %1881 = vmatprep.subr.bf16.mxu1 %v3333_v1  ;;  %v3423_v0 = vld [vmem:[%s4842_s2 + $0x64c] ss:$16 sps:$4 sm:$0xff]   ;;  %v3418_v1 = vld [vmem:[%s4842_s2 + $0x448] ss:$16 sps:$4 sm:$0xff]  }
  0xa9   :  { %1841 = vmatpush1.bf16.msra.mxu0 %v3328_v2  ;;  %v3421_v2 = vld [vmem:[%s4842_s2 + $0x648] ss:$16 sps:$4 sm:$0xff]  }
  0xaa   :  { %1882 = vmatpush1.bf16.msra.mxu1 %v3331_v3  ;;  %1842 = vmatprep.subr.bf16.mxu0 %v3336_v4  ;;  %v3426_v3 = vld [vmem:[%s4842_s2 + $0x42c] ss:$16 sps:$4 sm:$0xff]  }
  0xab   :  { %1883 = vmatprep.subr.bf16.mxu1 %v3339_v5  ;;  %v3429_v4 = vld [vmem:[%s4842_s2 + $0x62c] ss:$16 sps:$4 sm:$0xff]   ;;  %v3424_v5 = vld [vmem:[%s4842_s2 + $0x428] ss:$16 sps:$4 sm:$0xff]  }
  0xad   :  { %1843 = vmatpush1.bf16.msra.mxu0 %v3334_v6  ;;  %v3427_v6 = vld [vmem:[%s4842_s2 + $0x628] ss:$16 sps:$4 sm:$0xff]  }
  0xae   :  { %1884 = vmatpush1.bf16.msra.mxu1 %v3337_v7  ;;  %1844 = vmatprep.subr.bf16.mxu0 %v3342_v8  ;;  %v3432_v7 = vld [vmem:[%s4842_s2 + $0x40c] ss:$16 sps:$4 sm:$0xff]  }
  0xaf   :  { %1885 = vmatprep.subr.bf16.mxu1 %v3345_v9  ;;  %v3435_v8 = vld [vmem:[%s4842_s2 + $0x60c] ss:$16 sps:$4 sm:$0xff]   ;;  %v3430_v9 = vld [vmem:[%s4842_s2 + $0x408] ss:$16 sps:$4 sm:$0xff]  }
  0xb1   :  { %1845 = vmatpush2.bf16.msra.mxu0 %v3340_v10  ;;  %v3433_v10 = vld [vmem:[%s4842_s2 + $0x608] ss:$16 sps:$4 sm:$0xff]  }
  0xb2   :  { %1886 = vmatpush2.bf16.msra.mxu1 %v3343_v11  ;;  %1846 = vmatprep.subr.bf16.mxu0 %v3348_v12  ;;  %v3438_v11 = vld [vmem:[%s4842_s2 + $0x5ec] ss:$16 sps:$4 sm:$0xff]  }
  0xb3   :  { %1887 = vmatprep.subr.bf16.mxu1 %v3351_v13  ;;  %v3441_v12 = vld [vmem:[%s4842_s2 + $0x7ec] ss:$16 sps:$4 sm:$0xff]   ;;  %v3436_v13 = vld [vmem:[%s4842_s2 + $0x5e8] ss:$16 sps:$4 sm:$0xff]  }
  0xb5   :  { %1847 = vmatpush2.bf16.msra.mxu0 %v3346_v15  ;;  %v3439_v15 = vld [vmem:[%s4842_s2 + $0x7e8] ss:$16 sps:$4 sm:$0xff]  }
  0xb6   :  { %1888 = vmatpush2.bf16.msra.mxu1 %v3349_v16  ;;  %1848 = vmatprep.subr.bf16.mxu0 %v3354_v18  ;;  %v3444_v16 = vld [vmem:[%s4842_s2 + $0x5cc] ss:$16 sps:$4 sm:$0xff]  }
  0xb7   :  { %1889 = vmatprep.subr.bf16.mxu1 %v3357_v19  ;;  %v3447_v18 = vld [vmem:[%s4842_s2 + $0x7cc] ss:$16 sps:$4 sm:$0xff]   ;;  %v3442_v19 = vld [vmem:[%s4842_s2 + $0x5c8] ss:$16 sps:$4 sm:$0xff]  }
  0xb9   :  { %1849 = vmatpush2.bf16.msra.mxu0 %v3352_v20  ;;  %v3445_v20 = vld [vmem:[%s4842_s2 + $0x7c8] ss:$16 sps:$4 sm:$0xff]  }
  0xba   :  { %1890 = vmatpush2.bf16.msra.mxu1 %v3355_v21  ;;  %1850 = vmatprep.subr.bf16.mxu0 %v3360_v24  ;;  %v3450_v21 = vld [vmem:[%s4842_s2 + $0x5ac] ss:$16 sps:$4 sm:$0xff]  }
  0xbb   :  { %1891 = vmatprep.subr.bf16.mxu1 %v3363_v25  ;;  %v3453_v24 = vld [vmem:[%s4842_s2 + $0x7ac] ss:$16 sps:$4 sm:$0xff]   ;;  %v3448_v25 = vld [vmem:[%s4842_s2 + $0x5a8] ss:$16 sps:$4 sm:$0xff]  }
  0xbd   :  { %1851 = vmatpush2.bf16.msra.mxu0 %v3358_v26  ;;  %v3451_v26 = vld [vmem:[%s4842_s2 + $0x7a8] ss:$16 sps:$4 sm:$0xff]  }
  0xbe   :  { %1892 = vmatpush2.bf16.msra.mxu1 %v3361_v27  ;;  %1852 = vmatprep.subr.bf16.mxu0 %v3366_v28  ;;  %v3456_v27 = vld [vmem:[%s4842_s2 + $0x58c] ss:$16 sps:$4 sm:$0xff]  }
  0xbf   :  { %1893 = vmatprep.subr.bf16.mxu1 %v3369_v29  ;;  %v3459_v28 = vld [vmem:[%s4842_s2 + $0x78c] ss:$16 sps:$4 sm:$0xff]   ;;  %v3454_v29 = vld [vmem:[%s4842_s2 + $0x588] ss:$16 sps:$4 sm:$0xff]  }
  0xc1   :  { %1853 = vmatpush2.bf16.msra.mxu0 %v3364_v32  ;;  %v3457_v32 = vld [vmem:[%s4842_s2 + $0x788] ss:$16 sps:$4 sm:$0xff]  }
  0xc2   :  { %1894 = vmatpush2.bf16.msra.mxu1 %v3367_v33  ;;  %1854 = vmatprep.subr.bf16.mxu0 %v3372_v34  ;;  %v3462_v33 = vld [vmem:[%s4842_s2 + $0x56c] ss:$16 sps:$4 sm:$0xff]  }
  0xc3   :  { %1895 = vmatprep.subr.bf16.mxu1 %v3375_v35  ;;  %v3465_v34 = vld [vmem:[%s4842_s2 + $0x76c] ss:$16 sps:$4 sm:$0xff]   ;;  %v3460_v35 = vld [vmem:[%s4842_s2 + $0x568] ss:$16 sps:$4 sm:$0xff]  }
  0xc5   :  { %1855 = vmatpush2.bf16.msra.mxu0 %v3370_v38  ;;  %v3463_v38 = vld [vmem:[%s4842_s2 + $0x768] ss:$16 sps:$4 sm:$0xff]  }
  0xc6   :  { %1896 = vmatpush2.bf16.msra.mxu1 %v3373_v39  ;;  %1856 = vmatprep.subr.bf16.mxu0 %v3378_v40  ;;  %v3468_v39 = vld [vmem:[%s4842_s2 + $0x54c] ss:$16 sps:$4 sm:$0xff]  }
  0xc7   :  { %1897 = vmatprep.subr.bf16.mxu1 %v3381_v41  ;;  %v3471_v40 = vld [vmem:[%s4842_s2 + $0x74c] ss:$16 sps:$4 sm:$0xff]   ;;  %v3466_v41 = vld [vmem:[%s4842_s2 + $0x548] ss:$16 sps:$4 sm:$0xff]  }
  0xc9   :  { %1857 = vmatpush2.bf16.msra.mxu0 %v3376_v42  ;;  %v3469_v42 = vld [vmem:[%s4842_s2 + $0x748] ss:$16 sps:$4 sm:$0xff]  }
  0xca   :  { %1898 = vmatpush2.bf16.msra.mxu1 %v3379_v45  ;;  %1858 = vmatprep.subr.bf16.mxu0 %v3384_v46  ;;  %v3474_v45 = vld [vmem:[%s4842_s2 + $0x52c] ss:$16 sps:$4 sm:$0xff]  }
  0xcb   :  { %1899 = vmatprep.subr.bf16.mxu1 %v3387_v22  ;;  %v3477_v46 = vld [vmem:[%s4842_s2 + $0x72c] ss:$16 sps:$4 sm:$0xff]   ;;  %v3472_v22 = vld [vmem:[%s4842_s2 + $0x528] ss:$16 sps:$4 sm:$0xff]  }
  0xcd   :  { %1859 = vmatpush2.bf16.msra.mxu0 %v3382_v23  ;;  %v3475_v23 = vld [vmem:[%s4842_s2 + $0x728] ss:$16 sps:$4 sm:$0xff]  }
  0xce   :  { %1900 = vmatpush2.bf16.msra.mxu1 %v3385_v47  ;;  %1910 = vmatprep.subr.bf16.mxu0 %v3390_v48  ;;  %v3480_v47 = vld [vmem:[%s4842_s2 + $0x50c] ss:$16 sps:$4 sm:$0xff]  }
  0xcf   :  { %1951 = vmatprep.subr.bf16.mxu1 %v3393_v49  ;;  %v3483_v48 = vld [vmem:[%s4842_s2 + $0x70c] ss:$16 sps:$4 sm:$0xff]   ;;  %v3478_v49 = vld [vmem:[%s4842_s2 + $0x508] ss:$16 sps:$4 sm:$0xff]  }
  0xd0   :  { %1861 = vmatmul.mubr.bf16.vlgmr.msra.gmra.mxu0 %v3883_v30  ;;  %v3405_v30 = vld [vmem:[%s4842_s2 + $0x6ac] ss:$16 sps:$4 sm:$0xff]  }
  0xd1   :  { %1902 = vmatmul.mubr.bf16.vlgmr.msra.gmra.mxu1 %v3885_v31  ;;  %1911 = vmatpush1.bf16.msra.mxu0 %v3388_v50  ;;  %v3400_v31 = vld [vmem:[%s4842_s2 + $0x4a8] ss:$16 sps:$4 sm:$0xff]  }
  0xd2   :  { %1952 = vmatpush1.bf16.msra.mxu1 %v3391_v52  ;;  %1912 = vmatprep.subr.bf16.mxu0 %v3396_v53  ;;  %v3481_v50 = vld [vmem:[%s4842_s2 + $0x708] ss:$16 sps:$4 sm:$0xff]   ;;  %v366_v52 = vsub.s32 0, %v3799_v51  ;;  %v4485_v53 = vld [vmem:[%s4843_s3] sm:$0xf] }
  0xd3   :  { %1953 = vmatprep.subr.bf16.mxu1 %v3399_v54  ;;  %1942 = vmatprep.mubr.bf16.mxu0 %v3899_v36  ;;  %v3411_v36 = vld [vmem:[%s4842_s2 + $0x68c] ss:$16 sps:$4 sm:$0xff]  }
  0xd4   :  { %1983 = vmatprep.mubr.bf16.mxu1 %v3901_v37  ;;  %v3406_v37 = vld [vmem:[%s4842_s2 + $0x488] ss:$16 sps:$4 sm:$0xff]   ;;  %v3486_v54 = vld [vmem:[%s4844_s4 + $0x74] ss:$8 sps:$4 sm:$0xff]  }
  0xd5   :  { %1913 = vmatpush1.bf16.msra.mxu0 %v3394_v14  ;;  %v367_v14 = vrot.slane %v4485_v53, %v366_v52 }
  0xd6   :  { %1954 = vmatpush1.bf16.msra.mxu1 %v3397_v17  ;;  %1914 = vmatprep.subr.bf16.mxu0 %v3402_v55  ;;  %v3484_v17 = vld [vmem:[%s4844_s4 + $0x70] ss:$8 sps:$4 sm:$0xff]   ;;  %v3489_v55 = vld [vmem:[%s4844_s4 + $0x64] ss:$8 sps:$4 sm:$0xff]  }
  0xd7   :  { %1955 = vmatprep.subr.bf16.mxu1 %v3405_v30 }
  0xd9   :  { %1915 = vmatpush1.bf16.msra.mxu0 %v3400_v31 }
  0xda   :  { %1956 = vmatpush1.bf16.msra.mxu1 %v3403_v56  ;;  %1916 = vmatprep.subr.bf16.mxu0 %v3408_v57  ;;  %v3487_v57 = vld [vmem:[%s4844_s4 + $0x60] ss:$8 sps:$4 sm:$0xff]  }
  0xdb   :  { %1957 = vmatprep.subr.bf16.mxu1 %v3411_v36 }
  0xdd   :  { %1917 = vmatpush1.bf16.msra.mxu0 %v3406_v37 }
  0xde   :  { %1958 = vmatpush1.bf16.msra.mxu1 %v3409_v58  ;;  %1918 = vmatprep.subr.bf16.mxu0 %v3414_v59  ;;  %v3492_v58 = vld [vmem:[%s4844_s4 + $0x54] ss:$8 sps:$4 sm:$0xff]  }
  0xdf   :  { %1959 = vmatprep.subr.bf16.mxu1 %v3417_v60 }
  0xe1   :  { %1919 = vmatpush1.bf16.msra.mxu0 %v3412_v61 }
  0xe2   :  { %1960 = vmatpush1.bf16.msra.mxu1 %v3415_v62  ;;  %1920 = vmatprep.subr.bf16.mxu0 %v3420_v63  ;;  %v3495_v63 = vld [vmem:[%s4844_s4 + $0x44] ss:$8 sps:$4 sm:$0xff]  }
  0xe3   :  { %1961 = vmatprep.subr.bf16.mxu1 %v3423_v0  ;;  %v3532_v0 = vld [vmem:[%s4844_s4 + $0x170] ss:$8 sps:$4 sm:$0xff]  }
  0xe5   :  { %1921 = vmatpush1.bf16.msra.mxu0 %v3418_v1  ;;  %v3534_v1 = vld [vmem:[%s4844_s4 + $0x174] ss:$8 sps:$4 sm:$0xff]  }
  0xe6   :  { %1962 = vmatpush1.bf16.msra.mxu1 %v3421_v2  ;;  %1922 = vmatprep.subr.bf16.mxu0 %v3426_v3  ;;  %v3537_v2 = vld [vmem:[%s4844_s4 + $0x164] ss:$8 sps:$4 sm:$0xff]   ;;  %v3493_v3 = vld [vmem:[%s4844_s4 + $0x40] ss:$8 sps:$4 sm:$0xff]  }
  0xe7   :  { %1963 = vmatprep.subr.bf16.mxu1 %v3429_v4  ;;  %v3535_v4 = vld [vmem:[%s4844_s4 + $0x160] ss:$8 sps:$4 sm:$0xff]  }
  0xe9   :  { %1923 = vmatpush1.bf16.msra.mxu0 %v3424_v5  ;;  %v3498_v5 = vld [vmem:[%s4844_s4 + $0x34] ss:$8 sps:$4 sm:$0xff]  }
  0xea   :  { %1964 = vmatpush1.bf16.msra.mxu1 %v3427_v6  ;;  %1924 = vmatprep.subr.bf16.mxu0 %v3432_v7  ;;  %v3540_v6 = vld [vmem:[%s4844_s4 + $0x154] ss:$8 sps:$4 sm:$0xff]   ;;  %v3496_v7 = vld [vmem:[%s4844_s4 + $0x30] ss:$8 sps:$4 sm:$0xff]  }
  0xeb   :  { %1965 = vmatprep.subr.bf16.mxu1 %v3435_v8  ;;  %v3538_v8 = vld [vmem:[%s4844_s4 + $0x150] ss:$8 sps:$4 sm:$0xff]  }
  0xed   :  { %1925 = vmatpush1.bf16.msra.mxu0 %v3430_v9  ;;  %v3501_v9 = vld [vmem:[%s4844_s4 + $0x24] ss:$8 sps:$4 sm:$0xff]  }
  0xee   :  { %1966 = vmatpush1.bf16.msra.mxu1 %v3433_v10  ;;  %1926 = vmatprep.subr.bf16.mxu0 %v3438_v11  ;;  %v3543_v10 = vld [vmem:[%s4844_s4 + $0x144] ss:$8 sps:$4 sm:$0xff]   ;;  %v3499_v11 = vld [vmem:[%s4844_s4 + $0x20] ss:$8 sps:$4 sm:$0xff]  }
  0xef   :  { %1967 = vmatprep.subr.bf16.mxu1 %v3441_v12  ;;  %v3541_v12 = vld [vmem:[%s4844_s4 + $0x140] ss:$8 sps:$4 sm:$0xff]  }
  0xf1   :  { %1927 = vmatpush2.bf16.msra.mxu0 %v3436_v13  ;;  %v3504_v13 = vld [vmem:[%s4844_s4 + $0x14] ss:$8 sps:$4 sm:$0xff]  }
  0xf2   :  { %1968 = vmatpush2.bf16.msra.mxu1 %v3439_v15  ;;  %1928 = vmatprep.subr.bf16.mxu0 %v3444_v16  ;;  %v3502_v15 = vld [vmem:[%s4844_s4 + $0x10] ss:$8 sps:$4 sm:$0xff]   ;;  %v3507_v16 = vld [vmem:[%s4844_s4 + $0x4] ss:$8 sps:$4 sm:$0xff]  }
  0xf3   :  { %1969 = vmatprep.subr.bf16.mxu1 %v3447_v18  ;;  %v3505_v18 = vld [vmem:[%s4844_s4] ss:$8 sps:$4 sm:$0xff]  }
  0xf5   :  { %1929 = vmatpush2.bf16.msra.mxu0 %v3442_v19  ;;  %v3510_v19 = vld [vmem:[%s4844_s4 + $0xf4] ss:$8 sps:$4 sm:$0xff]  }
  0xf6   :  { %1970 = vmatpush2.bf16.msra.mxu1 %v3445_v20  ;;  %1930 = vmatprep.subr.bf16.mxu0 %v3450_v21  ;;  %v3508_v20 = vld [vmem:[%s4844_s4 + $0xf0] ss:$8 sps:$4 sm:$0xff]   ;;  %v3513_v21 = vld [vmem:[%s4844_s4 + $0xe4] ss:$8 sps:$4 sm:$0xff]  }
  0xf7   :  { %1971 = vmatprep.subr.bf16.mxu1 %v3453_v24  ;;  %v3511_v24 = vld [vmem:[%s4844_s4 + $0xe0] ss:$8 sps:$4 sm:$0xff]  }
  0xf9   :  { %1931 = vmatpush2.bf16.msra.mxu0 %v3448_v25  ;;  %v3516_v25 = vld [vmem:[%s4844_s4 + $0xd4] ss:$8 sps:$4 sm:$0xff]  }
  0xfa   :  { %1972 = vmatpush2.bf16.msra.mxu1 %v3451_v26  ;;  %1932 = vmatprep.subr.bf16.mxu0 %v3456_v27  ;;  %v3514_v26 = vld [vmem:[%s4844_s4 + $0xd0] ss:$8 sps:$4 sm:$0xff]   ;;  %v3519_v27 = vld [vmem:[%s4844_s4 + $0xc4] ss:$8 sps:$4 sm:$0xff]  }
  0xfb   :  { %1973 = vmatprep.subr.bf16.mxu1 %v3459_v28  ;;  %v3517_v28 = vld [vmem:[%s4844_s4 + $0xc0] ss:$8 sps:$4 sm:$0xff]  }
  0xfd   :  { %1933 = vmatpush2.bf16.msra.mxu0 %v3454_v29  ;;  %v3522_v29 = vld [vmem:[%s4844_s4 + $0xb4] ss:$8 sps:$4 sm:$0xff]  }
  0xfe   :  { %1974 = vmatpush2.bf16.msra.mxu1 %v3457_v32  ;;  %1934 = vmatprep.subr.bf16.mxu0 %v3462_v33  ;;  %v3520_v32 = vld [vmem:[%s4844_s4 + $0xb0] ss:$8 sps:$4 sm:$0xff]   ;;  %v3525_v33 = vld [vmem:[%s4844_s4 + $0xa4] ss:$8 sps:$4 sm:$0xff]  }
  0xff   :  { %1975 = vmatprep.subr.bf16.mxu1 %v3465_v34  ;;  %v3523_v34 = vld [vmem:[%s4844_s4 + $0xa0] ss:$8 sps:$4 sm:$0xff]  }
 0x101   :  { %1935 = vmatpush2.bf16.msra.mxu0 %v3460_v35  ;;  %v3528_v35 = vld [vmem:[%s4844_s4 + $0x94] ss:$8 sps:$4 sm:$0xff]  }
 0x102   :  { %1976 = vmatpush2.bf16.msra.mxu1 %v3463_v38  ;;  %1936 = vmatprep.subr.bf16.mxu0 %v3468_v39  ;;  %v370_v38 = vsub.s32 1, %v3799_v51  ;;  %v3526_v39 = vld [vmem:[%s4844_s4 + $0x90] ss:$8 sps:$4 sm:$0xff]  }
 0x103   :  { %1977 = vmatprep.subr.bf16.mxu1 %v3471_v40  ;;  %v3531_v40 = vld [vmem:[%s4844_s4 + $0x84] ss:$8 sps:$4 sm:$0xff]  }
 0x105   :  { %1937 = vmatpush2.bf16.msra.mxu0 %v3466_v41  ;;  %v371_v41 = vrot.slane %v4485_v53, %v370_v38 }
 0x106   :  { %1978 = vmatpush2.bf16.msra.mxu1 %v3469_v42  ;;  %1938 = vmatprep.subr.bf16.mxu0 %v3474_v45  ;;  %v3529_v42 = vld [vmem:[%s4844_s4 + $0x80] ss:$8 sps:$4 sm:$0xff]  }
 0x107   :  { %1979 = vmatprep.subr.bf16.mxu1 %v3477_v46 }
 0x109   :  { %1939 = vmatpush2.bf16.msra.mxu0 %v3472_v22 }
 0x10a   :  { %1980 = vmatpush2.bf16.msra.mxu1 %v3475_v23  ;;  %1940 = vmatprep.subr.bf16.mxu0 %v3480_v47 }
 0x10b   :  { %1981 = vmatprep.subr.bf16.mxu1 %v3483_v48 }
 0x10d   :  { %1941 = vmatpush2.bf16.msra.mxu0 %v3478_v49 }
 0x10e   :  { %1982 = vmatpush2.bf16.msra.mxu1 %v3481_v50  ;;  %2493 = vmatprep.subr.bf16.mxu0 %v3486_v54  ;;  %v3546_v50 = vld [vmem:[%s4844_s4 + $0x134] ss:$8 sps:$4 sm:$0xff]  }
 0x10f   :  { %2534 = vmatprep.subr.bf16.mxu1 %v3534_v1 }
 0x110   :  { %v1698_v30 = vpop.f32.mrf.mxu0  ;;  %1943 = vmatmul.mubr.bf16.vlgmr.msra.gmra.mxu0 %v4089_v43 }
 0x111   :  { %v1739_v31 = vpop.f32.mrf.mxu1  ;;  %1984 = vmatmul.mubr.bf16.vlgmr.msra.gmra.mxu1 %v4093_v44  ;;  %v1699_v56 = vadd.f32 %v1698_v30, %v367_v14  ;;  %2494 = vmatpush1.bf16.msra.mxu0 %v3484_v17  ;;  %v3490_v44 = vld [vmem:[%s4844_s4 + $0x50] ss:$8 sps:$4 sm:$0xff]  }
 0x112   :  { %v4504_v36 = vpop.f32.mrf.mxu0  ;;  %2495 = vmatprep.subr.bf16.mxu0 %v3489_v55  ;;  %2535 = vmatpush1.bf16.msra.mxu1 %v3532_v0  ;;  %v3544_v17 = vld [vmem:[%s4844_s4 + $0x130] ss:$8 sps:$4 sm:$0xff]  }
 0x113   :  { %v4506_v37 = vpop.f32.mrf.mxu1  ;;  %v4511_v59 = vadd.f32 %v1739_v31, %v1699_v56  ;;  %2536 = vmatprep.subr.bf16.mxu1 %v3537_v2  ;;  %v1701_v45 = vadd.f32 %v4504_v36, %v371_v41 }
 0x114   :  { %v1702_v43 = vpop.f32.mrf.mxu0 }
 0x115   :  { %v1743_v60 = vpop.f32.mrf.mxu1  ;;  %2496 = vmatpush1.bf16.msra.mxu0 %v3487_v57  ;;  %v1742_v23 = vadd.f32 %v4506_v37, %v1701_v45  ;;  %v3561_v45 = vld [vmem:[%s4844_s4 + $0x1e4] ss:$8 sps:$4 sm:$0xff]  }
 0x116   :  { %v1703_v61 = vpop.f32.mrf.mxu0  ;;  %2497 = vmatprep.subr.bf16.mxu0 %v3492_v58  ;;  %2537 = vmatpush1.bf16.msra.mxu1 %v3535_v4 }
 0x117   :  { %v1744_v62 = vpop.f32.mrf.mxu1  ;;  %2538 = vmatprep.subr.bf16.mxu1 %v3540_v6  ;;  %v3547_v61 = vld [vmem:[%s4844_s4 + $0x120] ss:$8 sps:$4 sm:$0xff]   ;;  %v3552_v6 = vld [vmem:[%s4844_s4 + $0x114] ss:$8 sps:$4 sm:$0xff]  }
 0x119   :  { %2498 = vmatpush1.bf16.msra.mxu0 %v3490_v44 }
 0x11a   :  { %2499 = vmatprep.subr.bf16.mxu0 %v3495_v63  ;;  %2539 = vmatpush1.bf16.msra.mxu1 %v3538_v8 }
 0x11b   :  { %2540 = vmatprep.subr.bf16.mxu1 %v3543_v10 }
 0x11d   :  { %2500 = vmatpush1.bf16.msra.mxu0 %v3493_v3 }
 0x11e   :  { %2501 = vmatprep.subr.bf16.mxu0 %v3498_v5  ;;  %2541 = vmatpush1.bf16.msra.mxu1 %v3541_v12 }
 0x11f   :  { %2542 = vmatprep.subr.bf16.mxu1 %v3546_v50 }
 0x121   :  { %2502 = vmatpush1.bf16.msra.mxu0 %v3496_v7  ;;  %v3550_v7 = vld [vmem:[%s4844_s4 + $0x110] ss:$8 sps:$4 sm:$0xff]  }
 0x122   :  { %2503 = vmatprep.subr.bf16.mxu0 %v3501_v9  ;;  %2543 = vmatpush1.bf16.msra.mxu1 %v3544_v17 }
 0x125   :  { %2504 = vmatpush1.bf16.msra.mxu0 %v3499_v11 }
 0x126   :  { %2505 = vmatprep.subr.bf16.mxu0 %v3504_v13 }
 0x129   :  { %2506 = vmatpush1.bf16.msra.mxu0 %v3502_v15 }
 0x12a   :  { %2507 = vmatprep.subr.bf16.mxu0 %v3507_v16 }
 0x12d   :  { %2508 = vmatpush1.bf16.msra.mxu0 %v3505_v18  ;;  %v3555_v18 = vld [vmem:[%s4844_s4 + $0x104] ss:$8 sps:$4 sm:$0xff]  }
 0x12e   :  { %2509 = vmatprep.subr.bf16.mxu0 %v3510_v19  ;;  %v3553_v19 = vld [vmem:[%s4844_s4 + $0x100] ss:$8 sps:$4 sm:$0xff]  }
 0x131   :  { %2510 = vmatpush2.bf16.msra.mxu0 %v3508_v20 }
 0x132   :  { %2511 = vmatprep.subr.bf16.mxu0 %v3513_v21 }
 0x135   :  { %2512 = vmatpush2.bf16.msra.mxu0 %v3511_v24 }
 0x136   :  { %2513 = vmatprep.subr.bf16.mxu0 %v3516_v25 }
 0x139   :  { %2514 = vmatpush2.bf16.msra.mxu0 %v3514_v26 }
 0x13a   :  { %2515 = vmatprep.subr.bf16.mxu0 %v3519_v27 }
 0x13d   :  { %2516 = vmatpush2.bf16.msra.mxu0 %v3517_v28 }
 0x13e   :  { %2517 = vmatprep.subr.bf16.mxu0 %v3522_v29 }
 0x141   :  { %2518 = vmatpush2.bf16.msra.mxu0 %v3520_v32  ;;  %v3558_v32 = vld [vmem:[%s4844_s4 + $0x1f4] ss:$8 sps:$4 sm:$0xff]  }
 0x142   :  { %2519 = vmatprep.subr.bf16.mxu0 %v3525_v33  ;;  %v3556_v33 = vld [vmem:[%s4844_s4 + $0x1f0] ss:$8 sps:$4 sm:$0xff]  }
 0x145   :  { %2520 = vmatpush2.bf16.msra.mxu0 %v3523_v34 }
 0x146   :  { %2521 = vmatprep.subr.bf16.mxu0 %v3528_v35 }
 0x149   :  { %2522 = vmatpush2.bf16.msra.mxu0 %v3526_v39 }
 0x14a   :  { %2523 = vmatprep.subr.bf16.mxu0 %v3531_v40 }
 0x14d   :  { %2524 = vmatpush2.bf16.msra.mxu0 %v3529_v42 }
 0x150   :  { %v1780_v46 = vpop.f32.mrf.mxu0 }
 0x151   :  { %v1821_v22 = vpop.f32.mrf.mxu1  ;;  %v1781_v47 = vadd.f32 %v1780_v46, %v4511_v59  ;;  %v3549_v59 = vld [vmem:[%s4844_s4 + $0x124] ss:$8 sps:$4 sm:$0xff]  }
 0x152   :  { %v1782_v48 = vpop.f32.mrf.mxu0  ;;  %2544 = vmatprep.subr.bf16.mxu1 %v3549_v59 }
 0x153   :  { %v1823_v49 = vpop.f32.mrf.mxu1  ;;  %v4628_v54 = vadd.f32 %v1821_v22, %v1781_v47  ;;  %v1783_v14 = vadd.f32 %v1782_v48, %v1742_v23  ;;  %2545 = vmatpush1.bf16.msra.mxu1 %v3547_v61  ;;  %v3559_v22 = vld [vmem:[%s4844_s4 + $0x1e0] ss:$8 sps:$4 sm:$0xff]   ;;  %v3574_v61 = vld [vmem:[%s4844_s4 + $0x190] ss:$8 sps:$4 sm:$0xff]  }
 0x154   :  { %v1784_v55 = vpop.f32.mrf.mxu0  ;;  %2546 = vmatprep.subr.bf16.mxu1 %v3552_v6 }
 0x155   :  { %v1825_v30 = vpop.f32.mrf.mxu1  ;;  %v1993_v31 = vsel %vm1992_vm0, %v4628_v54, 0.0  ;;  %v2025_v56 = vmul.f32 %v4628_v54, %v4628_v54  ;;  %v4637_v57 = vadd.f32 %v1823_v49, %v1783_v14  ;;  %v3564_v49 = vld [vmem:[%s4844_s4 + $0x1d4] ss:$8 sps:$4 sm:$0xff]   ;;  %v3562_v14 = vld [vmem:[%s4844_s4 + $0x1d0] ss:$8 sps:$4 sm:$0xff]  }
 0x156   :  { %v1994_v36 = vrot.slane %v1993_v31, 4  ;;  %v1785_v37 = vpop.f32.mrf.mxu0  ;;  %v3567_v55 = vld [vmem:[%s4844_s4 + $0x1c4] ss:$8 sps:$4 sm:$0xff]   ;;  %v3565_v30 = vld [vmem:[%s4844_s4 + $0x1c0] ss:$8 sps:$4 sm:$0xff]  }
 0x157   :  { %v1826_v58 = vpop.f32.mrf.mxu1  ;;  %v2029_v43 = vsel %vm1992_vm0, %v2025_v56, 0.0  ;;  %v2000_v60 = vsel %vm1992_vm0, %v4637_v57, 0.0  ;;  %v2026_v44 = vmul.f32 %v4637_v57, %v4637_v57  ;;  %2547 = vmatpush1.bf16.msra.mxu1 %v3550_v7  ;;  %v3568_v56 = vld [vmem:[%s4844_s4 + $0x1b0] ss:$8 sps:$4 sm:$0xff]   ;;  %v3571_v37 = vld [vmem:[%s4844_s4 + $0x1a0] ss:$8 sps:$4 sm:$0xff]  }
 0x158   :  { %v1995_v62 = vadd.f32 %v1994_v36, %v1993_v31  ;;  %v2030_v63 = vrot.slane %v2029_v43, 4  ;;  %v2001_v0 = vrot.slane %v2000_v60, 4  ;;  %2548 = vmatprep.subr.bf16.mxu1 %v3555_v18  ;;  %v3570_v31 = vld [vmem:[%s4844_s4 + $0x1b4] ss:$8 sps:$4 sm:$0xff]   ;;  %v3573_v36 = vld [vmem:[%s4844_s4 + $0x1a4] ss:$8 sps:$4 sm:$0xff]  }
 0x159   :  { %v2036_v1 = vsel %vm1992_vm0, %v2026_v44, 0.0  ;;  %v378_v18 = vsub.s32 3, %v3799_v51 }
 0x15a   :  { %v1996_v2 = vrot.slane %v1995_v62, 2  ;;  %v2031_v3 = vadd.f32 %v2030_v63, %v2029_v43  ;;  %v2002_v4 = vadd.f32 %v2001_v0, %v2000_v60  ;;  %v2037_v5 = vrot.slane %v2036_v1, 4  ;;  %v3576_v60 = vld [vmem:[%s4844_s4 + $0x194] ss:$8 sps:$4 sm:$0xff]   ;;  %v3577_v0 = vld [vmem:[%s4844_s4 + $0x180] ss:$8 sps:$4 sm:$0xff]  }
 0x15b   :  { %2549 = vmatpush1.bf16.msra.mxu1 %v3553_v19  ;;  %v379_v19 = vrot.slane %v4485_v53, %v378_v18 }
 0x15c   :  { %v1997_v8 = vadd.f32 %v1996_v2, %v1995_v62  ;;  %v2032_v9 = vrot.slane %v2031_v3, 2  ;;  %v2003_v10 = vrot.slane %v2002_v4, 2  ;;  %v2038_v11 = vadd.f32 %v2037_v5, %v2036_v1  ;;  %2550 = vmatprep.subr.bf16.mxu1 %v3558_v32 }
 0x15e   :  { %v1998_v12 = vrot.slane %v1997_v8, 1  ;;  %v2033_v13 = vadd.f32 %v2032_v9, %v2031_v3  ;;  %v2004_v15 = vadd.f32 %v2003_v10, %v2002_v4  ;;  %v2039_v16 = vrot.slane %v2038_v11, 2 }
 0x15f   :  { %2551 = vmatpush2.bf16.msra.mxu1 %v3556_v33  ;;  %v374_v4 = vsub.s32 2, %v3799_v51 }
 0x160   :  { %v1999_v20 = vadd.f32 %v1998_v12, %v1997_v8  ;;  %v2034_v21 = vrot.slane %v2033_v13, 1  ;;  %v2005_v24 = vrot.slane %v2004_v15, 1  ;;  %v2040_v25 = vadd.f32 %v2039_v16, %v2038_v11  ;;  %2552 = vmatprep.subr.bf16.mxu1 %v3561_v45 }
 0x161   :  { %v375_v5 = vrot.slane %v4485_v53, %v374_v4 }
 0x162   :  { %v2021_v26 = vmul.f32 0.5, %v1999_v20  ;;  %v2035_v27 = vadd.f32 %v2034_v21, %v2033_v13  ;;  %v2006_v28 = vadd.f32 %v2005_v24, %v2004_v15  ;;  %v2041_v29 = vrot.slane %v2040_v25, 1 }
 0x163   :  { %2553 = vmatpush2.bf16.msra.mxu1 %v3559_v22 }
 0x164   :  { %v2057_v34 = vmul.f32 0.5, %v2035_v27  ;;  %v2061_v35 = vmul.f32 %v2021_v26, %v2021_v26  ;;  %v2022_v39 = vmul.f32 0.5, %v2006_v28  ;;  %v2042_v40 = vadd.f32 %v2041_v29, %v2040_v25  ;;  %2554 = vmatprep.subr.bf16.mxu1 %v3564_v49 }
 0x165   :  { %v2073_v58 = vsub.f32 %v4628_v54, %v2021_v26  ;;  %v3579_v54 = vld [vmem:[%s4844_s4 + $0x184] ss:$8 sps:$4 sm:$0xff]  }
 0x166   :  { %v2065_v41 = vsub.f32 %v2057_v34, %v2061_v35  ;;  %v2062_v42 = vmul.f32 %v2022_v39, %v2022_v39  ;;  %v2058_v46 = vmul.f32 0.5, %v2042_v40  ;;  %v2074_v44 = vsub.f32 %v4637_v57, %v2022_v39 }
 0x167   :  { %2555 = vmatpush2.bf16.msra.mxu1 %v3562_v14 }
 0x168   :  { %v2069_v23 = vmax.f32 %v2065_v41, 0.0  ;;  %v2066_v47 = vsub.f32 %v2058_v46, %v2062_v42  ;;  %2556 = vmatprep.subr.bf16.mxu1 %v3567_v55 }
 0x16a   :  { %v2077_v48 = vadd.f32 1e-05, %v2069_v23  ;;  %v2070_v50 = vmax.f32 %v2066_v47, 0.0 }
 0x16b   :  { %2557 = vmatpush2.bf16.msra.mxu1 %v3565_v30 }
 0x16c   :  { %3580 = vrsqrt.f32 %v2077_v48  ;;  %v2078_v17 = vadd.f32 1e-05, %v2070_v50  ;;  %2558 = vmatprep.subr.bf16.mxu1 %v3570_v31 }
 0x16e   :  { %3582 = vrsqrt.f32 %v2078_v17 }
 0x16f   :  { %2559 = vmatpush2.bf16.msra.mxu1 %v3568_v56 }
 0x170   :  { %2560 = vmatprep.subr.bf16.mxu1 %v3573_v36 }
 0x173   :  { %2561 = vmatpush2.bf16.msra.mxu1 %v3571_v37 }
 0x174   :  { %2562 = vmatprep.subr.bf16.mxu1 %v3576_v60 }
 0x177   :  { %2563 = vmatpush2.bf16.msra.mxu1 %v3574_v61 }
 0x178   :  { %2564 = vmatprep.subr.bf16.mxu1 %v3579_v54 }
 0x179   :  { %v3581_v59 = vpop.eup %3580 }
 0x17a   :  { %v2085_v43 = vmul.f32 %v3581_v59, %v2073_v58 }
 0x17b   :  { %v3583_v62 = vpop.eup %3582  ;;  %2565 = vmatpush2.bf16.msra.mxu1 %v3577_v0 }
 0x17c   :  { %v2086_v63 = vmul.f32 %v3583_v62, %v2074_v44  ;;  %v2089_v1 = vmax.f32 %v2085_v43, 0.0 }
 0x17e   :  { %v2090_v2 = vmax.f32 %v2086_v63, 0.0  ;;  %v2093_v3 = vpack.c.bf16 %v2089_v1, %v2089_v1 }
 0x180   :  { %v2094_v57 = vpack.c.bf16 %v2090_v2, %v2090_v2 }
 0x182   :  { %2525 = vmatprep.mubr.bf16.mxu0 %v2094_v57 }
 0x183   :  { %2526 = vmatmul.mubr.bf16.vlgmr.msra.gmra.mxu0 %v2093_v3 }
 0x190   :  { %v1862_v6 = vpop.f32.mrf.mxu0 }
 0x191   :  { %v1903_v7 = vpop.f32.mrf.mxu1  ;;  %v1863_v8 = vadd.f32 %v1862_v6, %v375_v5 }
 0x192   :  { %v1864_v9 = vpop.f32.mrf.mxu0 }
 0x193   :  { %v1905_v10 = vpop.f32.mrf.mxu1  ;;  %v1904_v11 = vadd.f32 %v1903_v7, %v1863_v8  ;;  %v1865_v20 = vadd.f32 %v1864_v9, %v379_v19 }
 0x194   :  { %v1866_v12 = vpop.f32.mrf.mxu0 }
 0x195   :  { %v1907_v13 = vpop.f32.mrf.mxu1  ;;  %v1906_v25 = vadd.f32 %v1905_v10, %v1865_v20 }
 0x196   :  { %v1867_v15 = vpop.f32.mrf.mxu0 }
 0x197   :  { %v1908_v16 = vpop.f32.mrf.mxu1 }
 0x1d0   :  { %v1944_v21 = vpop.f32.mrf.mxu0 }
 0x1d1   :  { %v1985_v24 = vpop.f32.mrf.mxu1  ;;  %v1945_v26 = vadd.f32 %v1944_v21, %v1904_v11 }
 0x1d2   :  { %v1946_v27 = vpop.f32.mrf.mxu0 }
 0x1d3   :  { %v1987_v28 = vpop.f32.mrf.mxu1  ;;  %v1986_v29 = vadd.f32 %v1985_v24, %v1945_v26  ;;  %v1947_v32 = vadd.f32 %v1946_v27, %v1906_v25 }
 0x1d4   :  { %v1948_v33 = vpop.f32.mrf.mxu0 }
 0x1d5   :  { %v1989_v34 = vpop.f32.mrf.mxu1  ;;  %v2007_v35 = vsel %vm1992_vm0, %v1986_v29, 0.0  ;;  %v2027_v39 = vmul.f32 %v1986_v29, %v1986_v29  ;;  %v1988_v40 = vadd.f32 %v1987_v28, %v1947_v32 }
 0x1d6   :  { %v2008_v41 = vrot.slane %v2007_v35, 4  ;;  %v1949_v42 = vpop.f32.mrf.mxu0  ;;  %v2640_v34 = vld [vmem:[%s4846_s6 + $0x78] sm:$0xff] }
 0x1d7   :  { %v1990_v45 = vpop.f32.mrf.mxu1  ;;  %v2043_v53 = vsel %vm1992_vm0, %v2027_v39, 0.0  ;;  %v2014_v46 = vsel %vm1992_vm0, %v1988_v40, 0.0  ;;  %v2028_v22 = vmul.f32 %v1988_v40, %v1988_v40  ;;  %v2639_v39 = vld [vmem:[%s4846_s6 + $0x70] sm:$0xff]  ;;  %v2653_v42 = vld [vmem:[%s4846_s6 + $0xe0] sm:$0xff] }
 0x1d8   :  { %v2009_v23 = vadd.f32 %v2008_v41, %v2007_v35  ;;  %v2044_v47 = vrot.slane %v2043_v53, 4  ;;  %v2015_v48 = vrot.slane %v2014_v46, 4  ;;  %v2655_v35 = vld [vmem:[%s4846_s6 + $0xf0] sm:$0xff]  ;;  %v2638_v41 = vld [vmem:[%s4846_s6 + $0x68] sm:$0xff]  ;;  %v2637_v45 = vld [vmem:[%s4846_s6 + $0x60] sm:$0xff] }
 0x1d9   :  { %v2050_v49 = vsel %vm1992_vm0, %v2028_v22, 0.0  ;;  %v2651_v22 = vld [vmem:[%s4846_s6 + $0xd0] sm:$0xff] }
 0x1da   :  { %v2010_v50 = vrot.slane %v2009_v23, 2  ;;  %v2045_v14 = vadd.f32 %v2044_v47, %v2043_v53  ;;  %v2016_v17 = vadd.f32 %v2015_v48, %v2014_v46  ;;  %v2051_v55 = vrot.slane %v2050_v49, 4  ;;  %v2652_v53 = vld [vmem:[%s4846_s6 + $0xd8] sm:$0xff]  ;;  %v2650_v47 = vld [vmem:[%s4846_s6 + $0xc8] sm:$0xff] }
 0x1db   :  { %v2636_v46 = vld [vmem:[%s4846_s6 + $0x58] sm:$0xff]  ;;  %v2634_v48 = vld [vmem:[%s4846_s6 + $0x48] sm:$0xff] }
 0x1dc   :  { %v2011_v30 = vadd.f32 %v2010_v50, %v2009_v23  ;;  %v2046_v31 = vrot.slane %v2045_v14, 2  ;;  %v2017_v56 = vrot.slane %v2016_v17, 2  ;;  %v2052_v36 = vadd.f32 %v2051_v55, %v2050_v49  ;;  %v2635_v23 = vld [vmem:[%s4846_s6 + $0x50] sm:$0xff]  ;;  %v2649_v49 = vld [vmem:[%s4846_s6 + $0xc0] sm:$0xff] }
 0x1dd   :  { %v2633_v50 = vld [vmem:[%s4846_s6 + $0x40] sm:$0xff]  ;;  %v2647_v55 = vld [vmem:[%s4846_s6 + $0xb0] sm:$0xff] }
 0x1de   :  { %v2012_v37 = vrot.slane %v2011_v30, 1  ;;  %v2047_v58 = vadd.f32 %v2046_v31, %v2045_v14  ;;  %v2018_v59 = vadd.f32 %v2017_v56, %v2016_v17  ;;  %v2053_v43 = vrot.slane %v2052_v36, 2  ;;  %v2648_v14 = vld [vmem:[%s4846_s6 + $0xb8] sm:$0xff]  ;;  %v2646_v31 = vld [vmem:[%s4846_s6 + $0xa8] sm:$0xff] }
 0x1df   :  { %v2632_v17 = vld [vmem:[%s4846_s6 + $0x38] sm:$0xff]  ;;  %v2630_v56 = vld [vmem:[%s4846_s6 + $0x28] sm:$0xff] }
 0x1e0   :  { %v2013_v60 = vadd.f32 %v2012_v37, %v2011_v30  ;;  %v2048_v44 = vrot.slane %v2047_v58, 1  ;;  %v2019_v61 = vrot.slane %v2018_v59, 1  ;;  %v2054_v62 = vadd.f32 %v2053_v43, %v2052_v36  ;;  %v2631_v30 = vld [vmem:[%s4846_s6 + $0x30] sm:$0xff]  ;;  %v2645_v36 = vld [vmem:[%s4846_s6 + $0xa0] sm:$0xff] }
 0x1e1   :  { %v2629_v37 = vld [vmem:[%s4846_s6 + $0x20] sm:$0xff]  ;;  %v2643_v43 = vld [vmem:[%s4846_s6 + $0x90] sm:$0xff] }
 0x1e2   :  { %v2023_v54 = vmul.f32 0.5, %v2013_v60  ;;  %v2049_v63 = vadd.f32 %v2048_v44, %v2047_v58  ;;  %v2020_v0 = vadd.f32 %v2019_v61, %v2018_v59  ;;  %v2055_v1 = vrot.slane %v2054_v62, 1  ;;  %v2644_v58 = vld [vmem:[%s4846_s6 + $0x98] sm:$0xff]  ;;  %v2627_v60 = vld [vmem:[%s4846_s6 + $0x10] sm:$0xff]  ;;  %v2642_v44 = vld [vmem:[%s4846_s6 + $0x88] sm:$0xff] }
 0x1e3   :  { %v2628_v59 = vld [vmem:[%s4846_s6 + $0x18] sm:$0xff]  ;;  %v2626_v61 = vld [vmem:[%s4846_s6 + $0x8] sm:$0xff] }
 0x1e4   :  { %v2059_v2 = vmul.f32 0.5, %v2049_v63  ;;  %v2063_v57 = vmul.f32 %v2023_v54, %v2023_v54  ;;  %v2024_v3 = vmul.f32 0.5, %v2020_v0  ;;  %v2056_v4 = vadd.f32 %v2055_v1, %v2054_v62  ;;  %v2641_v62 = vld [vmem:[%s4846_s6 + $0x80] sm:$0xff] }
 0x1e5   :  { %v2075_v13 = vsub.f32 %v1986_v29, %v2023_v54  ;;  %v2656_v29 = vld [vmem:[%s4846_s6 + $0xf8] sm:$0xff]  ;;  %v2625_v54 = vld [vmem:[%s4846_s6] sm:$0xff] }
 0x1e6   :  { %v2067_v5 = vsub.f32 %v2059_v2, %v2063_v57  ;;  %v2064_v6 = vmul.f32 %v2024_v3, %v2024_v3  ;;  %v2060_v7 = vmul.f32 0.5, %v2056_v4  ;;  %v2076_v18 = vsub.f32 %v1988_v40, %v2024_v3  ;;  %3063 = vmatprep.subr.mxu0 %v2656_v29  ;;  %v2654_v40 = vld [vmem:[%s4846_s6 + $0xe8] sm:$0xff]  ;;  %v2161_v63 = vld [vmem:[%s4845_s5] sm:$0x3] }
 0x1e7   :  { %3064 = vmatpush3.msra.mxu0 %v2640_v34  ;;  %v2166_v0 = vrot.slane %v2161_v63, %v366_v52  ;;  %v2170_v1 = vrot.slane %v2161_v63, %v370_v38 }
 0x1e8   :  { %v2071_v8 = vmax.f32 %v2067_v5, 0.0  ;;  %v2068_v9 = vsub.f32 %v2060_v7, %v2064_v6  ;;  %3065 = vmatprep.subr.mxu0 %v2655_v35 }
 0x1e9   :  { %3066 = vmatpush3.msra.mxu0 %v2639_v39 }
 0x1ea   :  { %v2079_v10 = vadd.f32 1e-05, %v2071_v8  ;;  %v2072_v11 = vmax.f32 %v2068_v9, 0.0  ;;  %3067 = vmatprep.subr.mxu0 %v2654_v40 }
 0x1eb   :  { %3068 = vmatpush3.msra.mxu0 %v2638_v41 }
 0x1ec   :  { %3584 = vrsqrt.f32 %v2079_v10  ;;  %v2080_v12 = vadd.f32 1e-05, %v2072_v11  ;;  %3069 = vmatprep.subr.mxu0 %v2653_v42 }
 0x1ed   :  { %3070 = vmatpush3.msra.mxu0 %v2637_v45 }
 0x1ee   :  { %3586 = vrsqrt.f32 %v2080_v12  ;;  %3071 = vmatprep.subr.mxu0 %v2652_v53 }
 0x1ef   :  { %3072 = vmatpush3.msra.mxu0 %v2636_v46 }
 0x1f0   :  { %3073 = vmatprep.subr.mxu0 %v2651_v22 }
 0x1f1   :  { %3074 = vmatpush3.msra.mxu0 %v2635_v23 }
 0x1f2   :  { %3075 = vmatprep.subr.mxu0 %v2650_v47 }
 0x1f3   :  { %3076 = vmatpush3.msra.mxu0 %v2634_v48 }
 0x1f4   :  { %3077 = vmatprep.subr.mxu0 %v2649_v49 }
 0x1f5   :  { %3078 = vmatpush3.msra.mxu0 %v2633_v50 }
 0x1f6   :  { %3079 = vmatprep.subr.mxu0 %v2648_v14 }
 0x1f7   :  { %3080 = vmatpush3.msra.mxu0 %v2632_v17 }
 0x1f8   :  { %3081 = vmatprep.subr.mxu0 %v2647_v55 }
 0x1f9   :  { %v3585_v15 = vpop.eup %3584  ;;  %3082 = vmatpush3.msra.mxu0 %v2631_v30 }
 0x1fa   :  { %v2087_v16 = vmul.f32 %v3585_v15, %v2075_v13  ;;  %3083 = vmatprep.subr.mxu0 %v2646_v31 }
 0x1fb   :  { %v3587_v19 = vpop.eup %3586  ;;  %3084 = vmatpush3.msra.mxu0 %v2630_v56 }
 0x1fc   :  { %v2088_v20 = vmul.f32 %v3587_v19, %v2076_v18  ;;  %v2091_v21 = vmax.f32 %v2087_v16, 0.0  ;;  %3085 = vmatprep.subr.mxu0 %v2645_v36 }
 0x1fd   :  { %3086 = vmatpush3.msra.mxu0 %v2629_v37 }
 0x1fe   :  { %v2092_v24 = vmax.f32 %v2088_v20, 0.0  ;;  %v2095_v26 = vpack.c.bf16 %v2091_v21, %v2091_v21  ;;  %3087 = vmatprep.subr.mxu0 %v2644_v58 }
 0x1ff   :  { %3088 = vmatpush3.msra.mxu0 %v2628_v59 }
 0x200   :  { %v2096_v25 = vpack.c.bf16 %v2092_v24, %v2092_v24  ;;  %3089 = vmatprep.subr.mxu0 %v2643_v43 }
 0x201   :  { %3090 = vmatpush3.msra.mxu0 %v2627_v60 }
 0x202   :  { %2566 = vmatprep.mubr.bf16.mxu1 %v2096_v25  ;;  %3091 = vmatprep.subr.mxu0 %v2642_v44 }
 0x203   :  { %2567 = vmatmul.mubr.bf16.vlgmr.msra.gmra.mxu1 %v2095_v26  ;;  %3092 = vmatpush3.msra.mxu0 %v2626_v61 }
 0x204   :  { %3093 = vmatprep.subr.mxu0 %v2641_v62  ;;  %v3062_v62 = vld [vmem:[%s4847_s7] ss:$0 sm:$0xff] }
 0x205   :  { %3094 = vmatpush3.msra.mxu0 %v2625_v54 }
 0x243   :  { %v4721_v27 = vpop.f32.mrf.mxu0 }
 0x244   :  { %v2528_v2 = vadd.f32 %v4721_v27, %v2166_v0 }
 0x245   :  { %v4723_v28 = vpop.f32.mrf.mxu0 }
 0x246   :  { %v2530_v3 = vadd.f32 %v4723_v28, %v2170_v1 }
 0x247   :  { %v2531_v32 = vpop.f32.mrf.mxu0 }
 0x249   :  { %v2532_v33 = vpop.f32.mrf.mxu0 }
 0x2c3   :  { %v2568_v57 = vpop.f32.mrf.mxu1 }
 0x2c4   :  { %v2569_v4 = vadd.f32 %v2568_v57, %v2528_v2 }
 0x2c5   :  { %v2570_v5 = vpop.f32.mrf.mxu1 }
 0x2c6   :  { %v2575_v6 = vsel %vm1992_vm0, %v2569_v4, 0.0  ;;  %v2591_v7 = vmul.f32 %v2569_v4, %v2569_v4  ;;  %v2571_v8 = vadd.f32 %v2570_v5, %v2530_v3 }
 0x2c7   :  { %v2576_v9 = vrot.slane %v2575_v6, 4  ;;  %v2572_v10 = vpop.f32.mrf.mxu1 }
 0x2c8   :  { %v2593_v11 = vsel %vm1992_vm0, %v2591_v7, 0.0  ;;  %v2582_v52 = vsel %vm1992_vm0, %v2571_v8, 0.0  ;;  %v2592_v12 = vmul.f32 %v2571_v8, %v2571_v8 }
 0x2c9   :  { %v2577_v51 = vadd.f32 %v2576_v9, %v2575_v6  ;;  %v2594_v38 = vrot.slane %v2593_v11, 4  ;;  %v2583_v13 = vrot.slane %v2582_v52, 4  ;;  %v2573_v15 = vpop.f32.mrf.mxu1 }
 0x2ca   :  { %v2600_v16 = vsel %vm1992_vm0, %v2592_v12, 0.0 }
 0x2cb   :  { %v2578_v18 = vrot.slane %v2577_v51, 2  ;;  %v2595_v19 = vadd.f32 %v2594_v38, %v2593_v11  ;;  %v2584_v20 = vadd.f32 %v2583_v13, %v2582_v52  ;;  %v2601_v21 = vrot.slane %v2600_v16, 4 }
 0x2cd   :  { %v2579_v24 = vadd.f32 %v2578_v18, %v2577_v51  ;;  %v2596_v25 = vrot.slane %v2595_v19, 2  ;;  %v2585_v26 = vrot.slane %v2584_v20, 2  ;;  %v2602_v27 = vadd.f32 %v2601_v21, %v2600_v16 }
 0x2cf   :  { %v2580_v28 = vrot.slane %v2579_v24, 1  ;;  %v2597_v32 = vadd.f32 %v2596_v25, %v2595_v19  ;;  %v2586_v33 = vadd.f32 %v2585_v26, %v2584_v20  ;;  %v2603_v29 = vrot.slane %v2602_v27, 2 }
 0x2d1   :  { %v2581_v34 = vadd.f32 %v2580_v28, %v2579_v24  ;;  %v2598_v35 = vrot.slane %v2597_v32, 1  ;;  %v2587_v39 = vrot.slane %v2586_v33, 1  ;;  %v2604_v40 = vadd.f32 %v2603_v29, %v2602_v27 }
 0x2d3   :  { %v2589_v41 = vmul.f32 0.5, %v2581_v34  ;;  %v2599_v42 = vadd.f32 %v2598_v35, %v2597_v32  ;;  %v2588_v45 = vadd.f32 %v2587_v39, %v2586_v33  ;;  %v2605_v53 = vrot.slane %v2604_v40, 1 }
 0x2d5   :  { %v2607_v46 = vmul.f32 0.5, %v2599_v42  ;;  %v2609_v22 = vmul.f32 %v2589_v41, %v2589_v41  ;;  %v2590_v23 = vmul.f32 0.5, %v2588_v45  ;;  %v2606_v47 = vadd.f32 %v2605_v53, %v2604_v40 }
 0x2d6   :  { %v2615_v36 = vsub.f32 %v2569_v4, %v2589_v41 }
 0x2d7   :  { %v2611_v48 = vsub.f32 %v2607_v46, %v2609_v22  ;;  %v2610_v49 = vmul.f32 %v2590_v23, %v2590_v23  ;;  %v2608_v50 = vmul.f32 0.5, %v2606_v47  ;;  %v2616_v37 = vsub.f32 %v2571_v8, %v2590_v23 }
 0x2d9   :  { %v2613_v14 = vmax.f32 %v2611_v48, 0.0  ;;  %v2612_v17 = vsub.f32 %v2608_v50, %v2610_v49 }
 0x2db   :  { %v2617_v55 = vadd.f32 1e-05, %v2613_v14  ;;  %v2614_v30 = vmax.f32 %v2612_v17, 0.0 }
 0x2dd   :  { %3588 = vrsqrt.f32 %v2617_v55  ;;  %v2618_v31 = vadd.f32 1e-05, %v2614_v30 }
 0x2df   :  { %3590 = vrsqrt.f32 %v2618_v31 }
 0x2ea   :  { %v3589_v56 = vpop.eup %3588 }
 0x2eb   :  { %v2621_v59 = vmul.f32 %v3589_v56, %v2615_v36 }
 0x2ec   :  { %v3591_v58 = vpop.eup %3590 }
 0x2ed   :  { %v2622_v43 = vmul.f32 %v3591_v58, %v2616_v37  ;;  %v2623_v44 = vmax.f32 %v2621_v59, 0.0 }
 0x2ef   :  { %v2624_v60 = vmax.f32 %v2622_v43, 0.0 }
 0x2f1   :  { %2728 = vmatprep.mubr.f32.mxu0 %v2624_v60 }
 0x2f2   :  { %2729 = vmatmul.mubr.f32.vlgmr.msra.gmra.mxu0 %v2623_v44 }
 0x3b2   :  { %v3095_v61 = vpop.f32.mrf.mxu0 }
 0x3b4   :  { %v3096_v54 = vpop.f32.mrf.mxu0 }
 0x3b5   :  { %v3097_v63 = vadd.f32 %v3096_v54, %v3095_v61 }
 0x3b7   :  { %v2731_v0 = vadd.f32 %v3097_v63, %v3062_v62 }
 0x3b9   :  { %2735 = vst.msk [vmem:[%s4848_s8] sm:$0x3] %vm2734_vm1, %v2731_v0 }
 0x3ba   :  { %2740 = vsyncpa [#allocation3], 1 }

</bundles_post_ra>
